<compile_context>
chip_gen: v7x
topology: tpu7x:2x2x1
jax: 0.10.0
libtpu: 0.0.40
codegen_flags: <defaults>
</compile_context>

<pallas_src>
from functools import partial

import jax
import jax.numpy as jnp
from jax.experimental import pallas as pl
from jax.experimental.pallas import tpu as pltpu


# ----------------------------------------------------------------------------
# Pallas kernel: per-batch fused multi-head attention with additive pos bias.
# Heads are statically unrolled inside the body (num_heads is small).
# ----------------------------------------------------------------------------
def _attn_kernel(q_ref, k_ref, v_ref, bias_ref, o_ref, *,
                 num_heads, head_dim, scale):
    # (N, C) tiles for this batch; pre-scale q once (N*C elems, not N*N/head).
    q = q_ref[0].astype(jnp.float32) * scale
    k = k_ref[0].astype(jnp.float32)
    v = v_ref[0].astype(jnp.float32)

    outs = []
    for h in range(num_heads):                      # static unroll
        lo = h * head_dim
        hi = lo + head_dim
        qh = q[:, lo:hi]                            # (N, hd)
        kh = k[:, lo:hi]                            # (N, hd)
        vh = v[:, lo:hi]                            # (N, hd)

        # attn = (q*scale) @ k^T + bias_h   (single MXU push per head)
        s = jnp.dot(qh, kh.T, preferred_element_type=jnp.float32) + bias_ref[h]

        # numerically-stable softmax over the last dim (matches torch.softmax);
        # 1/sum is folded into the (N, hd) result via the EUP reciprocal so the
        # (N, N) probability matrix is never divided on the VALU.
        s = s - jnp.max(s, axis=-1, keepdims=True)
        p = jnp.exp(s)
        denom = jnp.sum(p, axis=-1, keepdims=True)
        oh = jnp.dot(p, vh, preferred_element_type=jnp.float32)
        oh = oh * pl.reciprocal(denom, approx=True)
        outs.append(oh)

    # single lane-dense (N, C) store (heads concatenated along the last dim,
    # which is exactly the (B, N, C) module layout).
    o_ref[0] = jnp.concatenate(outs, axis=-1).astype(o_ref.dtype)


def attention_share_local(q, k, v, rel_pos_bias, *, num_heads, scale):
    """q, k, v: (B, N, C); rel_pos_bias: (num_heads, N, N). Returns (B, N, C)."""
    B, N, C = q.shape
    head_dim = C // num_heads

    flops = 2 * B * num_heads * (2 * N * N * head_dim)          # qk^T + pv
    transcendentals = B * num_heads * N * N                     # exp
    bytes_accessed = (4 * B * N * C + num_heads * N * N) * 4    # q,k,v,out,bias

    return pl.pallas_call(
        partial(_attn_kernel, num_heads=num_heads, head_dim=head_dim,
                scale=scale),
        out_shape=jax.ShapeDtypeStruct((B, N, C), q.dtype),
        grid_spec=pltpu.PrefetchScalarGridSpec(
            num_scalar_prefetch=0,
            grid=(B,),
            in_specs=[
                pl.BlockSpec((1, N, C), lambda b: (b, 0, 0)),
                pl.BlockSpec((1, N, C), lambda b: (b, 0, 0)),
                pl.BlockSpec((1, N, C), lambda b: (b, 0, 0)),
                # full bias table, constant index_map -> VMEM resident, 1 DMA
                pl.BlockSpec((num_heads, N, N), lambda b: (0, 0, 0)),
            ],
            out_specs=pl.BlockSpec((1, N, C), lambda b: (b, 0, 0)),
        ),
        compiler_params=pltpu.CompilerParams(
            dimension_semantics=("parallel",)),
        cost_estimate=pl.CostEstimate(
            flops=flops,
            transcendentals=transcendentals,
            bytes_accessed=bytes_accessed),
    )(q, k, v, rel_pos_bias)


# ----------------------------------------------------------------------------
# dpb_pos: deterministic small MLP standing in for the DynamicPosBias module
# (passed in as a callable in the PyTorch forward; only its output shape
#  ((2G-1)^2, num_heads) matters for the attention math).
# ----------------------------------------------------------------------------
def make_dpb_params(key, num_heads, pos_dim):
    k1, k2 = jax.random.split(key)
    w1 = jax.random.normal(k1, (2, pos_dim), jnp.float32) * 0.02
    b1 = jnp.zeros((pos_dim,), jnp.float32)
    w2 = jax.random.normal(k2, (pos_dim, num_heads), jnp.float32) * 0.02
    b2 = jnp.zeros((num_heads,), jnp.float32)
    return (w1, b1, w2, b2)


def dpb_pos(params, biases):
    w1, b1, w2, b2 = params
    h = jax.nn.relu(biases @ w1 + b1)
    return h @ w2 + b2           # ((2G-1)^2, num_heads)


# ----------------------------------------------------------------------------
# Relative-position-bias table (plain-JAX mirror of the PyTorch index math).
# Faithfully reproduces the PyTorch quirk of using group_size[0] for both axes.
# ----------------------------------------------------------------------------
def build_relative_position_bias(dpb_params, group_size, num_heads):
    Gh, Gw = group_size
    pb = jnp.arange(1 - Gh, Gh)
    bh, bw = jnp.meshgrid(pb, pb, indexing="ij")
    biases = jnp.stack([bh, bw]).reshape(2, -1).T.astype(jnp.float32)

    coords = jnp.arange(Gh)
    ch, cw = jnp.meshgrid(coords, coords, indexing="ij")
    coords_flat = jnp.stack([ch, cw]).reshape(2, -1)              # (2, Gh*Gh)
    rel = coords_flat[:, :, None] - coords_flat[:, None, :]       # (2, Gh², Gh²)
    rel = rel.transpose(1, 2, 0)                                  # (Gh², Gh², 2)
    rel = rel.at[:, :, 0].add(Gh - 1)
    rel = rel.at[:, :, 1].add(Gh - 1)
    rel = rel.at[:, :, 0].multiply(2 * Gh - 1)
    rel_pos_index = rel.sum(-1)                                   # (Gh², Gh²)

    pos = dpb_pos(dpb_params, biases)                             # ((2Gh-1)², nh)
    rpb = pos[rel_pos_index.reshape(-1)].reshape(Gh * Gh, Gh * Gh, num_heads)
    if Gh != Gw:
        rpb = rpb[:, 0:Gw * Gw, :]
    return rpb.transpose(2, 0, 1)                                 # (nh, Gh², Gw²)


# ----------------------------------------------------------------------------
# main
# ----------------------------------------------------------------------------
if __name__ == "__main__":
    key = jax.random.PRNGKey(0)
    kq, kk, kv, kd = jax.random.split(key, 4)

    # small shapes consistent with the module: group 7x7 -> N = 49 tokens
    B = 2
    num_heads = 8
    dim = 32                       # head_dim = 4
    group_size = (7, 7)
    N = group_size[0] * group_size[1]
    head_dim = dim // num_heads
    scale = head_dim ** -0.5

    q = jax.random.normal(kq, (B, N, dim), jnp.float32)
    k = jax.random.normal(kk, (B, N, dim), jnp.float32)
    v = jax.random.normal(kv, (B, N, dim), jnp.float32)

    dpb_params = make_dpb_params(kd, num_heads, pos_dim=dim // 4)
    rel_pos_bias = build_relative_position_bias(dpb_params, group_size, num_heads)

    out = attention_share_local(q, k, v, rel_pos_bias,
                                num_heads=num_heads, scale=scale)
    out = jax.block_until_ready(out)

    # plain-JAX reference check.  (The H==7 and W==7 special case in the
    # PyTorch code is identical to the full-matrix bias add when N == G*G.)
    # TODO(synk): nn.Dropout(attn_drop=0.0) is an identity in eval mode; not modeled.
    qh = q.reshape(B, N, num_heads, head_dim).transpose(0, 2, 1, 3)
    kh = k.reshape(B, N, num_heads, head_dim).transpose(0, 2, 1, 3)
    vh = v.reshape(B, N, num_heads, head_dim).transpose(0, 2, 1, 3)
    attn = jnp.einsum("bhnd,bhmd->bhnm", qh, kh) * scale + rel_pos_bias[None]
    attn = jax.nn.softmax(attn, axis=-1)
    ref = jnp.einsum("bhnm,bhmd->bhnd", attn, vh).transpose(0, 2, 1, 3).reshape(B, N, dim)

    # tolerance loosened slightly: kernel uses the EUP approximate reciprocal
    # for the softmax normalization (pl.reciprocal(approx=True)).
    assert jnp.allclose(out, ref, atol=1e-2, rtol=1e-2), "mismatch vs reference"
    print("KERNEL_OK")
</pallas_src>

<mosaic_0001>
module attributes {stable_mosaic.version = 11 : i64} {
  func.func @_attn_kernel(%arg0: i32, %arg1: memref<1x49x32xf32, #tpu.memory_space<vmem>>, %arg2: memref<1x49x32xf32, #tpu.memory_space<vmem>>, %arg3: memref<1x49x32xf32, #tpu.memory_space<vmem>>, %arg4: memref<8x49x49xf32, #tpu.memory_space<vmem>>, %arg5: memref<1x49x32xf32, #tpu.memory_space<vmem>>) attributes {dimension_semantics = [#tpu.dimension_semantics<parallel>], iteration_bounds = array<i64: 2>, scalar_prefetch = 0 : i64, scratch_operands = 0 : i64, tpu.core_type = #tpu.core_type<tc>, window_params = [{transform_indices = @transform_0, window_bounds = array<i64: 1, 49, 32>}, {transform_indices = @transform_1, window_bounds = array<i64: 1, 49, 32>}, {transform_indices = @transform_2, window_bounds = array<i64: 1, 49, 32>}, {pipeline_mode = #tpu.pipeline_mode<synchronous>, transform_indices = @transform_3, window_bounds = array<i64: 8, 49, 49>}, {transform_indices = @transform_4, window_bounds = array<i64: 1, 49, 32>}]} {
    %c0 = arith.constant 0 : index
    %c0_0 = arith.constant 0 : index
    %c0_1 = arith.constant 0 : index
    %0 = vector.load %arg1[%c0, %c0_0, %c0_1] : memref<1x49x32xf32, #tpu.memory_space<vmem>>, vector<1x49x32xf32>
    %1 = vector.shape_cast %0 : vector<1x49x32xf32> to vector<49x32xf32>
    %cst = arith.constant 5.000000e-01 : f32
    %2 = vector.broadcast %cst : f32 to vector<49x32xf32>
    %3 = arith.mulf %1, %2 : vector<49x32xf32>
    %c0_2 = arith.constant 0 : index
    %c0_3 = arith.constant 0 : index
    %c0_4 = arith.constant 0 : index
    %4 = vector.load %arg2[%c0_2, %c0_3, %c0_4] : memref<1x49x32xf32, #tpu.memory_space<vmem>>, vector<1x49x32xf32>
    %5 = vector.shape_cast %4 : vector<1x49x32xf32> to vector<49x32xf32>
    %c0_5 = arith.constant 0 : index
    %c0_6 = arith.constant 0 : index
    %c0_7 = arith.constant 0 : index
    %6 = vector.load %arg3[%c0_5, %c0_6, %c0_7] : memref<1x49x32xf32, #tpu.memory_space<vmem>>, vector<1x49x32xf32>
    %7 = vector.shape_cast %6 : vector<1x49x32xf32> to vector<49x32xf32>
    %8 = vector.extract_strided_slice %3 {offsets = [0, 0], sizes = [49, 4], strides = [1, 1]} : vector<49x32xf32> to vector<49x4xf32>
    %9 = vector.extract_strided_slice %5 {offsets = [0, 0], sizes = [49, 4], strides = [1, 1]} : vector<49x32xf32> to vector<49x4xf32>
    %10 = vector.extract_strided_slice %7 {offsets = [0, 0], sizes = [49, 4], strides = [1, 1]} : vector<49x32xf32> to vector<49x4xf32>
    %11 = tpu.transpose %9, [1, 0] : vector<49x4xf32> -> vector<4x49xf32>
    %cst_8 = arith.constant dense<0.000000e+00> : vector<49x49xf32>
    %12 = tpu.matmul %8, %11, %cst_8 {dimension_numbers = #tpu.dot_dimension_numbers<[1], [0], [0], [1], [0, 0, 1, 1], [], []>} : vector<49x4xf32>, vector<4x49xf32>, vector<49x49xf32> -> vector<49x49xf32>
    %c0_9 = arith.constant 0 : index
    %c0_10 = arith.constant 0 : index
    %c0_11 = arith.constant 0 : index
    %13 = vector.load %arg4[%c0_9, %c0_10, %c0_11] : memref<8x49x49xf32, #tpu.memory_space<vmem>>, vector<1x49x49xf32>
    %14 = vector.shape_cast %13 : vector<1x49x49xf32> to vector<49x49xf32>
    %15 = arith.addf %12, %14 : vector<49x49xf32>
    %cst_12 = arith.constant dense<0xFF800000> : vector<49xf32>
    %16 = vector.multi_reduction <maximumf>, %15, %cst_12 [1] : vector<49x49xf32> to vector<49xf32>
    %17 = vector.shape_cast %16 : vector<49xf32> to vector<49x1xf32>
    %18 = vector.broadcast %17 : vector<49x1xf32> to vector<49x49xf32>
    %19 = arith.subf %15, %18 : vector<49x49xf32>
    %20 = math.exp %19 : vector<49x49xf32>
    %cst_13 = arith.constant dense<0.000000e+00> : vector<49xf32>
    %21 = vector.multi_reduction <add>, %20, %cst_13 [1] : vector<49x49xf32> to vector<49xf32>
    %22 = vector.shape_cast %21 : vector<49xf32> to vector<49x1xf32>
    %cst_14 = arith.constant dense<0.000000e+00> : vector<49x4xf32>
    %23 = tpu.matmul %20, %10, %cst_14 {dimension_numbers = #tpu.dot_dimension_numbers<[1], [0], [0], [1], [0, 0, 1, 1], [], []>} : vector<49x49xf32>, vector<49x4xf32>, vector<49x4xf32> -> vector<49x4xf32>
    %24 = tpu.reciprocal %22 {approx = true} : vector<49x1xf32> -> vector<49x1xf32>
    %25 = vector.broadcast %24 : vector<49x1xf32> to vector<49x4xf32>
    %26 = arith.mulf %23, %25 : vector<49x4xf32>
    %27 = vector.extract_strided_slice %3 {offsets = [0, 4], sizes = [49, 4], strides = [1, 1]} : vector<49x32xf32> to vector<49x4xf32>
    %28 = vector.extract_strided_slice %5 {offsets = [0, 4], sizes = [49, 4], strides = [1, 1]} : vector<49x32xf32> to vector<49x4xf32>
    %29 = vector.extract_strided_slice %7 {offsets = [0, 4], sizes = [49, 4], strides = [1, 1]} : vector<49x32xf32> to vector<49x4xf32>
    %30 = tpu.transpose %28, [1, 0] : vector<49x4xf32> -> vector<4x49xf32>
    %cst_15 = arith.constant dense<0.000000e+00> : vector<49x49xf32>
    %31 = tpu.matmul %27, %30, %cst_15 {dimension_numbers = #tpu.dot_dimension_numbers<[1], [0], [0], [1], [0, 0, 1, 1], [], []>} : vector<49x4xf32>, vector<4x49xf32>, vector<49x49xf32> -> vector<49x49xf32>
    %c1 = arith.constant 1 : index
    %c0_16 = arith.constant 0 : index
    %c0_17 = arith.constant 0 : index
    %32 = vector.load %arg4[%c1, %c0_16, %c0_17] : memref<8x49x49xf32, #tpu.memory_space<vmem>>, vector<1x49x49xf32>
    %33 = vector.shape_cast %32 : vector<1x49x49xf32> to vector<49x49xf32>
    %34 = arith.addf %31, %33 : vector<49x49xf32>
    %cst_18 = arith.constant dense<0xFF800000> : vector<49xf32>
    %35 = vector.multi_reduction <maximumf>, %34, %cst_18 [1] : vector<49x49xf32> to vector<49xf32>
    %36 = vector.shape_cast %35 : vector<49xf32> to vector<49x1xf32>
    %37 = vector.broadcast %36 : vector<49x1xf32> to vector<49x49xf32>
    %38 = arith.subf %34, %37 : vector<49x49xf32>
    %39 = math.exp %38 : vector<49x49xf32>
    %cst_19 = arith.constant dense<0.000000e+00> : vector<49xf32>
    %40 = vector.multi_reduction <add>, %39, %cst_19 [1] : vector<49x49xf32> to vector<49xf32>
    %41 = vector.shape_cast %40 : vector<49xf32> to vector<49x1xf32>
    %cst_20 = arith.constant dense<0.000000e+00> : vector<49x4xf32>
    %42 = tpu.matmul %39, %29, %cst_20 {dimension_numbers = #tpu.dot_dimension_numbers<[1], [0], [0], [1], [0, 0, 1, 1], [], []>} : vector<49x49xf32>, vector<49x4xf32>, vector<49x4xf32> -> vector<49x4xf32>
    %43 = tpu.reciprocal %41 {approx = true} : vector<49x1xf32> -> vector<49x1xf32>
    %44 = vector.broadcast %43 : vector<49x1xf32> to vector<49x4xf32>
    %45 = arith.mulf %42, %44 : vector<49x4xf32>
    %46 = vector.extract_strided_slice %3 {offsets = [0, 8], sizes = [49, 4], strides = [1, 1]} : vector<49x32xf32> to vector<49x4xf32>
    %47 = vector.extract_strided_slice %5 {offsets = [0, 8], sizes = [49, 4], strides = [1, 1]} : vector<49x32xf32> to vector<49x4xf32>
    %48 = vector.extract_strided_slice %7 {offsets = [0, 8], sizes = [49, 4], strides = [1, 1]} : vector<49x32xf32> to vector<49x4xf32>
    %49 = tpu.transpose %47, [1, 0] : vector<49x4xf32> -> vector<4x49xf32>
    %cst_21 = arith.constant dense<0.000000e+00> : vector<49x49xf32>
    %50 = tpu.matmul %46, %49, %cst_21 {dimension_numbers = #tpu.dot_dimension_numbers<[1], [0], [0], [1], [0, 0, 1, 1], [], []>} : vector<49x4xf32>, vector<4x49xf32>, vector<49x49xf32> -> vector<49x49xf32>
    %c2 = arith.constant 2 : index
    %c0_22 = arith.constant 0 : index
    %c0_23 = arith.constant 0 : index
    %51 = vector.load %arg4[%c2, %c0_22, %c0_23] : memref<8x49x49xf32, #tpu.memory_space<vmem>>, vector<1x49x49xf32>
    %52 = vector.shape_cast %51 : vector<1x49x49xf32> to vector<49x49xf32>
    %53 = arith.addf %50, %52 : vector<49x49xf32>
    %cst_24 = arith.constant dense<0xFF800000> : vector<49xf32>
    %54 = vector.multi_reduction <maximumf>, %53, %cst_24 [1] : vector<49x49xf32> to vector<49xf32>
    %55 = vector.shape_cast %54 : vector<49xf32> to vector<49x1xf32>
    %56 = vector.broadcast %55 : vector<49x1xf32> to vector<49x49xf32>
    %57 = arith.subf %53, %56 : vector<49x49xf32>
    %58 = math.exp %57 : vector<49x49xf32>
    %cst_25 = arith.constant dense<0.000000e+00> : vector<49xf32>
    %59 = vector.multi_reduction <add>, %58, %cst_25 [1] : vector<49x49xf32> to vector<49xf32>
    %60 = vector.shape_cast %59 : vector<49xf32> to vector<49x1xf32>
    %cst_26 = arith.constant dense<0.000000e+00> : vector<49x4xf32>
    %61 = tpu.matmul %58, %48, %cst_26 {dimension_numbers = #tpu.dot_dimension_numbers<[1], [0], [0], [1], [0, 0, 1, 1], [], []>} : vector<49x49xf32>, vector<49x4xf32>, vector<49x4xf32> -> vector<49x4xf32>
    %62 = tpu.reciprocal %60 {approx = true} : vector<49x1xf32> -> vector<49x1xf32>
    %63 = vector.broadcast %62 : vector<49x1xf32> to vector<49x4xf32>
    %64 = arith.mulf %61, %63 : vector<49x4xf32>
    %65 = vector.extract_strided_slice %3 {offsets = [0, 12], sizes = [49, 4], strides = [1, 1]} : vector<49x32xf32> to vector<49x4xf32>
    %66 = vector.extract_strided_slice %5 {offsets = [0, 12], sizes = [49, 4], strides = [1, 1]} : vector<49x32xf32> to vector<49x4xf32>
    %67 = vector.extract_strided_slice %7 {offsets = [0, 12], sizes = [49, 4], strides = [1, 1]} : vector<49x32xf32> to vector<49x4xf32>
    %68 = tpu.transpose %66, [1, 0] : vector<49x4xf32> -> vector<4x49xf32>
    %cst_27 = arith.constant dense<0.000000e+00> : vector<49x49xf32>
    %69 = tpu.matmul %65, %68, %cst_27 {dimension_numbers = #tpu.dot_dimension_numbers<[1], [0], [0], [1], [0, 0, 1, 1], [], []>} : vector<49x4xf32>, vector<4x49xf32>, vector<49x49xf32> -> vector<49x49xf32>
    %c3 = arith.constant 3 : index
    %c0_28 = arith.constant 0 : index
    %c0_29 = arith.constant 0 : index
    %70 = vector.load %arg4[%c3, %c0_28, %c0_29] : memref<8x49x49xf32, #tpu.memory_space<vmem>>, vector<1x49x49xf32>
    %71 = vector.shape_cast %70 : vector<1x49x49xf32> to vector<49x49xf32>
    %72 = arith.addf %69, %71 : vector<49x49xf32>
    %cst_30 = arith.constant dense<0xFF800000> : vector<49xf32>
    %73 = vector.multi_reduction <maximumf>, %72, %cst_30 [1] : vector<49x49xf32> to vector<49xf32>
    %74 = vector.shape_cast %73 : vector<49xf32> to vector<49x1xf32>
    %75 = vector.broadcast %74 : vector<49x1xf32> to vector<49x49xf32>
    %76 = arith.subf %72, %75 : vector<49x49xf32>
    %77 = math.exp %76 : vector<49x49xf32>
    %cst_31 = arith.constant dense<0.000000e+00> : vector<49xf32>
    %78 = vector.multi_reduction <add>, %77, %cst_31 [1] : vector<49x49xf32> to vector<49xf32>
    %79 = vector.shape_cast %78 : vector<49xf32> to vector<49x1xf32>
    %cst_32 = arith.constant dense<0.000000e+00> : vector<49x4xf32>
    %80 = tpu.matmul %77, %67, %cst_32 {dimension_numbers = #tpu.dot_dimension_numbers<[1], [0], [0], [1], [0, 0, 1, 1], [], []>} : vector<49x49xf32>, vector<49x4xf32>, vector<49x4xf32> -> vector<49x4xf32>
    %81 = tpu.reciprocal %79 {approx = true} : vector<49x1xf32> -> vector<49x1xf32>
    %82 = vector.broadcast %81 : vector<49x1xf32> to vector<49x4xf32>
    %83 = arith.mulf %80, %82 : vector<49x4xf32>
    %84 = vector.extract_strided_slice %3 {offsets = [0, 16], sizes = [49, 4], strides = [1, 1]} : vector<49x32xf32> to vector<49x4xf32>
    %85 = vector.extract_strided_slice %5 {offsets = [0, 16], sizes = [49, 4], strides = [1, 1]} : vector<49x32xf32> to vector<49x4xf32>
    %86 = vector.extract_strided_slice %7 {offsets = [0, 16], sizes = [49, 4], strides = [1, 1]} : vector<49x32xf32> to vector<49x4xf32>
    %87 = tpu.transpose %85, [1, 0] : vector<49x4xf32> -> vector<4x49xf32>
    %cst_33 = arith.constant dense<0.000000e+00> : vector<49x49xf32>
    %88 = tpu.matmul %84, %87, %cst_33 {dimension_numbers = #tpu.dot_dimension_numbers<[1], [0], [0], [1], [0, 0, 1, 1], [], []>} : vector<49x4xf32>, vector<4x49xf32>, vector<49x49xf32> -> vector<49x49xf32>
    %c4 = arith.constant 4 : index
    %c0_34 = arith.constant 0 : index
    %c0_35 = arith.constant 0 : index
    %89 = vector.load %arg4[%c4, %c0_34, %c0_35] : memref<8x49x49xf32, #tpu.memory_space<vmem>>, vector<1x49x49xf32>
    %90 = vector.shape_cast %89 : vector<1x49x49xf32> to vector<49x49xf32>
    %91 = arith.addf %88, %90 : vector<49x49xf32>
    %cst_36 = arith.constant dense<0xFF800000> : vector<49xf32>
    %92 = vector.multi_reduction <maximumf>, %91, %cst_36 [1] : vector<49x49xf32> to vector<49xf32>
    %93 = vector.shape_cast %92 : vector<49xf32> to vector<49x1xf32>
    %94 = vector.broadcast %93 : vector<49x1xf32> to vector<49x49xf32>
    %95 = arith.subf %91, %94 : vector<49x49xf32>
    %96 = math.exp %95 : vector<49x49xf32>
    %cst_37 = arith.constant dense<0.000000e+00> : vector<49xf32>
    %97 = vector.multi_reduction <add>, %96, %cst_37 [1] : vector<49x49xf32> to vector<49xf32>
    %98 = vector.shape_cast %97 : vector<49xf32> to vector<49x1xf32>
    %cst_38 = arith.constant dense<0.000000e+00> : vector<49x4xf32>
    %99 = tpu.matmul %96, %86, %cst_38 {dimension_numbers = #tpu.dot_dimension_numbers<[1], [0], [0], [1], [0, 0, 1, 1], [], []>} : vector<49x49xf32>, vector<49x4xf32>, vector<49x4xf32> -> vector<49x4xf32>
    %100 = tpu.reciprocal %98 {approx = true} : vector<49x1xf32> -> vector<49x1xf32>
    %101 = vector.broadcast %100 : vector<49x1xf32> to vector<49x4xf32>
    %102 = arith.mulf %99, %101 : vector<49x4xf32>
    %103 = vector.extract_strided_slice %3 {offsets = [0, 20], sizes = [49, 4], strides = [1, 1]} : vector<49x32xf32> to vector<49x4xf32>
    %104 = vector.extract_strided_slice %5 {offsets = [0, 20], sizes = [49, 4], strides = [1, 1]} : vector<49x32xf32> to vector<49x4xf32>
    %105 = vector.extract_strided_slice %7 {offsets = [0, 20], sizes = [49, 4], strides = [1, 1]} : vector<49x32xf32> to vector<49x4xf32>
    %106 = tpu.transpose %104, [1, 0] : vector<49x4xf32> -> vector<4x49xf32>
    %cst_39 = arith.constant dense<0.000000e+00> : vector<49x49xf32>
    %107 = tpu.matmul %103, %106, %cst_39 {dimension_numbers = #tpu.dot_dimension_numbers<[1], [0], [0], [1], [0, 0, 1, 1], [], []>} : vector<49x4xf32>, vector<4x49xf32>, vector<49x49xf32> -> vector<49x49xf32>
    %c5 = arith.constant 5 : index
    %c0_40 = arith.constant 0 : index
    %c0_41 = arith.constant 0 : index
    %108 = vector.load %arg4[%c5, %c0_40, %c0_41] : memref<8x49x49xf32, #tpu.memory_space<vmem>>, vector<1x49x49xf32>
    %109 = vector.shape_cast %108 : vector<1x49x49xf32> to vector<49x49xf32>
    %110 = arith.addf %107, %109 : vector<49x49xf32>
    %cst_42 = arith.constant dense<0xFF800000> : vector<49xf32>
    %111 = vector.multi_reduction <maximumf>, %110, %cst_42 [1] : vector<49x49xf32> to vector<49xf32>
    %112 = vector.shape_cast %111 : vector<49xf32> to vector<49x1xf32>
    %113 = vector.broadcast %112 : vector<49x1xf32> to vector<49x49xf32>
    %114 = arith.subf %110, %113 : vector<49x49xf32>
    %115 = math.exp %114 : vector<49x49xf32>
    %cst_43 = arith.constant dense<0.000000e+00> : vector<49xf32>
    %116 = vector.multi_reduction <add>, %115, %cst_43 [1] : vector<49x49xf32> to vector<49xf32>
    %117 = vector.shape_cast %116 : vector<49xf32> to vector<49x1xf32>
    %cst_44 = arith.constant dense<0.000000e+00> : vector<49x4xf32>
    %118 = tpu.matmul %115, %105, %cst_44 {dimension_numbers = #tpu.dot_dimension_numbers<[1], [0], [0], [1], [0, 0, 1, 1], [], []>} : vector<49x49xf32>, vector<49x4xf32>, vector<49x4xf32> -> vector<49x4xf32>
    %119 = tpu.reciprocal %117 {approx = true} : vector<49x1xf32> -> vector<49x1xf32>
    %120 = vector.broadcast %119 : vector<49x1xf32> to vector<49x4xf32>
    %121 = arith.mulf %118, %120 : vector<49x4xf32>
    %122 = vector.extract_strided_slice %3 {offsets = [0, 24], sizes = [49, 4], strides = [1, 1]} : vector<49x32xf32> to vector<49x4xf32>
    %123 = vector.extract_strided_slice %5 {offsets = [0, 24], sizes = [49, 4], strides = [1, 1]} : vector<49x32xf32> to vector<49x4xf32>
    %124 = vector.extract_strided_slice %7 {offsets = [0, 24], sizes = [49, 4], strides = [1, 1]} : vector<49x32xf32> to vector<49x4xf32>
    %125 = tpu.transpose %123, [1, 0] : vector<49x4xf32> -> vector<4x49xf32>
    %cst_45 = arith.constant dense<0.000000e+00> : vector<49x49xf32>
    %126 = tpu.matmul %122, %125, %cst_45 {dimension_numbers = #tpu.dot_dimension_numbers<[1], [0], [0], [1], [0, 0, 1, 1], [], []>} : vector<49x4xf32>, vector<4x49xf32>, vector<49x49xf32> -> vector<49x49xf32>
    %c6 = arith.constant 6 : index
    %c0_46 = arith.constant 0 : index
    %c0_47 = arith.constant 0 : index
    %127 = vector.load %arg4[%c6, %c0_46, %c0_47] : memref<8x49x49xf32, #tpu.memory_space<vmem>>, vector<1x49x49xf32>
    %128 = vector.shape_cast %127 : vector<1x49x49xf32> to vector<49x49xf32>
    %129 = arith.addf %126, %128 : vector<49x49xf32>
    %cst_48 = arith.constant dense<0xFF800000> : vector<49xf32>
    %130 = vector.multi_reduction <maximumf>, %129, %cst_48 [1] : vector<49x49xf32> to vector<49xf32>
    %131 = vector.shape_cast %130 : vector<49xf32> to vector<49x1xf32>
    %132 = vector.broadcast %131 : vector<49x1xf32> to vector<49x49xf32>
    %133 = arith.subf %129, %132 : vector<49x49xf32>
    %134 = math.exp %133 : vector<49x49xf32>
    %cst_49 = arith.constant dense<0.000000e+00> : vector<49xf32>
    %135 = vector.multi_reduction <add>, %134, %cst_49 [1] : vector<49x49xf32> to vector<49xf32>
    %136 = vector.shape_cast %135 : vector<49xf32> to vector<49x1xf32>
    %cst_50 = arith.constant dense<0.000000e+00> : vector<49x4xf32>
    %137 = tpu.matmul %134, %124, %cst_50 {dimension_numbers = #tpu.dot_dimension_numbers<[1], [0], [0], [1], [0, 0, 1, 1], [], []>} : vector<49x49xf32>, vector<49x4xf32>, vector<49x4xf32> -> vector<49x4xf32>
    %138 = tpu.reciprocal %136 {approx = true} : vector<49x1xf32> -> vector<49x1xf32>
    %139 = vector.broadcast %138 : vector<49x1xf32> to vector<49x4xf32>
    %140 = arith.mulf %137, %139 : vector<49x4xf32>
    %141 = vector.extract_strided_slice %3 {offsets = [0, 28], sizes = [49, 4], strides = [1, 1]} : vector<49x32xf32> to vector<49x4xf32>
    %142 = vector.extract_strided_slice %5 {offsets = [0, 28], sizes = [49, 4], strides = [1, 1]} : vector<49x32xf32> to vector<49x4xf32>
    %143 = vector.extract_strided_slice %7 {offsets = [0, 28], sizes = [49, 4], strides = [1, 1]} : vector<49x32xf32> to vector<49x4xf32>
    %144 = tpu.transpose %142, [1, 0] : vector<49x4xf32> -> vector<4x49xf32>
    %cst_51 = arith.constant dense<0.000000e+00> : vector<49x49xf32>
    %145 = tpu.matmul %141, %144, %cst_51 {dimension_numbers = #tpu.dot_dimension_numbers<[1], [0], [0], [1], [0, 0, 1, 1], [], []>} : vector<49x4xf32>, vector<4x49xf32>, vector<49x49xf32> -> vector<49x49xf32>
    %c7 = arith.constant 7 : index
    %c0_52 = arith.constant 0 : index
    %c0_53 = arith.constant 0 : index
    %146 = vector.load %arg4[%c7, %c0_52, %c0_53] : memref<8x49x49xf32, #tpu.memory_space<vmem>>, vector<1x49x49xf32>
    %147 = vector.shape_cast %146 : vector<1x49x49xf32> to vector<49x49xf32>
    %148 = arith.addf %145, %147 : vector<49x49xf32>
    %cst_54 = arith.constant dense<0xFF800000> : vector<49xf32>
    %149 = vector.multi_reduction <maximumf>, %148, %cst_54 [1] : vector<49x49xf32> to vector<49xf32>
    %150 = vector.shape_cast %149 : vector<49xf32> to vector<49x1xf32>
    %151 = vector.broadcast %150 : vector<49x1xf32> to vector<49x49xf32>
    %152 = arith.subf %148, %151 : vector<49x49xf32>
    %153 = math.exp %152 : vector<49x49xf32>
    %cst_55 = arith.constant dense<0.000000e+00> : vector<49xf32>
    %154 = vector.multi_reduction <add>, %153, %cst_55 [1] : vector<49x49xf32> to vector<49xf32>
    %155 = vector.shape_cast %154 : vector<49xf32> to vector<49x1xf32>
    %cst_56 = arith.constant dense<0.000000e+00> : vector<49x4xf32>
    %156 = tpu.matmul %153, %143, %cst_56 {dimension_numbers = #tpu.dot_dimension_numbers<[1], [0], [0], [1], [0, 0, 1, 1], [], []>} : vector<49x49xf32>, vector<49x4xf32>, vector<49x4xf32> -> vector<49x4xf32>
    %157 = tpu.reciprocal %155 {approx = true} : vector<49x1xf32> -> vector<49x1xf32>
    %158 = vector.broadcast %157 : vector<49x1xf32> to vector<49x4xf32>
    %159 = arith.mulf %156, %158 : vector<49x4xf32>
    %160 = tpu.concatenate %26, %45, %64, %83, %102, %121, %140, %159 in 1 : vector<49x4xf32>, vector<49x4xf32>, vector<49x4xf32>, vector<49x4xf32>, vector<49x4xf32>, vector<49x4xf32>, vector<49x4xf32>, vector<49x4xf32> -> vector<49x32xf32>
    %c0_57 = arith.constant 0 : index
    %c0_58 = arith.constant 0 : index
    %c0_59 = arith.constant 0 : index
    %161 = vector.load %arg5[%c0_57, %c0_58, %c0_59] : memref<1x49x32xf32, #tpu.memory_space<vmem>>, vector<1x49x32xf32>
    %162 = vector.shape_cast %161 : vector<1x49x32xf32> to vector<49x32xf32>
    %163 = vector.shape_cast %160 : vector<49x32xf32> to vector<1x49x32xf32>
    tpu.vector_store %arg5[%c0_57, %c0_58, %c0_59], %163 {strides = array<i32>} : memref<1x49x32xf32, #tpu.memory_space<vmem>>, vector<1x49x32xf32>,
    return
  }
  func.func @transform_0(%arg0: i32) -> (i32, i32, i32) {
    %c0_i32 = arith.constant 0 : i32
    %c0_i32_0 = arith.constant 0 : i32
    %c0_i32_1 = arith.constant 0 : i32
    return %arg0, %c0_i32, %c0_i32_0 : i32, i32, i32
  }
  func.func @transform_1(%arg0: i32) -> (i32, i32, i32) {
    %c0_i32 = arith.constant 0 : i32
    %c0_i32_0 = arith.constant 0 : i32
    %c0_i32_1 = arith.constant 0 : i32
    return %arg0, %c0_i32, %c0_i32_0 : i32, i32, i32
  }
  func.func @transform_2(%arg0: i32) -> (i32, i32, i32) {
    %c0_i32 = arith.constant 0 : i32
    %c0_i32_0 = arith.constant 0 : i32
    %c0_i32_1 = arith.constant 0 : i32
    return %arg0, %c0_i32, %c0_i32_0 : i32, i32, i32
  }
  func.func @transform_3(%arg0: i32) -> (i32, i32, i32) {
    %c0_i32 = arith.constant 0 : i32
    %c0_i32_0 = arith.constant 0 : i32
    %c0_i32_1 = arith.constant 0 : i32
    %c0_i32_2 = arith.constant 0 : i32
    return %c0_i32, %c0_i32_0, %c0_i32_1 : i32, i32, i32
  }
  func.func @transform_4(%arg0: i32) -> (i32, i32, i32) {
    %c0_i32 = arith.constant 0 : i32
    %c0_i32_0 = arith.constant 0 : i32
    %c0_i32_1 = arith.constant 0 : i32
    return %arg0, %c0_i32, %c0_i32_0 : i32, i32, i32
  }
}

</mosaic_0001>

<bundles_post_ra>
// kernel: tpu_custom_call.1
= control target key start
LH: loop header
LB: loop body
LE: loop exit
PB: predicated region body
PF: predicated region fallthrough
CT: control target
= control target key end

     0   :  { %s5366_s15 = smov 0   ;;  %s7344_s0 = inlined_call_operand.vmem [shape: f32[2,49,32], index: 0, kind: input, shape index: {}]   ;;  %s7345_s1 = inlined_call_operand.vmem [shape: f32[2,49,32], index: 1, kind: input, shape index: {}]   ;;  %s7346_s2 = inlined_call_operand.vmem [shape: f32[2,49,32], index: 2, kind: input, shape index: {}]   ;;  %s7347_s3 = inlined_call_operand.vmem [shape: f32[8,49,49], index: 3, kind: input, shape index: {}]   ;;  %s7348_s4 = inlined_call_operand.vmem [shape: f32[2,49,32], index: 4, kind: output, shape index: {}]  }
   0x1 LB: > { %s3653_s16 = sadd.s32 4294967295, %s5322_s15   ;;  %p3657_p0 = scmp.ge.s32.totalorder %s5322_s15, 1  ;;  %s5322_s15 = sphi %s5366_s15, %s14_s15  }
   0x2   : > { %p182_p1 = scmp.lt.s32.totalorder %s5322_s15, 3 }
   0x4   : > { %p183_p2 = pnand %p3657_p0, %p182_p1 }
   0x6   : > { %186 = sbr.rel (%p183_p2) target bundleno = 1435 (0x59b), region = 36 }
   0xd   : > { %p218_p3 = scmp.lt.s32.totalorder %s3653_s16, 1  ;;  %v7349_v0 = vmov 0.0|0.0   ;;  %vm5325_vm0 = vmmov 0   ;;  %v7351_v1 = vmov 0.0   ;;  %vm273_vm1 = vcmask 31744   ;;  %s5327_s21 = smov 124  }
   0xe   : > { %4673 = vmatprep.subr.bf16.mxu0 %v7349_v0  ;;  %4127 = vmatprep.mubr.msk.f32.mxu0 %vm5325_vm0, %v7351_v1  ;;  %vm5388_vm2 = vmpackc.low %vm273_vm1, %vm273_vm1  ;;  %v266_v28 = vld [vmem:[%s7347_s3] sm:$0xff]  ;;  %vm416_vm3 = vcmask 400384   ;;  %v267_v32 = vld [vmem:[%s7347_s3 + $0x8] sm:$0xff]  ;;  %vm502_vm4 = vcmask 1040384   ;;  %vm435_vm5 = vcmask 393216   ;;  %s5328_s18 = smov 120  }
   0xf   : > { %s7426_s16 = smov (!%p218_p3, %s3653_s16), 1  ;;  %4685 = vmatprep.subr.bf16.mxu1 %v7349_v0  ;;  %4162 = vmatprep.mubr.msk.f32.mxu1 %vm5325_vm0, %v7351_v1  ;;  %v268_v37 = vld [vmem:[%s7347_s3 + $0x10] sm:$0xff]  ;;  %v269_v42 = vld [vmem:[%s7347_s3 + $0x18] sm:$0xff]  ;;  %v270_v50 = vld [vmem:[%s7347_s3 + $0x20] sm:$0xff]  ;;  %s5329_s19 = smov 116   ;;  %vm3517_vm6 = vcmask 64512  }
  0x10   : > { %s5380_s17 = smul.u32 56, %s7426_s16  ;;  %s5331_s22 = smov 108   ;;  %vm3525_vm7 = vcmask 97280   ;;  %vm3533_vm8 = vcmask 130048   ;;  %vm3541_vm9 = vcmask 162816   ;;  %vm3549_vm10 = vcmask 195584  }
  0x11   : > { %s5332_s23 = smov 104   ;;  %s5336_s10 = smov 12   ;;  %vm3557_vm11 = vcmask 228352   ;;  %vm3565_vm12 = vcmask 261120   ;;  %vm3572_vm13 = vcmask 253952  }
  0x12   : > { %s227_s20 = scalar_lea.vmem %s7345_s1, %s5380_s17  ;;  %s222_s24 = scalar_lea.vmem %s7344_s0, %s5380_s17 }
  0x13   : > { %v252_v2 = vld [vmem:[%s227_s20] sm:$0xff]  ;;  %v253_v3 = vld [vmem:[%s227_s20 + $0x8] sm:$0xff]  ;;  %v5399_v7 = vld [vmem:[%s227_s20 + $0x10] sm:$0xff]  ;;  %s5494_s9 = scalar_lea.vmem %s7346_s2, %s5380_s17  ;;  %s5337_s11 = smov 16  }
  0x14   : > { %v4674_v5 = vpack.c.bf16 %v253_v3, %v252_v2  ;;  %v5392_v6 = vpack.i.bf16 %v253_v3, %v252_v2  ;;  %v5401_v8 = vld [vmem:[%s227_s20 + $0x18] sm:$0xff]  ;;  %v5408_v10 = vld [vmem:[%s227_s20 + $0x20] sm:$0xff]  ;;  %v5410_v11 = vld [vmem:[%s227_s20 + $0x28] sm:$0xff]  ;;  %s5338_s12 = smov 20   ;;  %s5339_s13 = smov 24  }
  0x15   : > { %v4678_v9 = vpack.c.bf16 %v5401_v8, %v5399_v7  ;;  %v4682_v12 = vpack.c.bf16 %v5410_v11, %v5408_v10  ;;  %v238_v13 = vld [vmem:[%s222_s24] sm:$0xff]  ;;  %v5421_v14 = vld [vmem:[%s227_s20 + $0x30] sm:$0x1]  ;;  %v239_v16 = vld [vmem:[%s222_s24 + $0x8] sm:$0xff]  ;;  %s5330_s20 = smov 112  }
  0x16   : > { %4676 = vmatpush3.bf16.xpose.msk.msra.mxu0 %vm5388_vm2, %v4674_v5  ;;  %4876 = vrot.lane.b32.xlu1 %v5392_v6, %s5327_s21  ;;  %v5423_v15 = vmul.f32 0.5, %v238_v13  ;;  %v5430_v17 = vmul.f32 0.5, %v239_v16  ;;  %v240_v18 = vld [vmem:[%s222_s24 + $0x10] sm:$0xff]  ;;  %v241_v20 = vld [vmem:[%s222_s24 + $0x18] sm:$0xff]  ;;  %v242_v22 = vld [vmem:[%s222_s24 + $0x20] sm:$0xff] }
  0x17   : > { %4677 = vmatprep.subr.bf16.mxu0 %v7349_v0  ;;  %v5436_v19 = vmul.f32 0.5, %v240_v18  ;;  %v5442_v21 = vmul.f32 0.5, %v241_v20  ;;  %v5448_v23 = vmul.f32 0.5, %v242_v22  ;;  %v243_v24 = vld [vmem:[%s222_s24 + $0x28] sm:$0xff]  ;;  %v244_v26 = vld [vmem:[%s222_s24 + $0x30] sm:$0x1] }
  0x18   : > { %v5454_v25 = vmul.f32 0.5, %v243_v24  ;;  %v5460_v27 = vmul.f32 0.5, %v244_v26  ;;  %v5499_v44 = vld [vmem:[%s5494_s9] sm:$0xff]  ;;  %v5502_v45 = vld [vmem:[%s5494_s9 + $0x8] sm:$0xff]  ;;  %v5515_v52 = vld [vmem:[%s5494_s9 + $0x10] sm:$0xff]  ;;  %s5333_s24 = smov 100  }
  0x19   : > { %v4686_v47 = vpack.c.bf16 %v5502_v45, %v5499_v44  ;;  %v5518_v53 = vld [vmem:[%s5494_s9 + $0x18] sm:$0xff]  ;;  %v5528_v59 = vld [vmem:[%s5494_s9 + $0x20] sm:$0xff]  ;;  %v5531_v60 = vld [vmem:[%s5494_s9 + $0x28] sm:$0xff] }
  0x1a   : > { %v4689_v55 = vpack.c.bf16 %v5518_v53, %v5515_v52  ;;  %v4692_v62 = vpack.c.bf16 %v5531_v60, %v5528_v59  ;;  %v5537_v5 = vld [vmem:[%s5494_s9 + $0x30] sm:$0x1]  ;;  %v271_v13 = vld [vmem:[%s7347_s3 + $0x28] sm:$0xff] }
  0x1b   : > { %4687 = vmatpush3.bf16.msra.mxu1 %v4686_v47 }
  0x1c   : > { %4688 = vmatprep.subr.bf16.mxu1 %v7349_v0 }
  0x1e   : > { %4680 = vmatpush3.bf16.xpose.msk.msra.mxu0 %vm5388_vm2, %v4678_v9  ;;  %v5544_v9 = vpack.i.bf16 %v5410_v11, %v5408_v10  ;;  %v272_v10 = vld [vmem:[%s7347_s3 + $0x30] sm:$0x1] }
  0x1f   : > { %4681 = vmatprep.subr.bf16.mxu0 %v7349_v0  ;;  %4690 = vmatpush3.bf16.msra.mxu1 %v4689_v55 }
  0x20   : > { %4691 = vmatprep.subr.bf16.mxu1 %v7349_v0 }
  0x23   : > { %4693 = vmatpush3.bf16.msra.mxu1 %v4692_v62 }
  0x24   : > { %4160 = vmatprep.subr.mxu1 %v7351_v1 }
  0x26   : > { %4684 = vmatpush3.bf16.xpose.msk.msra.mxu0 %vm5388_vm2, %v4682_v12  ;;  %v5552_v12 = vpack.i.bf16 %v5401_v8, %v5399_v7 }
  0x27   : > { %4125 = vmatprep.subr.mxu0 %v7351_v1  ;;  %4161 = vmatpush3.msk.msra.mxu1 %vm502_vm4, %v5537_v5 }
  0x28   : > { %4694 = vmatprep.subr.bf16.mxu1 %v7349_v0 }
  0x2e   : > { %4126 = vmatpush3.xpose.msk.msra.mxu0 %vm273_vm1, %v5421_v14 }
  0x2f   : > { %4706 = vmatprep.subr.bf16.mxu0 %v7349_v0 }
  0x31   : > { %4128 = vmatmul.mubr.msk.f32.vlgmr.msra.gmra.mrb[0].mxu0 %vm273_vm1, %v5423_v15 }
  0x32   : > { %4130 = vmatprep.mubr.msk.f32.mxu0 %vm5325_vm0, %v7351_v1 }
  0x35   : > { %4131 = vmatmul.mubr.msk.f32.gmra.mrb[2].mxu0 %vm273_vm1, %v5430_v17 }
  0x36   : > { %4133 = vmatprep.mubr.msk.f32.mxu0 %vm5325_vm0, %v7351_v1 }
  0x39   : > { %4134 = vmatmul.mubr.msk.f32.gmra.mrb[4].mxu0 %vm273_vm1, %v5436_v19 }
  0x3a   : > { %4136 = vmatprep.mubr.msk.f32.mxu0 %vm5325_vm0, %v7351_v1 }
  0x3d   : > { %4137 = vmatmul.mubr.msk.f32.gmra.mrb[6].mxu0 %vm273_vm1, %v5442_v21 }
  0x3e   : > { %4139 = vmatprep.mubr.msk.f32.mxu0 %vm5325_vm0, %v7351_v1 }
  0x41   : > { %4140 = vmatmul.mubr.msk.f32.gmra.mrb[8].mxu0 %vm273_vm1, %v5448_v23 }
  0x42   : > { %4142 = vmatprep.mubr.msk.f32.mxu0 %vm5325_vm0, %v7351_v1 }
  0x45   : > { %4143 = vmatmul.mubr.msk.f32.gmra.mrb[10].mxu0 %vm273_vm1, %v5454_v25 }
  0x46   : > { %4145 = vmatprep.mubr.msk.f32.mxu0 %vm5325_vm0, %v7351_v1 }
  0x49   : > { %4146 = vmatmul.mubr.msk.f32.gmra.mrb[12].mxu0 %vm273_vm1, %v5460_v27 }
  0x4a   : > { %4232 = vmatprep.mubr.msk.f32.mxu0 %vm5325_vm0, %v7351_v1 }
  0x88   : > { %v4877_v24 = vpop.permute.xlu1 %4876 }
 0x104   : > { %v382_v29 = vpop.f32.mrb[0].mxu0 }
 0x105   : > { %v5471_v30 = vadd.f32 %v382_v29, %v266_v28  ;;  %v4129_v31 = vpop.f32.mrb[1].mxu0 }
 0x107   : > { %v417_v33 = vsel %vm416_vm3, %v5471_v30, -inf }
 0x108   : > { %418 = vmax.xlane.f32.xlu0 %v417_v33  ;;  %v387_v34 = vpop.f32.mrb[2].mxu0  ;;  %v4878_v33 = vunpack.i.l.bf16 %v4877_v24 }
 0x109   : > { %v5478_v35 = vadd.f32 %v387_v34, %v267_v32  ;;  %v4132_v36 = vpop.f32.mrb[3].mxu0  ;;  %v4879_v32 = vunpack.i.h.bf16 %v4877_v24  ;;  %v5782_v24 = vpack.i.bf16 %v5502_v45, %v5499_v44 }
 0x10b   : > { %v420_v38 = vsel %vm416_vm3, %v5478_v35, -inf }
 0x10c   : > { %421 = vmax.xlane.f32.xlu0 %v420_v38  ;;  %v392_v39 = vpop.f32.mrb[4].mxu0  ;;  %v4695_v38 = vpack.c.bf16 %v4879_v32, %v4878_v33 }
 0x10d   : > { %v5485_v40 = vadd.f32 %v392_v39, %v268_v37  ;;  %v4135_v41 = vpop.f32.mrb[5].mxu0 }
 0x10f   : > { %v423_v43 = vsel %vm416_vm3, %v5485_v40, -inf }
 0x110   : > { %424 = vmax.xlane.f32.xlu1 %v423_v43  ;;  %v397_v46 = vpop.f32.mrb[6].mxu0 }
 0x111   : > { %v5506_v48 = vadd.f32 %v397_v46, %v269_v42  ;;  %v4138_v49 = vpop.f32.mrb[7].mxu0 }
 0x113   : > { %v426_v51 = vsel %vm416_vm3, %v5506_v48, -inf }
 0x114   : > { %427 = vmax.xlane.f32.xlu1 %v426_v51  ;;  %v402_v54 = vpop.f32.mrb[8].mxu0 }
 0x115   : > { %v5522_v56 = vadd.f32 %v402_v54, %v270_v50  ;;  %v4141_v57 = vpop.f32.mrb[9].mxu0 }
 0x117   : > { %v429_v58 = vsel %vm416_vm3, %v5522_v56, -inf }
 0x118   : > { %430 = vmax.xlane.f32.xlu0 %v429_v58  ;;  %v407_v61 = vpop.f32.mrb[10].mxu0 }
 0x119   : > { %v4144_v63 = vpop.f32.mrb[11].mxu0  ;;  %v5562_v11 = vadd.f32 %v407_v61, %v271_v13 }
 0x11b   : > { %v432_v7 = vsel %vm416_vm3, %v5562_v11, -inf }
 0x11c   : > { %v412_v2 = vpop.f32.mrb[12].mxu0 }
 0x11d   : > { %v4147_v3 = vpop.f32.mrb[13].mxu0  ;;  %v5564_v16 = vadd.f32 %v412_v2, %v272_v10 }
 0x11f   : > { %v436_v8 = vsel %vm435_vm5, %v5564_v16, -inf }
 0x125   : > { %4886 = vrot.lane.b32.xlu1 %v5544_v9, %s5327_s21 }
 0x129   : > { %654 = vrot.lane.b32.xlu1 %v5421_v14, %s5327_s21 }
 0x12e   : > { %4881 = vrot.lane.b32.xlu0 %v5552_v12, %s5327_s21 }
 0x14d   : > { %433 = vmax.xlane.f32.xlu1 %v432_v7  ;;  %437 = vmax.xlane.f32.xlu0 %v436_v8 }
 0x15e   : > { %4891 = vrot.lane.b32.xlu1 %v5392_v6, %s5328_s18 }
 0x162   : > { %630 = vrot.lane.b32.xlu1 %v5430_v17, %s5327_s21 }
 0x163   : > { %628 = vrot.lane.b32.xlu0 %v5423_v15, %s5327_s21 }
 0x166   : > { %632 = vrot.lane.b32.xlu1 %v5436_v19, %s5327_s21 }
 0x167   : > { %4896 = vrot.lane.b32.xlu0 %v5552_v12, %s5328_s18 }
 0x16a   : > { %4901 = vrot.lane.b32.xlu1 %v5544_v9, %s5328_s18 }
 0x16b   : > { %634 = vrot.lane.b32.xlu0 %v5442_v21, %s5327_s21 }
 0x16e   : > { %638 = vrot.lane.b32.xlu1 %v5454_v25, %s5327_s21 }
 0x16f   : > { %636 = vrot.lane.b32.xlu0 %v5448_v23, %s5327_s21 }
 0x172   : > { %1044 = vrot.lane.b32.xlu1 %v5421_v14, %s5328_s18 }
 0x173   : > { %640 = vrot.lane.b32.xlu0 %v5460_v27, %s5327_s21 }
 0x176   : > { %1018 = vrot.lane.b32.xlu1 %v5423_v15, %s5328_s18 }
 0x177   : > { %4906 = vrot.lane.b32.xlu0 %v5392_v6, %s5329_s19 }
 0x17a   : > { %4911 = vrot.lane.b32.xlu1 %v5552_v12, %s5329_s19 }
 0x17b   : > { %1020 = vrot.lane.b32.xlu0 %v5430_v17, %s5328_s18 }
 0x17e   : > { %1024 = vrot.lane.b32.xlu1 %v5442_v21, %s5328_s18 }
 0x17f   : > { %1022 = vrot.lane.b32.xlu0 %v5436_v19, %s5328_s18 }
 0x182   : > { %1026 = vrot.lane.b32.xlu1 %v5448_v23, %s5328_s18 }
 0x183   : > { %4916 = vrot.lane.b32.xlu0 %v5544_v9, %s5329_s19 }
 0x186   : > { %1030 = vrot.lane.b32.xlu1 %v5460_v27, %s5328_s18 }
 0x187   : > { %1028 = vrot.lane.b32.xlu0 %v5454_v25, %s5328_s18 }
 0x18a   : > { %4921 = vrot.lane.b32.xlu1 %v5392_v6, %s5330_s20 }
 0x18b   : > { %1428 = vrot.lane.b32.xlu0 %v5421_v14, %s5329_s19 }
 0x18e   : > { %1404 = vrot.lane.b32.xlu1 %v5430_v17, %s5329_s19 }
 0x18f   : > { %1402 = vrot.lane.b32.xlu0 %v5423_v15, %s5329_s19 }
 0x192   : > { %1406 = vrot.lane.b32.xlu1 %v5436_v19, %s5329_s19 }
 0x193   : > { %4926 = vrot.lane.b32.xlu0 %v5552_v12, %s5330_s20 }
 0x195   : > { %v419_v18 = vpop.xlane.xlu0 %418 }
 0x196   : > { %v439_v20 = vsub.f32 %v5471_v30, %v419_v18  ;;  %4931 = vrot.lane.b32.xlu1 %v5544_v9, %s5330_s20 }
 0x197   : > { %1408 = vrot.lane.b32.xlu0 %v5442_v21, %s5329_s19 }
 0x198   : > { %v446_v22 = vmul.f32 1.442695, %v439_v20 }
 0x199   : > { %v422_v26 = vpop.xlane.xlu0 %421 }
 0x19a   : > { %5085 = vpow2.f32 %v446_v22  ;;  %v440_v28 = vsub.f32 %v5478_v35, %v422_v26  ;;  %1412 = vrot.lane.b32.xlu1 %v5454_v25, %s5329_s19  ;;  %v5793_v26 = vpack.i.bf16 %v5531_v60, %v5528_v59 }
 0x19b   : > { %1410 = vrot.lane.b32.xlu0 %v5448_v23, %s5329_s19 }
 0x19c   : > { %v448_v29 = vmul.f32 1.442695, %v440_v28 }
 0x19d   : > { %v425_v30 = vpop.xlane.xlu1 %424 }
 0x19e   : > { %5087 = vpow2.f32 %v448_v29  ;;  %v441_v31 = vsub.f32 %v5485_v40, %v425_v30  ;;  %1812 = vrot.lane.b32.xlu1 %v5421_v14, %s5330_s20 }
 0x19f   : > { %1414 = vrot.lane.b32.xlu0 %v5460_v27, %s5329_s19 }
 0x1a0   : > { %v450_v34 = vmul.f32 1.442695, %v441_v31 }
 0x1a1   : > { %v428_v35 = vpop.xlane.xlu1 %427 }
 0x1a2   : > { %5089 = vpow2.f32 %v450_v34  ;;  %v442_v36 = vsub.f32 %v5506_v48, %v428_v35  ;;  %1786 = vrot.lane.b32.xlu1 %v5423_v15, %s5330_s20 }
 0x1a3   : > { %4936 = vrot.lane.b32.xlu0 %v5392_v6, %s5331_s22 }
 0x1a4   : > { %v5644_v37 = vpop.eup %5085  ;;  %v452_v39 = vmul.f32 1.442695, %v442_v36 }
 0x1a5   : > { %4163 = vmatmul.mubr.msk.f32.vlgmr.msra.gmra.mrb[0].mxu1 %vm416_vm3, %v5644_v37  ;;  %v431_v40 = vpop.xlane.xlu0 %430  ;;  %v4887_v51 = vpop.permute.xlu1 %4886 }
 0x1a6   : > { %5091 = vpow2.f32 %v452_v39  ;;  %4697 = vmatpush3.bf16.xpose.msk.msra.mxu1 %vm5388_vm2, %v4695_v38  ;;  %v443_v41 = vsub.f32 %v5522_v56, %v431_v40  ;;  %4941 = vrot.lane.b32.xlu1 %v5552_v12, %s5331_s22  ;;  %v4889_v55 = vunpack.i.h.bf16 %v4887_v51  ;;  %v4888_v56 = vunpack.i.l.bf16 %v4887_v51 }
 0x1a7   : > { %1788 = vrot.lane.b32.xlu0 %v5430_v17, %s5330_s20  ;;  %4165 = vmatprep.mubr.msk.f32.mxu1 %vm5325_vm0, %v7351_v1 }
 0x1a8   : > { %v5657_v42 = vpop.eup %5087  ;;  %v454_v43 = vmul.f32 1.442695, %v443_v41  ;;  %4698 = vmatprep.subr.bf16.mxu1 %v7349_v0  ;;  %v4703_v58 = vpack.c.bf16 %v4889_v55, %v4888_v56 }
 0x1a9   : > { %4166 = vmatmul.mubr.msk.f32.gmra.mrb[2].mxu1 %vm416_vm3, %v5657_v42  ;;  %v4882_v46 = vpop.permute.xlu0 %4881  ;;  %v655_v61 = vpop.permute.xlu1 %654 }
 0x1aa   : > { %5093 = vpow2.f32 %v454_v43  ;;  %v4884_v47 = vunpack.i.h.bf16 %v4882_v46  ;;  %v4883_v48 = vunpack.i.l.bf16 %v4882_v46  ;;  %1792 = vrot.lane.b32.xlu1 %v5442_v21, %s5330_s20  ;;  %4168 = vmatprep.mubr.msk.f32.mxu1 %vm5325_vm0, %v7351_v1 }
 0x1ab   : > { %1790 = vrot.lane.b32.xlu0 %v5436_v19, %s5330_s20 }
 0x1ac   : > { %v5668_v49 = vpop.eup %5089  ;;  %v4699_v50 = vpack.c.bf16 %v4884_v47, %v4883_v48 }
 0x1ad   : > { %4169 = vmatmul.mubr.msk.f32.gmra.mrb[4].mxu1 %vm416_vm3, %v5668_v49 }
 0x1ae   : > { %4701 = vmatpush3.bf16.xpose.msk.msra.mxu1 %vm5388_vm2, %v4699_v50  ;;  %1794 = vrot.lane.b32.xlu1 %v5448_v23, %s5330_s20 }
 0x1af   : > { %4946 = vrot.lane.b32.xlu0 %v5544_v9, %s5331_s22  ;;  %4171 = vmatprep.mubr.msk.f32.mxu1 %vm5325_vm0, %v7351_v1 }
 0x1b0   : > { %v5680_v54 = vpop.eup %5091  ;;  %4702 = vmatprep.subr.bf16.mxu1 %v7349_v0 }
 0x1b1   : > { %4172 = vmatmul.mubr.msk.f32.gmra.mrb[6].mxu1 %vm416_vm3, %v5680_v54 }
 0x1b2   : > { %1798 = vrot.lane.b32.xlu1 %v5460_v27, %s5330_s20  ;;  %4174 = vmatprep.mubr.msk.f32.mxu1 %vm5325_vm0, %v7351_v1 }
 0x1b3   : > { %1796 = vrot.lane.b32.xlu0 %v5454_v25, %s5330_s20 }
 0x1b4   : > { %v5691_v57 = vpop.eup %5093 }
 0x1b5   : > { %4175 = vmatmul.mubr.msk.f32.gmra.mrb[8].mxu1 %vm416_vm3, %v5691_v57 }
 0x1b6   : > { %4705 = vmatpush3.bf16.xpose.msk.msra.mxu1 %vm5388_vm2, %v4703_v58  ;;  %4951 = vrot.lane.b32.xlu1 %v5392_v6, %s5332_s23 }
 0x1b7   : > { %2196 = vrot.lane.b32.xlu0 %v5421_v14, %s5331_s22  ;;  %4195 = vmatprep.subr.mxu1 %v7351_v1 }
 0x1b8   : > { %4177 = vmatprep.mubr.msk.f32.mxu1 %vm5325_vm0, %v7351_v1 }
 0x1ba   : > { %2172 = vrot.lane.b32.xlu1 %v5430_v17, %s5331_s22 }
 0x1bb   : > { %2170 = vrot.lane.b32.xlu0 %v5423_v15, %s5331_s22 }
 0x1be   : > { %4196 = vmatpush3.xpose.msk.msra.mxu1 %vm273_vm1, %v655_v61  ;;  %2174 = vrot.lane.b32.xlu1 %v5436_v19, %s5331_s22 }
 0x1bf   : > { %4956 = vrot.lane.b32.xlu0 %v5552_v12, %s5332_s23  ;;  %4715 = vmatprep.subr.bf16.mxu1 %v7349_v0 }
 0x1c2   : > { %4961 = vrot.lane.b32.xlu1 %v5544_v9, %s5332_s23 }
 0x1c3   : > { %2176 = vrot.lane.b32.xlu0 %v5442_v21, %s5331_s22 }
 0x1c6   : > { %2180 = vrot.lane.b32.xlu1 %v5454_v25, %s5331_s22 }
 0x1c7   : > { %2178 = vrot.lane.b32.xlu0 %v5448_v23, %s5331_s22 }
 0x1ca   : > { %2580 = vrot.lane.b32.xlu1 %v5421_v14, %s5332_s23 }
 0x1cb   : > { %2182 = vrot.lane.b32.xlu0 %v5460_v27, %s5331_s22 }
 0x1ce   : > { %2554 = vrot.lane.b32.xlu1 %v5423_v15, %s5332_s23 }
 0x1cf   : > { %4966 = vrot.lane.b32.xlu0 %v5392_v6, %s5333_s24 }
 0x1d2   : > { %4971 = vrot.lane.b32.xlu1 %v5552_v12, %s5333_s24 }
 0x1d3   : > { %2556 = vrot.lane.b32.xlu0 %v5430_v17, %s5332_s23 }
 0x1d6   : > { %2560 = vrot.lane.b32.xlu1 %v5442_v21, %s5332_s23 }
 0x1d7   : > { %2558 = vrot.lane.b32.xlu0 %v5436_v19, %s5332_s23 }
 0x1da   : > { %2562 = vrot.lane.b32.xlu1 %v5448_v23, %s5332_s23  ;;  %v434_v62 = vpop.xlane.xlu1 %433  ;;  %v438_v63 = vpop.xlane.xlu0 %437 }
 0x1db   : > { %v444_v2 = vsub.f32 %v5562_v11, %v434_v62  ;;  %v445_v6 = vsub.f32 %v5564_v16, %v438_v63  ;;  %4976 = vrot.lane.b32.xlu0 %v5544_v9, %s5333_s24 }
 0x1dd   : > { %v456_v3 = vmul.f32 1.442695, %v444_v2  ;;  %v458_v10 = vmul.f32 1.442695, %v445_v6 }
 0x1de   : > { %2566 = vrot.lane.b32.xlu1 %v5460_v27, %s5332_s23  ;;  %v4892_v12 = vpop.permute.xlu1 %4891  ;;  %v629_v13 = vpop.permute.xlu0 %628 }
 0x1df   : > { %5095 = vpow2.f32 %v456_v3  ;;  %2564 = vrot.lane.b32.xlu0 %v5454_v25, %s5332_s23 }
 0x1e0   : > { %5097 = vpow2.f32 %v458_v10 }
 0x1e2   : > { %2938 = vrot.lane.b32.xlu1 %v5423_v15, %s5333_s24  ;;  %v631_v11 = vpop.permute.xlu1 %630  ;;  %v4897_v7 = vpop.permute.xlu0 %4896 }
 0x1e3   : > { %2964 = vrot.lane.b32.xlu0 %v5421_v14, %s5333_s24  ;;  %v4894_v14 = vunpack.i.h.bf16 %v4892_v12 }
 0x1e6   : > { %2942 = vrot.lane.b32.xlu1 %v5436_v19, %s5333_s24  ;;  %v633_v9 = vpop.permute.xlu1 %632  ;;  %v635_v16 = vpop.permute.xlu0 %634  ;;  %v4893_v19 = vunpack.i.l.bf16 %v4892_v12 }
 0x1e7   : > { %2940 = vrot.lane.b32.xlu0 %v5430_v17, %s5333_s24  ;;  %v5774_v17 = vpack.i.bf16 %v5518_v53, %v5515_v52  ;;  %v4898_v53 = vunpack.i.l.bf16 %v4897_v7 }
 0x1e9   : > { %v5756_v8 = vpop.eup %5095 }
 0x1ea   : > { %2946 = vrot.lane.b32.xlu1 %v5448_v23, %s5333_s24  ;;  %4178 = vmatmul.mubr.msk.f32.gmra.mrb[10].mxu1 %vm416_vm3, %v5756_v8  ;;  %v4902_v15 = vpop.permute.xlu1 %4901  ;;  %v637_v18 = vpop.permute.xlu0 %636 }
 0x1eb   : > { %2944 = vrot.lane.b32.xlu0 %v5442_v21, %s5333_s24  ;;  %4180 = vmatprep.mubr.msk.f32.mxu1 %vm5325_vm0, %v7351_v1  ;;  %v5766_v20 = vpop.eup %5097  ;;  %v4716_v21 = vpack.c.bf16 %v4894_v14, %v4893_v19  ;;  %v4904_v29 = vunpack.i.h.bf16 %v4902_v15  ;;  %v4903_v30 = vunpack.i.l.bf16 %v4902_v15 }
 0x1ec   : > { %7369 = vst [vmem:[#allocation2_spill] sm:$0xff] %v5766_v20 }
 0x1ed   : > { %v4724_v33 = vpack.c.bf16 %v4904_v29, %v4903_v30  ;;  %v460_v30 = vsel %vm416_vm3, %v5644_v37, 0.0 }
 0x1ee   : > { %2950 = vrot.lane.b32.xlu1 %v5460_v27, %s5333_s24  ;;  %4181 = vmatmul.mubr.msk.f32.gmra.mrb[12].mxu1 %vm416_vm3, %v5766_v20  ;;  %v639_v23 = vpop.permute.xlu1 %638  ;;  %v641_v22 = vpop.permute.xlu0 %640 }
 0x1ef   : > { %2948 = vrot.lane.b32.xlu0 %v5454_v25, %s5333_s24  ;;  %4197 = vmatprep.mubr.msk.f32.mxu1 %vm5325_vm0, %v7351_v1  ;;  %v4899_v25 = vunpack.i.h.bf16 %v4897_v7 }
 0x1f1   : > { %v4720_v28 = vpack.c.bf16 %v4899_v25, %v4898_v53 }
 0x1f2   : > { %4986 = vrot.lane.b32.xlu1 %v5774_v17, %s5327_s21  ;;  %4198 = vmatmul.mubr.msk.f32.vlgmr.msra.gmra.mrb[14].mxu1 %vm273_vm1, %v629_v13  ;;  %v1045_v27 = vpop.permute.xlu1 %1044  ;;  %v4907_v52 = vpop.permute.xlu0 %4906 }
 0x1f3   : > { %4718 = vmatpush3.bf16.xpose.msk.msra.mxu1 %vm5388_vm2, %v4716_v21  ;;  %4981 = vrot.lane.b32.xlu0 %v5782_v24, %s5327_s21  ;;  %v4909_v39 = vunpack.i.h.bf16 %v4907_v52  ;;  %v4908_v40 = vunpack.i.l.bf16 %v4907_v52 }
 0x1f4   : > { %4200 = vmatprep.mubr.msk.f32.mxu1 %vm5325_vm0, %v7351_v1  ;;  %4719 = vmatprep.subr.bf16.mxu1 %v7349_v0 }
 0x1f5   : > { %v4737_v46 = vpack.c.bf16 %v4909_v39, %v4908_v40 }
 0x1f6   : > { %4996 = vrot.lane.b32.xlu1 %v5782_v24, %s5328_s18  ;;  %4201 = vmatmul.mubr.msk.f32.gmra.mrb[16].mxu1 %vm273_vm1, %v631_v11  ;;  %v1019_v44 = vpop.permute.xlu1 %1018  ;;  %v1021_v45 = vpop.permute.xlu0 %1020 }
 0x1f7   : > { %4991 = vrot.lane.b32.xlu0 %v5793_v26, %s5327_s21  ;;  %4203 = vmatprep.mubr.msk.f32.mxu1 %vm5325_vm0, %v7351_v1 }
 0x1fa   : > { %5001 = vrot.lane.b32.xlu1 %v5774_v17, %s5328_s18  ;;  %4204 = vmatmul.mubr.msk.f32.gmra.mrb[18].mxu1 %vm273_vm1, %v633_v9  ;;  %v4912_v59 = vpop.permute.xlu1 %4911  ;;  %v1023_v60 = vpop.permute.xlu0 %1022 }
 0x1fb   : > { %4722 = vmatpush3.bf16.xpose.msk.msra.mxu1 %vm5388_vm2, %v4720_v28  ;;  %865 = vrot.lane.b32.xlu0 %v5537_v5, %s5327_s21  ;;  %v4914_v50 = vunpack.i.h.bf16 %v4912_v59  ;;  %v4913_v51 = vunpack.i.l.bf16 %v4912_v59  ;;  %v463_v28 = vsel %vm416_vm3, %v5657_v42, 0.0 }
 0x1fc   : > { %4206 = vmatprep.mubr.msk.f32.mxu1 %vm5325_vm0, %v7351_v1  ;;  %4723 = vmatprep.subr.bf16.mxu1 %v7349_v0 }
 0x1fd   : > { %v4741_v58 = vpack.c.bf16 %v4914_v50, %v4913_v51 }
 0x1fe   : > { %5011 = vrot.lane.b32.xlu1 %v5782_v24, %s5329_s19  ;;  %4207 = vmatmul.mubr.msk.f32.gmra.mrb[20].mxu1 %vm273_vm1, %v635_v16  ;;  %v1025_v31 = vpop.permute.xlu1 %1024  ;;  %v4917_v32 = vpop.permute.xlu0 %4916 }
 0x1ff   : > { %5006 = vrot.lane.b32.xlu0 %v5793_v26, %s5328_s18  ;;  %4209 = vmatprep.mubr.msk.f32.mxu1 %vm5325_vm0, %v7351_v1  ;;  %v4918_v63 = vunpack.i.l.bf16 %v4917_v32 }
 0x202   : > { %5021 = vrot.lane.b32.xlu1 %v5793_v26, %s5329_s19  ;;  %4210 = vmatmul.mubr.msk.f32.gmra.mrb[22].mxu1 %vm273_vm1, %v637_v18  ;;  %v1027_v34 = vpop.permute.xlu1 %1026  ;;  %v1029_v35 = vpop.permute.xlu0 %1028 }
 0x203   : > { %4726 = vmatpush3.bf16.xpose.msk.msra.mxu1 %vm5388_vm2, %v4724_v33  ;;  %1249 = vrot.lane.b32.xlu0 %v5537_v5, %s5328_s18  ;;  %s7286_s18 = scalar_lea.vmem %s7348_s4, %s5380_s17 }
 0x204   : > { %4212 = vmatprep.mubr.msk.f32.mxu1 %vm5325_vm0, %v7351_v1  ;;  %4265 = vmatprep.subr.mxu1 %v7351_v1 }
 0x206   : > { %5026 = vrot.lane.b32.xlu1 %v5782_v24, %s5330_s20  ;;  %4213 = vmatmul.mubr.msk.f32.gmra.mrb[24].mxu1 %vm273_vm1, %v639_v23  ;;  %v1031_v36 = vpop.permute.xlu1 %1030  ;;  %v1429_v38 = vpop.permute.xlu0 %1428 }
 0x207   : > { %5016 = vrot.lane.b32.xlu0 %v5774_v17, %s5329_s19  ;;  %4215 = vmatprep.mubr.msk.f32.mxu1 %vm5325_vm0, %v7351_v1 }
 0x20a   : > { %2017 = vrot.lane.b32.xlu1 %v5537_v5, %s5330_s20  ;;  %4216 = vmatmul.mubr.msk.f32.gmra.mrb[26].mxu1 %vm273_vm1, %v641_v22  ;;  %v4922_v41 = vpop.permute.xlu1 %4921  ;;  %v1403_v43 = vpop.permute.xlu0 %1402 }
 0x20b   : > { %4266 = vmatpush3.xpose.msk.msra.mxu1 %vm273_vm1, %v1045_v27  ;;  %1633 = vrot.lane.b32.xlu0 %v5537_v5, %s5329_s19  ;;  %v4924_v7 = vunpack.i.h.bf16 %v4922_v41  ;;  %v4923_v9 = vunpack.i.l.bf16 %v4922_v41 }
 0x20c   : > { %4267 = vmatprep.mubr.msk.f32.mxu1 %vm5325_vm0, %v7351_v1  ;;  %4736 = vmatprep.subr.bf16.mxu1 %v7349_v0 }
 0x20d   : > { %v4758_v18 = vpack.c.bf16 %v4924_v7, %v4923_v9 }
 0x20e   : > { %5046 = vrot.lane.b32.xlu1 %v5774_v17, %s5331_s22  ;;  %4268 = vmatmul.mubr.msk.f32.vlgmr.msra.gmra.mrb[28].mxu1 %vm273_vm1, %v1019_v44  ;;  %v1405_v47 = vpop.permute.xlu1 %1404  ;;  %v4927_v48 = vpop.permute.xlu0 %4926 }
 0x20f   : > { %4739 = vmatpush3.bf16.xpose.msk.msra.mxu1 %vm5388_vm2, %v4737_v46  ;;  %5031 = vrot.lane.b32.xlu0 %v5774_v17, %s5330_s20  ;;  %v4929_v23 = vunpack.i.h.bf16 %v4927_v48  ;;  %v4928_v22 = vunpack.i.l.bf16 %v4927_v48 }
 0x210   : > { %4270 = vmatprep.mubr.msk.f32.mxu1 %vm5325_vm0, %v7351_v1  ;;  %4740 = vmatprep.subr.bf16.mxu1 %v7349_v0 }
 0x211   : > { %v4762_v52 = vpack.c.bf16 %v4929_v23, %v4928_v22 }
 0x212   : > { %2401 = vrot.lane.b32.xlu1 %v5537_v5, %s5331_s22  ;;  %4271 = vmatmul.mubr.msk.f32.gmra.mrb[30].mxu1 %vm273_vm1, %v1021_v45  ;;  %v1407_v55 = vpop.permute.xlu1 %1406  ;;  %v1409_v56 = vpop.permute.xlu0 %1408  ;;  %v4919_v5 = vunpack.i.h.bf16 %v4917_v32  ;;  %v466_v32 = vsel %vm416_vm3, %v5668_v49, 0.0 }
 0x213   : > { %5036 = vrot.lane.b32.xlu0 %v5793_v26, %s5330_s20  ;;  %4273 = vmatprep.mubr.msk.f32.mxu1 %vm5325_vm0, %v7351_v1 }
 0x214   : > { %v4745_v3 = vpack.c.bf16 %v4919_v5, %v4918_v63 }
 0x216   : > { %4274 = vmatmul.mubr.msk.f32.gmra.mrb[32].mxu1 %vm273_vm1, %v1023_v60  ;;  %v4932_v61 = vpop.permute.xlu1 %4931  ;;  %v1411_v62 = vpop.permute.xlu0 %1410 }
 0x217   : > { %4743 = vmatpush3.bf16.xpose.msk.msra.mxu1 %vm5388_vm2, %v4741_v58  ;;  %5041 = vrot.lane.b32.xlu0 %v5782_v24, %s5331_s22  ;;  %v4934_v44 = vunpack.i.h.bf16 %v4932_v61  ;;  %v4933_v45 = vunpack.i.l.bf16 %v4932_v61 }
 0x218   : > { %4276 = vmatprep.mubr.msk.f32.mxu1 %vm5325_vm0, %v7351_v1  ;;  %4744 = vmatprep.subr.bf16.mxu1 %v7349_v0 }
 0x219   : > { %v4766_v29 = vpack.c.bf16 %v4934_v44, %v4933_v45 }
 0x21a   : > { %4277 = vmatmul.mubr.msk.f32.gmra.mrb[34].mxu1 %vm273_vm1, %v1025_v31  ;;  %v1413_v2 = vpop.permute.xlu1 %1412  ;;  %v5874_v6 = vpop.permute.xlu0 %1414 }
 0x21b   : > { %5051 = vrot.lane.b32.xlu0 %v5793_v26, %s5331_s22  ;;  %4279 = vmatprep.mubr.msk.f32.mxu1 %vm5325_vm0, %v7351_v1 }
 0x21e   : > { %4280 = vmatmul.mubr.msk.f32.gmra.mrb[36].mxu1 %vm273_vm1, %v1027_v34  ;;  %v5881_v12 = vpop.permute.xlu1 %1812  ;;  %v5883_v13 = vpop.permute.xlu0 %4936 }
 0x21f   : > { %4747 = vmatpush3.bf16.xpose.msk.msra.mxu1 %vm5388_vm2, %v4745_v3  ;;  %4282 = vmatprep.mubr.msk.f32.mxu1 %vm5325_vm0, %v7351_v1  ;;  %v4939_v34 = vunpack.i.h.bf16 %v5883_v13 }
 0x220   : > { %4335 = vmatprep.subr.mxu1 %v7351_v1 }
 0x222   : > { %4283 = vmatmul.mubr.msk.f32.gmra.mrb[38].mxu1 %vm273_vm1, %v1029_v35  ;;  %v5891_v10 = vpop.permute.xlu1 %1786  ;;  %v5893_v11 = vpop.permute.xlu0 %1788  ;;  %v4938_v35 = vunpack.i.l.bf16 %v5883_v13 }
 0x223   : > { %4285 = vmatprep.mubr.msk.f32.mxu1 %vm5325_vm0, %v7351_v1 }
 0x224   : > { %v4779_v39 = vpack.c.bf16 %v4939_v34, %v4938_v35 }
 0x226   : > { %4286 = vmatmul.mubr.msk.f32.gmra.mrb[40].mxu1 %vm273_vm1, %v1031_v36  ;;  %v5898_v16 = vpop.permute.xlu1 %4941  ;;  %v5900_v15 = vpop.permute.xlu0 %1790  ;;  %v469_v36 = vsel %vm416_vm3, %v5680_v54, 0.0  ;;  %v472_v54 = vsel %vm416_vm3, %v5691_v57, 0.0  ;;  %v475_v57 = vsel %vm416_vm3, %v5756_v8, 0.0 }
 0x227   : > { %4336 = vmatpush3.xpose.msk.msra.mxu1 %vm273_vm1, %v1429_v38  ;;  %4337 = vmatprep.mubr.msk.f32.mxu1 %vm5325_vm0, %v7351_v1  ;;  %v4943_v46 = vunpack.i.l.bf16 %v5898_v16 }
 0x228   : > { %4757 = vmatprep.subr.bf16.mxu1 %v7349_v0 }
 0x22a   : > { %4338 = vmatmul.mubr.msk.f32.vlgmr.msra.gmra.mrb[42].mxu1 %vm273_vm1, %v1403_v43  ;;  %v5907_v14 = vpop.permute.xlu1 %1792  ;;  %v5909_v19 = vpop.permute.xlu0 %4946  ;;  %v4944_v43 = vunpack.i.h.bf16 %v5898_v16 }
 0x22b   : > { %4760 = vmatpush3.bf16.xpose.msk.msra.mxu1 %vm5388_vm2, %v4758_v18  ;;  %4340 = vmatprep.mubr.msk.f32.mxu1 %vm5325_vm0, %v7351_v1  ;;  %v4949_v51 = vunpack.i.h.bf16 %v5909_v19 }
 0x22c   : > { %4761 = vmatprep.subr.bf16.mxu1 %v7349_v0  ;;  %v4783_v50 = vpack.c.bf16 %v4944_v43, %v4943_v46 }
 0x22e   : > { %4341 = vmatmul.mubr.msk.f32.gmra.mrb[44].mxu1 %vm273_vm1, %v1405_v47  ;;  %v5917_v21 = vpop.permute.xlu1 %1794  ;;  %v5919_v27 = vpop.permute.xlu0 %1796 }
 0x22f   : > { %4343 = vmatprep.mubr.msk.f32.mxu1 %vm5325_vm0, %v7351_v1 }
 0x232   : > { %4344 = vmatmul.mubr.msk.f32.gmra.mrb[46].mxu1 %vm273_vm1, %v1407_v55  ;;  %v5924_v25 = vpop.permute.xlu1 %1798  ;;  %v5926_v53 = vpop.permute.xlu0 %2196  ;;  %v4948_v55 = vunpack.i.l.bf16 %v5909_v19 }
 0x233   : > { %4764 = vmatpush3.bf16.xpose.msk.msra.mxu1 %vm5388_vm2, %v4762_v52  ;;  %4346 = vmatprep.mubr.msk.f32.mxu1 %vm5325_vm0, %v7351_v1 }
 0x234   : > { %4765 = vmatprep.subr.bf16.mxu1 %v7349_v0  ;;  %v4787_v58 = vpack.c.bf16 %v4949_v51, %v4948_v55 }
 0x236   : > { %464 = vadd.xlane.f32.xlu1 %v463_v28  ;;  %4347 = vmatmul.mubr.msk.f32.gmra.mrb[48].mxu1 %vm273_vm1, %v1409_v56  ;;  %v5936_v59 = vpop.permute.xlu1 %4951  ;;  %v5938_v60 = vpop.permute.xlu0 %2170 }
 0x237   : > { %4349 = vmatprep.mubr.msk.f32.mxu1 %vm5325_vm0, %v7351_v1 }
 0x23a   : > { %461 = vadd.xlane.f32.xlu0 %v460_v30  ;;  %4350 = vmatmul.mubr.msk.f32.gmra.mrb[50].mxu1 %vm273_vm1, %v1411_v62  ;;  %v5945_v31 = vpop.permute.xlu1 %2172  ;;  %v5947_v42 = vpop.permute.xlu0 %4956 }
 0x23b   : > { %4768 = vmatpush3.bf16.xpose.msk.msra.mxu1 %vm5388_vm2, %v4766_v29  ;;  %4352 = vmatprep.mubr.msk.f32.mxu1 %vm5325_vm0, %v7351_v1  ;;  %v4959_v7 = vunpack.i.h.bf16 %v5947_v42  ;;  %v4958_v9 = vunpack.i.l.bf16 %v5947_v42 }
 0x23c   : > { %4405 = vmatprep.subr.mxu1 %v7351_v1 }
 0x23e   : > { %467 = vadd.xlane.f32.xlu0 %v466_v32  ;;  %4353 = vmatmul.mubr.msk.f32.gmra.mrb[52].mxu1 %vm273_vm1, %v1413_v2  ;;  %v5957_v37 = vpop.permute.xlu1 %2174  ;;  %v5959_v33 = vpop.permute.xlu0 %2176  ;;  %v4954_v2 = vunpack.i.h.bf16 %v5936_v59 }
 0x23f   : > { %4355 = vmatprep.mubr.msk.f32.mxu1 %vm5325_vm0, %v7351_v1 }
 0x242   : > { %470 = vadd.xlane.f32.xlu0 %v469_v36  ;;  %4356 = vmatmul.mubr.msk.f32.gmra.mrb[54].mxu1 %vm273_vm1, %v5874_v6  ;;  %v5969_v49 = vpop.permute.xlu1 %4961  ;;  %v5971_v38 = vpop.permute.xlu0 %2178  ;;  %v4953_v6 = vunpack.i.l.bf16 %v5936_v59 }
 0x243   : > { %4406 = vmatpush3.xpose.msk.msra.mxu1 %vm273_vm1, %v5881_v12  ;;  %4407 = vmatprep.mubr.msk.f32.mxu1 %vm5325_vm0, %v7351_v1  ;;  %v4964_v19 = vunpack.i.h.bf16 %v5969_v49  ;;  %v4963_v23 = vunpack.i.l.bf16 %v5969_v49 }
 0x244   : > { %4778 = vmatprep.subr.bf16.mxu1 %v7349_v0  ;;  %v4800_v13 = vpack.c.bf16 %v4954_v2, %v4953_v6 }
 0x246   : > { %473 = vadd.xlane.f32.xlu0 %v472_v54  ;;  %4408 = vmatmul.mubr.msk.f32.vlgmr.msra.gmra.mrb[56].mxu1 %vm273_vm1, %v5891_v10  ;;  %v5982_v40 = vpop.permute.xlu1 %2180  ;;  %v5984_v41 = vpop.permute.xlu0 %2182 }
 0x247   : > { %4781 = vmatpush3.bf16.xpose.msk.msra.mxu1 %vm5388_vm2, %v4779_v39  ;;  %4410 = vmatprep.mubr.msk.f32.mxu1 %vm5325_vm0, %v7351_v1 }
 0x248   : > { %4782 = vmatprep.subr.bf16.mxu1 %v7349_v0  ;;  %5061 = vrot.lane.b32.xlu1 %v5774_v17, %s5332_s23 }
 0x24a   : > { %476 = vadd.xlane.f32.xlu0 %v475_v57  ;;  %4411 = vmatmul.mubr.msk.f32.gmra.mrb[58].mxu1 %vm273_vm1, %v5893_v11  ;;  %v5999_v47 = vpop.permute.xlu1 %2580  ;;  %v6001_v48 = vpop.permute.xlu0 %4966 }
 0x24b   : > { %4413 = vmatprep.mubr.msk.f32.mxu1 %vm5325_vm0, %v7351_v1  ;;  %v4968_v42 = vunpack.i.l.bf16 %v6001_v48 }
 0x24c   : > { %5066 = vrot.lane.b32.xlu1 %v5793_v26, %s5332_s23 }
 0x24e   : > { %4414 = vmatmul.mubr.msk.f32.gmra.mrb[60].mxu1 %vm273_vm1, %v5900_v15  ;;  %v6009_v17 = vpop.permute.xlu1 %2554  ;;  %v6011_v8 = vpop.permute.xlu0 %2556  ;;  %v4804_v15 = vpack.c.bf16 %v4959_v7, %v4958_v9  ;;  %v3687_v7 = vld [vmem:[%s7347_s3 + $0x50] sm:$0xff] }
 0x24f   : > { %4785 = vmatpush3.bf16.xpose.msk.msra.mxu1 %vm5388_vm2, %v4783_v50  ;;  %4416 = vmatprep.mubr.msk.f32.mxu1 %vm5325_vm0, %v7351_v1 }
 0x250   : > { %4786 = vmatprep.subr.bf16.mxu1 %v7349_v0 }
 0x252   : > { %4417 = vmatmul.mubr.msk.f32.gmra.mrb[62].mxu1 %vm273_vm1, %v5907_v14  ;;  %v6022_v26 = vpop.permute.xlu1 %4971  ;;  %v6024_v56 = vpop.permute.xlu0 %2558 }
 0x253   : > { %4419 = vmatprep.mubr.msk.f32.mxu1 %vm5325_vm0, %v7351_v1  ;;  %v4974_v49 = vunpack.i.h.bf16 %v6022_v26 }
 0x256   : > { %4420 = vmatmul.mubr.msk.f32.gmra.mrb[64].mxu1 %vm273_vm1, %v5917_v21  ;;  %v6030_v61 = vpop.permute.xlu1 %2560  ;;  %v6032_v62 = vpop.permute.xlu0 %4976 }
 0x257   : > { %4789 = vmatpush3.bf16.xpose.msk.msra.mxu1 %vm5388_vm2, %v4787_v58  ;;  %4422 = vmatprep.mubr.msk.f32.mxu1 %vm5325_vm0, %v7351_v1  ;;  %v4979_v57 = vunpack.i.h.bf16 %v6032_v62 }
 0x258   : > { %4475 = vmatprep.subr.mxu1 %v7351_v1 }
 0x25a   : > { %4423 = vmatmul.mubr.msk.f32.gmra.mrb[66].mxu1 %vm273_vm1, %v5919_v27  ;;  %v6041_v5 = vpop.permute.xlu1 %2562  ;;  %v6043_v63 = vpop.permute.xlu0 %2564  ;;  %v4808_v27 = vpack.c.bf16 %v4964_v19, %v4963_v23 }
 0x25b   : > { %4425 = vmatprep.mubr.msk.f32.mxu1 %vm5325_vm0, %v7351_v1 }
 0x25e   : > { %4426 = vmatmul.mubr.msk.f32.gmra.mrb[68].mxu1 %vm273_vm1, %v5924_v25  ;;  %v6051_v3 = vpop.permute.xlu1 %2566  ;;  %v6053_v12 = vpop.permute.xlu0 %2964 }
 0x25f   : > { %4476 = vmatpush3.xpose.msk.msra.mxu1 %vm273_vm1, %v5926_v53  ;;  %4477 = vmatprep.mubr.msk.f32.mxu1 %vm5325_vm0, %v7351_v1 }
 0x260   : > { %4799 = vmatprep.subr.bf16.mxu1 %v7349_v0  ;;  %5056 = vrot.lane.b32.xlu0 %v5782_v24, %s5332_s23 }
 0x262   : > { %4478 = vmatmul.mubr.msk.f32.vlgmr.msra.gmra.mrb[70].mxu1 %vm273_vm1, %v5938_v60  ;;  %v6064_v10 = vpop.permute.xlu1 %2938  ;;  %v6066_v11 = vpop.permute.xlu0 %2940 }
 0x263   : > { %4802 = vmatpush3.bf16.xpose.msk.msra.mxu1 %vm5388_vm2, %v4800_v13  ;;  %4480 = vmatprep.mubr.msk.f32.mxu1 %vm5325_vm0, %v7351_v1 }
 0x264   : > { %4803 = vmatprep.subr.bf16.mxu1 %v7349_v0 }
 0x266   : > { %4481 = vmatmul.mubr.msk.f32.gmra.mrb[72].mxu1 %vm273_vm1, %v5945_v31  ;;  %v6077_v24 = vpop.permute.xlu1 %2942  ;;  %v6079_v16 = vpop.permute.xlu0 %2944  ;;  %v4969_v31 = vunpack.i.h.bf16 %v6001_v48 }
 0x267   : > { %4483 = vmatprep.mubr.msk.f32.mxu1 %vm5325_vm0, %v7351_v1 }
 0x268   : > { %v4821_v34 = vpack.c.bf16 %v4969_v31, %v4968_v42 }
 0x26a   : > { %4484 = vmatmul.mubr.msk.f32.gmra.mrb[74].mxu1 %vm273_vm1, %v5957_v37  ;;  %v6085_v18 = vpop.permute.xlu1 %2946  ;;  %v6087_v14 = vpop.permute.xlu0 %2948 }
 0x26b   : > { %4806 = vmatpush3.bf16.xpose.msk.msra.mxu1 %vm5388_vm2, %v4804_v15  ;;  %4486 = vmatprep.mubr.msk.f32.mxu1 %vm5325_vm0, %v7351_v1 }
 0x26c   : > { %4807 = vmatprep.subr.bf16.mxu1 %v7349_v0 }
 0x26e   : > { %4487 = vmatmul.mubr.msk.f32.gmra.mrb[76].mxu1 %vm273_vm1, %v5959_v33  ;;  %v6098_v22 = vpop.permute.xlu1 %2950  ;;  %v4982_v21 = vpop.permute.xlu0 %4981 }
 0x26f   : > { %4489 = vmatprep.mubr.msk.f32.mxu1 %vm5325_vm0, %v7351_v1  ;;  %v4984_v52 = vunpack.i.h.bf16 %v4982_v21  ;;  %v4983_v25 = vunpack.i.l.bf16 %v4982_v21  ;;  %v3689_v21 = vld [vmem:[%s7347_s3 + $0x60] sm:$0xff] }
 0x271   : > { %v4707_v53 = vpack.c.bf16 %v4984_v52, %v4983_v25 }
 0x272   : > { %4490 = vmatmul.mubr.msk.f32.gmra.mrb[78].mxu1 %vm273_vm1, %v5971_v38  ;;  %v4987_v44 = vpop.permute.xlu1 %4986  ;;  %v4992_v59 = vpop.permute.xlu0 %4991  ;;  %v4973_v38 = vunpack.i.l.bf16 %v6022_v26  ;;  %v3684_v26 = vld [vmem:[%s7347_s3 + $0x38] sm:$0xff] }
 0x273   : > { %4810 = vmatpush3.bf16.xpose.msk.msra.mxu1 %vm5388_vm2, %v4808_v27  ;;  %4492 = vmatprep.mubr.msk.f32.mxu1 %vm5325_vm0, %v7351_v1  ;;  %v4989_v45 = vunpack.i.h.bf16 %v4987_v44  ;;  %v4988_v28 = vunpack.i.l.bf16 %v4987_v44  ;;  %v4994_v60 = vunpack.i.h.bf16 %v4992_v59  ;;  %v4993_v29 = vunpack.i.l.bf16 %v4992_v59  ;;  %v3690_v44 = vld [vmem:[%s7347_s3 + $0x68] sm:$0x1] }
 0x274   : > { %4545 = vmatprep.subr.mxu1 %v7351_v1  ;;  %4708 = vmatpush3.bf16.msra.mxu0 %v4707_v53 }
 0x275   : > { %v4710_v30 = vpack.c.bf16 %v4989_v45, %v4988_v28  ;;  %4709 = vmatprep.subr.bf16.mxu0 %v7349_v0  ;;  %v4713_v37 = vpack.c.bf16 %v4994_v60, %v4993_v29  ;;  %v3713_v29 = vld [vmem:[%s7347_s3 + $0x70] sm:$0xff] }
 0x276   : > { %4493 = vmatmul.mubr.msk.f32.gmra.mrb[80].mxu1 %vm273_vm1, %v5982_v40  ;;  %v866_v39 = vpop.permute.xlu0 %865 }
 0x277   : > { %4495 = vmatprep.mubr.msk.f32.mxu1 %vm5325_vm0, %v7351_v1 }
 0x278   : > { %v6116_v32 = vpop.f32.mrb[0].mxu1  ;;  %4711 = vmatpush3.bf16.msra.mxu0 %v4710_v30 }
 0x279   : > { %7370 = vst [vmem:[#allocation3_spill] sm:$0xff] %v6116_v32  ;;  %v4164_v33 = vpop.f32.mrb[1].mxu1  ;;  %4712 = vmatprep.subr.bf16.mxu0 %v7349_v0  ;;  %v5311_v32 = vld [vmem:[%s5494_s9 + $0x8] sm:$0xff] }
 0x27a   : > { %4496 = vmatmul.mubr.msk.f32.gmra.mrb[82].mxu1 %vm273_vm1, %v5984_v41  ;;  %v4825_v41 = vpack.c.bf16 %v4974_v49, %v4973_v38  ;;  %v3714_v33 = vld [vmem:[%s7347_s3 + $0x78] sm:$0xff] }
 0x27b   : > { %4546 = vmatpush3.xpose.msk.msra.mxu1 %vm273_vm1, %v5999_v47  ;;  %4547 = vmatprep.mubr.msk.f32.mxu1 %vm5325_vm0, %v7351_v1  ;;  %v4978_v47 = vunpack.i.l.bf16 %v6032_v62  ;;  %v3685_v62 = vld [vmem:[%s7347_s3 + $0x40] sm:$0xff] }
 0x27c   : > { %v6125_v35 = vpop.f32.mrb[2].mxu1  ;;  %4820 = vmatprep.subr.bf16.mxu1 %v7349_v0  ;;  %4714 = vmatpush3.bf16.msra.mxu0 %v4713_v37 }
 0x27d   : > { %7371 = vst [vmem:[#allocation4_spill] sm:$0xff] %v6125_v35  ;;  %v4167_v36 = vpop.f32.mrb[3].mxu1  ;;  %4230 = vmatprep.subr.mxu0 %v7351_v1 }
 0x27e   : > { %4548 = vmatmul.mubr.msk.f32.vlgmr.msra.gmra.mrb[84].mxu1 %vm273_vm1, %v6009_v17  ;;  %v4829_v17 = vpack.c.bf16 %v4979_v57, %v4978_v47  ;;  %v3716_v47 = vld [vmem:[%s7347_s3 + $0x88] sm:$0xff] }
 0x27f   : > { %4550 = vmatprep.mubr.msk.f32.mxu1 %vm5325_vm0, %v7351_v1  ;;  %4823 = vmatpush3.bf16.xpose.msk.msra.mxu1 %vm5388_vm2, %v4821_v34 }
 0x280   : > { %v6137_v54 = vpop.f32.mrb[4].mxu1  ;;  %4824 = vmatprep.subr.bf16.mxu1 %v7349_v0  ;;  %4231 = vmatpush3.msk.msra.mxu0 %vm502_vm4, %v866_v39  ;;  %v3715_v39 = vld [vmem:[%s7347_s3 + $0x80] sm:$0xff] }
 0x281   : > { %7372 = vst [vmem:[#allocation5_spill] sm:$0xff] %v6137_v54  ;;  %v4170_v40 = vpop.f32.mrb[5].mxu1  ;;  %4727 = vmatprep.subr.bf16.mxu0 %v7349_v0 }
 0x282   : > { %4551 = vmatmul.mubr.msk.f32.gmra.mrb[86].mxu1 %vm273_vm1, %v6011_v8 }
 0x283   : > { %4553 = vmatprep.mubr.msk.f32.mxu1 %vm5325_vm0, %v7351_v1 }
 0x284   : > { %v6146_v43 = vpop.f32.mrb[6].mxu1 }
 0x285   : > { %7373 = vst [vmem:[#allocation6_spill] sm:$0xff] %v6146_v43  ;;  %v4173_v46 = vpop.f32.mrb[7].mxu1 }
 0x286   : > { %4554 = vmatmul.mubr.msk.f32.gmra.mrb[88].mxu1 %vm273_vm1, %v6024_v56 }
 0x287   : > { %4556 = vmatprep.mubr.msk.f32.mxu1 %vm5325_vm0, %v7351_v1  ;;  %4827 = vmatpush3.bf16.xpose.msk.msra.mxu1 %vm5388_vm2, %v4825_v41 }
 0x288   : > { %v6156_v48 = vpop.f32.mrb[8].mxu1  ;;  %4828 = vmatprep.subr.bf16.mxu1 %v7349_v0 }
 0x289   : > { %7374 = vst [vmem:[#allocation7_spill] sm:$0xff] %v6156_v48  ;;  %v4176_v50 = vpop.f32.mrb[9].mxu1 }
 0x28a   : > { %4557 = vmatmul.mubr.msk.f32.gmra.mrb[90].mxu1 %vm273_vm1, %v6030_v61 }
 0x28b   : > { %4559 = vmatprep.mubr.msk.f32.mxu1 %vm5325_vm0, %v7351_v1 }
 0x28e   : > { %4560 = vmatmul.mubr.msk.f32.gmra.mrb[92].mxu1 %vm273_vm1, %v6041_v5 }
 0x28f   : > { %4831 = vmatpush3.bf16.xpose.msk.msra.mxu1 %vm5388_vm2, %v4829_v17  ;;  %4562 = vmatprep.mubr.msk.f32.mxu1 %vm5325_vm0, %v7351_v1 }
 0x290   : > { %4615 = vmatprep.subr.mxu1 %v7351_v1 }
 0x292   : > { %4563 = vmatmul.mubr.msk.f32.gmra.mrb[94].mxu1 %vm273_vm1, %v6043_v63 }
 0x293   : > { %4565 = vmatprep.mubr.msk.f32.mxu1 %vm5325_vm0, %v7351_v1 }
 0x296   : > { %4566 = vmatmul.mubr.msk.f32.gmra.mrb[96].mxu1 %vm273_vm1, %v6051_v3  ;;  %v3686_v3 = vld [vmem:[%s7347_s3 + $0x48] sm:$0xff] }
 0x297   : > { %4616 = vmatpush3.xpose.msk.msra.mxu1 %vm273_vm1, %v6053_v12  ;;  %4617 = vmatprep.mubr.msk.f32.mxu1 %vm5325_vm0, %v7351_v1 }
 0x298   : > { %4841 = vmatprep.subr.bf16.mxu1 %v7349_v0 }
 0x29a   : > { %4618 = vmatmul.mubr.msk.f32.vlgmr.msra.gmra.mrb[98].mxu1 %vm273_vm1, %v6064_v10 }
 0x29b   : > { %4620 = vmatprep.mubr.msk.f32.mxu1 %vm5325_vm0, %v7351_v1 }
 0x29e   : > { %4621 = vmatmul.mubr.msk.f32.gmra.mrb[100].mxu1 %vm273_vm1, %v6066_v11 }
 0x29f   : > { %4623 = vmatprep.mubr.msk.f32.mxu1 %vm5325_vm0, %v7351_v1 }
 0x2a2   : > { %4624 = vmatmul.mubr.msk.f32.gmra.mrb[102].mxu1 %vm273_vm1, %v6077_v24 }
 0x2a3   : > { %4626 = vmatprep.mubr.msk.f32.mxu1 %vm5325_vm0, %v7351_v1 }
 0x2a6   : > { %4627 = vmatmul.mubr.msk.f32.gmra.mrb[104].mxu1 %vm273_vm1, %v6079_v16 }
 0x2a7   : > { %4629 = vmatprep.mubr.msk.f32.mxu1 %vm5325_vm0, %v7351_v1 }
 0x2aa   : > { %4630 = vmatmul.mubr.msk.f32.gmra.mrb[106].mxu1 %vm273_vm1, %v6085_v18  ;;  %v3688_v18 = vld [vmem:[%s7347_s3 + $0x58] sm:$0xff] }
 0x2ab   : > { %4632 = vmatprep.mubr.msk.f32.mxu1 %vm5325_vm0, %v7351_v1 }
 0x2ae   : > { %4633 = vmatmul.mubr.msk.f32.gmra.mrb[108].mxu1 %vm273_vm1, %v6087_v14 }
 0x2af   : > { %4635 = vmatprep.mubr.msk.f32.mxu1 %vm5325_vm0, %v7351_v1 }
 0x2b2   : > { %4636 = vmatmul.mubr.msk.f32.gmra.mrb[110].mxu1 %vm273_vm1, %v6098_v22 }
 0x2b3   : > { %4670 = vmatprep.mubr.msk.f32.mxu1 %vm5325_vm0, %v7351_v1 }
 0x2bd   : > { %v6209_v4 = vpop.f32.mrb[10].mxu1 }
 0x2be   : > { %7375 = vst [vmem:[#allocation8_spill] sm:$0xff] %v6209_v4  ;;  %v4179_v8 = vpop.f32.mrb[11].mxu1 }
 0x2c1   : > { %v6211_v51 = vpop.f32.mrb[12].mxu1 }
 0x2c2   : > { %7376 = vst [vmem:[#allocation9_spill] sm:$0xff] %v6211_v51  ;;  %v4182_v55 = vpop.f32.mrb[13].mxu1 }
 0x2c5   : > { %v750_v56 = vpop.f32.mrb[14].mxu1 }
 0x2c6   : > { %v6216_v58 = vadd.f32 %v3684_v26, %v750_v56  ;;  %v4199_v61 = vpop.f32.mrb[15].mxu1  ;;  %v3717_v26 = vld [vmem:[%s7347_s3 + $0x90] sm:$0xff] }
 0x2c8   : > { %v784_v5 = vsel %vm416_vm3, %v6216_v58, -inf }
 0x2c9   : > { %v755_v63 = vpop.f32.mrb[16].mxu1  ;;  %785 = vmax.xlane.f32.xlu0 %v784_v5 }
 0x2ca   : > { %v6223_v2 = vadd.f32 %v3685_v62, %v755_v63  ;;  %v4202_v6 = vpop.f32.mrb[17].mxu1  ;;  %v3718_v63 = vld [vmem:[%s7347_s3 + $0x98] sm:$0xff] }
 0x2cc   : > { %v787_v12 = vsel %vm416_vm3, %v6223_v2, -inf }
 0x2cd   : > { %788 = vmax.xlane.f32.xlu1 %v787_v12  ;;  %v760_v13 = vpop.f32.mrb[18].mxu1 }
 0x2ce   : > { %v6230_v10 = vadd.f32 %v3686_v3, %v760_v13  ;;  %v4205_v11 = vpop.f32.mrb[19].mxu1 }
 0x2cf   : > { %v3719_v11 = vld [vmem:[%s7347_s3 + $0xa0] sm:$0x1] }
 0x2d0   : > { %v790_v9 = vsel %vm416_vm3, %v6230_v10, -inf }
 0x2d1   : > { %791 = vmax.xlane.f32.xlu1 %v790_v9  ;;  %v765_v24 = vpop.f32.mrb[20].mxu1 }
 0x2d2   : > { %v6237_v16 = vadd.f32 %v3687_v7, %v765_v24  ;;  %v4208_v15 = vpop.f32.mrb[21].mxu1 }
 0x2d4   : > { %v793_v14 = vsel %vm416_vm3, %v6237_v16, -inf }
 0x2d5   : > { %794 = vmax.xlane.f32.xlu1 %v793_v14  ;;  %v770_v19 = vpop.f32.mrb[22].mxu1 }
 0x2d6   : > { %v6244_v23 = vadd.f32 %v3688_v18, %v770_v19  ;;  %v4211_v22 = vpop.f32.mrb[23].mxu1  ;;  %v3742_v18 = vld [vmem:[%s7347_s3 + $0xa8] sm:$0xff] }
 0x2d8   : > { %v796_v27 = vsel %vm416_vm3, %v6244_v23, -inf }
 0x2d9   : > { %797 = vmax.xlane.f32.xlu1 %v796_v27  ;;  %v775_v52 = vpop.f32.mrb[24].mxu1 }
 0x2da   : > { %v6251_v25 = vadd.f32 %v3689_v21, %v775_v52  ;;  %v4214_v53 = vpop.f32.mrb[25].mxu1 }
 0x2dc   : > { %v799_v45 = vsel %vm416_vm3, %v6251_v25, -inf }
 0x2dd   : > { %800 = vmax.xlane.f32.xlu1 %v799_v45  ;;  %v780_v28 = vpop.f32.mrb[26].mxu1 }
 0x2de   : > { %v6258_v59 = vadd.f32 %v3690_v44, %v780_v28  ;;  %v4217_v60 = vpop.f32.mrb[27].mxu1  ;;  %v3744_v44 = vld [vmem:[%s7347_s3 + $0xb8] sm:$0xff]  ;;  %v6321_v28 = vpop.permute.xlu0 %5006 }
 0x2e0   : > { %v802_v30 = vsel %vm435_vm5, %v6258_v59, -inf }
 0x2e1   : > { %803 = vmax.xlane.f32.xlu0 %v802_v30  ;;  %v1140_v31 = vpop.f32.mrb[28].mxu1  ;;  %v3745_v30 = vld [vmem:[%s7347_s3 + $0xc0] sm:$0xff] }
 0x2e2   : > { %v6265_v42 = vadd.f32 %v3713_v29, %v1140_v31  ;;  %v4269_v37 = vpop.f32.mrb[29].mxu1 }
 0x2e4   : > { %v1174_v34 = vsel %vm416_vm3, %v6265_v42, -inf }
 0x2e5   : > { %1175 = vmax.xlane.f32.xlu1 %v1174_v34  ;;  %v1145_v36 = vpop.f32.mrb[30].mxu1 }
 0x2e6   : > { %v6272_v49 = vadd.f32 %v3714_v33, %v1145_v36  ;;  %v4272_v38 = vpop.f32.mrb[31].mxu1  ;;  %v6333_v36 = vld [vmem:[%s5494_s9 + $0x30] sm:$0x1] }
 0x2e7   : > { %v3746_v38 = vld [vmem:[%s7347_s3 + $0xc8] sm:$0xff] }
 0x2e8   : > { %v1177_v40 = vsel %vm416_vm3, %v6272_v49, -inf }
 0x2e9   : > { %1178 = vmax.xlane.f32.xlu1 %v1177_v40  ;;  %v1150_v41 = vpop.f32.mrb[32].mxu1 }
 0x2ea   : > { %v6279_v46 = vadd.f32 %v3715_v39, %v1150_v41  ;;  %v4275_v57 = vpop.f32.mrb[33].mxu1  ;;  %v6340_v39 = vpop.permute.xlu0 %1249 }
 0x2ec   : > { %v1180_v50 = vsel %vm416_vm3, %v6279_v46, -inf }
 0x2ed   : > { %1181 = vmax.xlane.f32.xlu1 %v1180_v50  ;;  %v1155_v17 = vpop.f32.mrb[34].mxu1 }
 0x2ee   : > { %v6286_v8 = vadd.f32 %v3716_v47, %v1155_v17  ;;  %v4278_v55 = vpop.f32.mrb[35].mxu1 }
 0x2ef   : > { %v6348_v55 = vpop.permute.xlu0 %5016 }
 0x2f0   : > { %v1183_v56 = vsel %vm416_vm3, %v6286_v8, -inf }
 0x2f1   : > { %1184 = vmax.xlane.f32.xlu1 %v1183_v56  ;;  %v1160_v61 = vpop.f32.mrb[36].mxu1  ;;  %v3748_v56 = vld [vmem:[%s7347_s3 + $0xd8] sm:$0x1] }
 0x2f2   : > { %v6293_v62 = vadd.f32 %v3717_v26, %v1160_v61  ;;  %v4281_v5 = vpop.f32.mrb[37].mxu1 }
 0x2f4   : > { %v1186_v6 = vsel %vm416_vm3, %v6293_v62, -inf }
 0x2f5   : > { %1187 = vmax.xlane.f32.xlu0 %v1186_v6  ;;  %v1165_v3 = vpop.f32.mrb[38].mxu1  ;;  %v6355_v6 = vpop.permute.xlu0 %1633 }
 0x2f6   : > { %v6300_v12 = vadd.f32 %v3718_v63, %v1165_v3  ;;  %v4284_v13 = vpop.f32.mrb[39].mxu1 }
 0x2f8   : > { %v1189_v7 = vsel %vm416_vm3, %v6300_v12, -inf }
 0x2f9   : > { %1190 = vmax.xlane.f32.xlu1 %v1189_v7  ;;  %v1170_v9 = vpop.f32.mrb[40].mxu1  ;;  %v6359_v7 = vpop.permute.xlu1 %4996 }
 0x2fa   : > { %v6307_v24 = vadd.f32 %v3719_v11, %v1170_v9  ;;  %v4287_v15 = vpop.f32.mrb[41].mxu1  ;;  %v3772_v9 = vld [vmem:[%s7347_s3 + $0xe8] sm:$0xff] }
 0x2fc   : > { %v1192_v14 = vsel %vm435_vm5, %v6307_v24, -inf }
 0x2fd   : > { %1193 = vmax.xlane.f32.xlu1 %v1192_v14  ;;  %v1524_v19 = vpop.f32.mrb[42].mxu1 }
 0x2fe   : > { %v6314_v22 = vadd.f32 %v3742_v18, %v1524_v19  ;;  %v4339_v21 = vpop.f32.mrb[43].mxu1  ;;  %v6364_v18 = vpop.permute.xlu0 %5031 }
 0x2ff   : > { %v3773_v21 = vld [vmem:[%s7347_s3 + $0xf0] sm:$0xff] }
 0x300   : > { %v1558_v27 = vsel %vm416_vm3, %v6314_v22, -inf }
 0x301   : > { %1559 = vmax.xlane.f32.xlu1 %v1558_v27  ;;  %v1529_v52 = vpop.f32.mrb[44].mxu1 }
 0x302   : > { %v4342_v53 = vpop.f32.mrb[45].mxu1 }
 0x303   : > { %v6373_v53 = vpop.permute.xlu1 %5001 }
 0x305   : > { %v1534_v45 = vpop.f32.mrb[46].mxu1 }
 0x306   : > { %v6323_v60 = vadd.f32 %v3744_v44, %v1534_v45  ;;  %v4345_v29 = vpop.f32.mrb[47].mxu1  ;;  %v3743_v45 = vld [vmem:[%s7347_s3 + $0xb0] sm:$0xff] }
 0x308   : > { %v1564_v31 = vsel %vm416_vm3, %v6323_v60, -inf }
 0x309   : > { %1565 = vmax.xlane.f32.xlu1 %v1564_v31  ;;  %v1539_v37 = vpop.f32.mrb[48].mxu1  ;;  %v3774_v31 = vld [vmem:[%s7347_s3 + $0xf8] sm:$0xff] }
 0x30a   : > { %v6330_v33 = vadd.f32 %v3745_v30, %v1539_v37  ;;  %v4348_v34 = vpop.f32.mrb[49].mxu1  ;;  %v6383_v37 = vpop.permute.xlu0 %5036 }
 0x30b   : > { %2785 = vrot.lane.b32.xlu0 %v6333_v36, %s5332_s23  ;;  %s5340_s23 = smov 28  }
 0x30c   : > { %v1567_v40 = vsel %vm416_vm3, %v6330_v33, -inf }
 0x30d   : > { %1568 = vmax.xlane.f32.xlu1 %v1567_v40  ;;  %v1544_v41 = vpop.f32.mrb[50].mxu1 }
 0x30e   : > { %v6344_v57 = vadd.f32 %v3746_v38, %v1544_v41  ;;  %v4351_v47 = vpop.f32.mrb[51].mxu1  ;;  %v6387_v38 = vadd.f32 %v3743_v45, %v1529_v52  ;;  %v3747_v41 = vld [vmem:[%s7347_s3 + $0xd0] sm:$0xff] }
 0x310   : > { %v1570_v50 = vsel %vm416_vm3, %v6344_v57, -inf  ;;  %v1561_v52 = vsel %vm416_vm3, %v6387_v38, -inf }
 0x311   : > { %1571 = vmax.xlane.f32.xlu1 %v1570_v50  ;;  %v1549_v17 = vpop.f32.mrb[52].mxu1 }
 0x312   : > { %v4354_v26 = vpop.f32.mrb[53].mxu1 }
 0x313   : > { %v6394_v26 = vpop.permute.xlu1 %5011 }
 0x315   : > { %v1554_v61 = vpop.f32.mrb[54].mxu1 }
 0x316   : > { %v6353_v5 = vadd.f32 %v3748_v56, %v1554_v61  ;;  %v4357_v63 = vpop.f32.mrb[55].mxu1  ;;  %v6398_v61 = vadd.f32 %v3747_v41, %v1549_v17 }
 0x318   : > { %v1576_v3 = vsel %vm435_vm5, %v6353_v5, -inf }
 0x319   : > { %1577 = vmax.xlane.f32.xlu1 %v1576_v3  ;;  %v1908_v13 = vpop.f32.mrb[56].mxu1  ;;  %v6402_v3 = vpop.permute.xlu0 %5041 }
 0x31a   : > { %v4409_v11 = vpop.f32.mrb[57].mxu1 }
 0x31b   : > { %v3771_v11 = vld [vmem:[%s7347_s3 + $0xe0] sm:$0xff] }
 0x31c   : > { %v6412_v17 = vadd.f32 %v3771_v11, %v1908_v13 }
 0x31d   : > { %v1913_v15 = vpop.f32.mrb[58].mxu1 }
 0x31e   : > { %v6366_v14 = vadd.f32 %v3772_v9, %v1913_v15  ;;  %v4412_v19 = vpop.f32.mrb[59].mxu1  ;;  %v3776_v15 = vld [vmem:[%s7347_s3 + $0x108] sm:$0xff]  ;;  %v1942_v41 = vsel %vm416_vm3, %v6412_v17, -inf }
 0x31f   : > { %v6410_v19 = vpop.permute.xlu1 %5021 }
 0x320   : > { %v1945_v27 = vsel %vm416_vm3, %v6366_v14, -inf }
 0x321   : > { %1946 = vmax.xlane.f32.xlu1 %v1945_v27  ;;  %v1918_v44 = vpop.f32.mrb[60].mxu1  ;;  %v1573_v27 = vsel %vm416_vm3, %v6398_v61, -inf }
 0x322   : > { %v6378_v29 = vadd.f32 %v3773_v21, %v1918_v44  ;;  %v4415_v30 = vpop.f32.mrb[61].mxu1  ;;  %v3775_v44 = vld [vmem:[%s7347_s3 + $0x100] sm:$0xff] }
 0x324   : > { %v1948_v34 = vsel %vm416_vm3, %v6378_v29, -inf }
 0x325   : > { %1949 = vmax.xlane.f32.xlu1 %v1948_v34  ;;  %v1923_v40 = vpop.f32.mrb[62].mxu1 }
 0x326   : > { %v6392_v47 = vadd.f32 %v3774_v31, %v1923_v40  ;;  %v4418_v50 = vpop.f32.mrb[63].mxu1  ;;  %v6421_v31 = vpop.permute.xlu0 %5051 }
 0x327   : > { %v3777_v50 = vld [vmem:[%s7347_s3 + $0x110] sm:$0x1] }
 0x328   : > { %v1951_v56 = vsel %vm416_vm3, %v6392_v47, -inf }
 0x329   : > { %1952 = vmax.xlane.f32.xlu1 %v1951_v56  ;;  %v1928_v63 = vpop.f32.mrb[64].mxu1 }
 0x32a   : > { %1562 = vmax.xlane.f32.xlu0 %v1561_v52  ;;  %v4421_v9 = vpop.f32.mrb[65].mxu1  ;;  %v6425_v40 = vadd.f32 %v3775_v44, %v1928_v63  ;;  %v6432_v52 = vpop.permute.xlu1 %5026  ;;  %v3801_v44 = vld [vmem:[%s7347_s3 + $0x120] sm:$0xff] }
 0x32c   : > { %v1954_v63 = vsel %vm416_vm3, %v6425_v40, -inf }
 0x32d   : > { %v1933_v21 = vpop.f32.mrb[66].mxu1 }
 0x32e   : > { %v6419_v45 = vadd.f32 %v3776_v15, %v1933_v21  ;;  %1574 = vmax.xlane.f32.xlu0 %v1573_v27  ;;  %v4424_v30 = vpop.f32.mrb[67].mxu1  ;;  %v6438_v15 = vpop.xlane.xlu0 %461  ;;  %v3800_v21 = vld [vmem:[%s7347_s3 + $0x118] sm:$0xff] }
 0x32f   : > { %7377 = vst [vmem:[#allocation10_spill] sm:$0xff] %v6438_v15  ;;  %v6446_v30 = vpop.permute.xlu1 %2017 }
 0x330   : > { %v1957_v34 = vsel %vm416_vm3, %v6419_v45, -inf }
 0x331   : > { %1958 = vmax.xlane.f32.xlu1 %v1957_v34  ;;  %v1938_v13 = vpop.f32.mrb[68].mxu1 }
 0x332   : > { %1943 = vmax.xlane.f32.xlu0 %v1942_v41  ;;  %v4427_v56 = vpop.f32.mrb[69].mxu1  ;;  %v6434_v11 = vadd.f32 %v3777_v50, %v1938_v13 }
 0x334   : > { %v1960_v41 = vsel %vm435_vm5, %v6434_v11, -inf }
 0x335   : > { %v2292_v9 = vpop.f32.mrb[70].mxu1 }
 0x336   : > { %1955 = vmax.xlane.f32.xlu0 %v1954_v63  ;;  %v4479_v27 = vpop.f32.mrb[71].mxu1  ;;  %v6448_v34 = vadd.f32 %v3800_v21, %v2292_v9  ;;  %v3802_v63 = vld [vmem:[%s7347_s3 + $0x128] sm:$0xff] }
 0x337   : > { %v6457_v27 = vpop.xlane.xlu0 %467 }
 0x338   : > { %7378 = vst [vmem:[#allocation11_spill] sm:$0xff] %v6457_v27  ;;  %v2326_v21 = vsel %vm416_vm3, %v6448_v34, -inf }
 0x339   : > { %v2297_v13 = vpop.f32.mrb[72].mxu1 }
 0x33a   : > { %v6452_v50 = vadd.f32 %v3801_v44, %v2297_v13  ;;  %1961 = vmax.xlane.f32.xlu0 %v1960_v41  ;;  %v4482_v56 = vpop.f32.mrb[73].mxu1  ;;  %v6465_v13 = vpop.permute.xlu1 %5046  ;;  %v3803_v41 = vld [vmem:[%s7347_s3 + $0x130] sm:$0xff] }
 0x33b   : > { %v6472_v48 = vpop.xlane.xlu0 %470 }
 0x33c   : > { %v2329_v0 = vsel %vm416_vm3, %v6452_v50, -inf  ;;  %7379 = vst [vmem:[#allocation12_spill] sm:$0xff] %v6472_v48 }
 0x33d   : > { %2330 = vmax.xlane.f32.xlu1 %v2329_v0  ;;  %v2302_v9 = vpop.f32.mrb[74].mxu1 }
 0x33e   : > { %v6463_v1 = vadd.f32 %v3802_v63, %v2302_v9  ;;  %2327 = vmax.xlane.f32.xlu0 %v2326_v21  ;;  %v4485_v44 = vpop.f32.mrb[75].mxu1  ;;  %v3804_v9 = vld [vmem:[%s7347_s3 + $0x138] sm:$0xff] }
 0x33f   : > { %v6481_v44 = vpop.permute.xlu1 %2401  ;;  %v6485_v51 = vpop.xlane.xlu0 %473 }
 0x340   : > { %v2332_v56 = vsel %vm416_vm3, %v6463_v1, -inf  ;;  %7381 = vst [vmem:[#allocation14_spill] sm:$0xff] %v6485_v51 }
 0x341   : > { %v2307_v4 = vpop.f32.mrb[76].mxu1 }
 0x342   : > { %2333 = vmax.xlane.f32.xlu0 %v2332_v56  ;;  %v6474_v0 = vadd.f32 %v3803_v41, %v2307_v4  ;;  %v4488_v63 = vpop.f32.mrb[77].mxu1 }
 0x343   : > { %v5310_v63 = vld [vmem:[%s5494_s9] sm:$0xff]  ;;  %v6493_v27 = vpop.xlane.xlu1 %464 }
 0x344   : > { %v2335_v21 = vsel %vm416_vm3, %v6474_v0, -inf  ;;  %v5070_v48 = vpack.i.bf16 %v5311_v32, %v5310_v63  ;;  %7382 = vst [vmem:[#allocation15_spill] sm:$0xff] %v6493_v27 }
 0x345   : > { %v2312_v35 = vpop.f32.mrb[78].mxu1 }
 0x346   : > { %2336 = vmax.xlane.f32.xlu0 %v2335_v21  ;;  %v6483_v43 = vadd.f32 %v3804_v9, %v2312_v35  ;;  %v4491_v54 = vpop.f32.mrb[79].mxu1  ;;  %v3806_v35 = vld [vmem:[%s7347_s3 + $0x148] sm:$0x1] }
 0x347   : > { %v6498_v54 = vpop.xlane.xlu0 %476  ;;  %v6503_v15 = vpop.permute.xlu1 %5061 }
 0x348   : > { %7380 = vst [vmem:[#allocation13_spill] sm:$0xff] %v6483_v43  ;;  %v2338_v4 = vsel %vm416_vm3, %v6483_v43, -inf  ;;  %7383 = vst [vmem:[#allocation16_spill] sm:$0xff] %v6498_v54  ;;  %v3830_v54 = vld [vmem:[%s7347_s3 + $0x158] sm:$0xff] }
 0x349   : > { %v6489_v41 = vpop.f32.mrb[80].mxu1  ;;  %7385 = vst [vmem:[#allocation18_spill] sm:$0xff] %v6503_v15 }
 0x34a   : > { %2339 = vmax.xlane.f32.xlu0 %v2338_v4  ;;  %v4494_v56 = vpop.f32.mrb[81].mxu1 }
 0x34b   : > { %v6509_v56 = vpop.permute.xlu0 %5056 }
 0x34c   : > { %7386 = vst [vmem:[#allocation19_spill] sm:$0xff] %v6509_v56 }
 0x34d   : > { %v2322_v9 = vpop.f32.mrb[82].mxu1 }
 0x34e   : > { %v6500_v21 = vadd.f32 %v3806_v35, %v2322_v9  ;;  %5071 = vrot.lane.b32.xlu1 %v5070_v48, %s5333_s24  ;;  %v4497_v51 = vpop.f32.mrb[83].mxu1  ;;  %v6514_v35 = vpop.permute.xlu1 %5066 }
 0x34f   : > { %7387 = vst [vmem:[#allocation20_spill] sm:$0xff] %v6514_v35 }
 0x350   : > { %7384 = vst [vmem:[#allocation17_spill] sm:$0xff] %v6500_v21  ;;  %v2344_v4 = vsel %vm435_vm5, %v6500_v21, -inf }
 0x351   : > { %2345 = vmax.xlane.f32.xlu0 %v2344_v4  ;;  %v6507_v32 = vpop.f32.mrb[84].mxu1  ;;  %v3831_v4 = vld [vmem:[%s7347_s3 + $0x160] sm:$0xff] }
 0x352   : > { %v4549_v63 = vpop.f32.mrb[85].mxu1 }
 0x355   : > { %v2681_v9 = vpop.f32.mrb[86].mxu1 }
 0x356   : > { %v6516_v48 = vadd.f32 %v3830_v54, %v2681_v9  ;;  %v786_v51 = vpop.xlane.xlu0 %785  ;;  %v4552_v27 = vpop.f32.mrb[87].mxu1 }
 0x357   : > { %v805_v20 = vsub.f32 %v6216_v58, %v786_v51  ;;  %v3832_v58 = vld [vmem:[%s7347_s3 + $0x168] sm:$0xff] }
 0x358   : > { %7388 = vst [vmem:[#allocation21_spill] sm:$0xff] %v6516_v48  ;;  %v2713_v63 = vsel %vm416_vm3, %v6516_v48, -inf }
 0x359   : > { %v812_v21 = vmul.f32 1.442695, %v805_v20  ;;  %2714 = vmax.xlane.f32.xlu0 %v2713_v63  ;;  %v2686_v15 = vpop.f32.mrb[88].mxu1 }
 0x35a   : > { %v6524_v43 = vadd.f32 %v3831_v4, %v2686_v15  ;;  %v789_v35 = vpop.xlane.xlu1 %788  ;;  %v4555_v56 = vpop.f32.mrb[89].mxu1 }
 0x35b   : > { %5099 = vpow2.f32 %v812_v21  ;;  %v806_v54 = vsub.f32 %v6223_v2, %v789_v35  ;;  %v4999_v21 = vunpack.i.h.bf16 %v6359_v7  ;;  %v4998_v35 = vunpack.i.l.bf16 %v6359_v7 }
 0x35c   : > { %7389 = vst [vmem:[#allocation22_spill] sm:$0xff] %v6524_v43  ;;  %v2716_v27 = vsel %vm416_vm3, %v6524_v43, -inf }
 0x35d   : > { %v814_v9 = vmul.f32 1.442695, %v806_v54  ;;  %2717 = vmax.xlane.f32.xlu0 %v2716_v27  ;;  %v2691_v51 = vpop.f32.mrb[90].mxu1 }
 0x35e   : > { %v6532_v20 = vadd.f32 %v3832_v58, %v2691_v51  ;;  %v792_v63 = vpop.xlane.xlu1 %791  ;;  %v4558_v15 = vpop.f32.mrb[91].mxu1 }
 0x35f   : > { %5101 = vpow2.f32 %v814_v9  ;;  %v807_v56 = vsub.f32 %v6230_v10, %v792_v63  ;;  %v4728_v9 = vpack.c.bf16 %v4999_v21, %v4998_v35  ;;  %v5004_v10 = vunpack.i.h.bf16 %v6373_v53 }
 0x360   : > { %7390 = vst [vmem:[#allocation23_spill] sm:$0xff] %v6532_v20  ;;  %v2719_v2 = vsel %vm416_vm3, %v6532_v20, -inf  ;;  %v5003_v63 = vunpack.i.l.bf16 %v6373_v53  ;;  %v5009_v35 = vunpack.i.h.bf16 %v6321_v28 }
 0x361   : > { %v816_v4 = vmul.f32 1.442695, %v807_v56  ;;  %2720 = vmax.xlane.f32.xlu0 %v2719_v2  ;;  %v2696_v48 = vpop.f32.mrb[92].mxu1  ;;  %v7392_v2 = vmov 0.0|0.0  }
 0x362   : > { %v795_v54 = vpop.xlane.xlu1 %794  ;;  %v4561_v27 = vpop.f32.mrb[93].mxu1  ;;  %v4731_v53 = vpack.c.bf16 %v5004_v10, %v5003_v63 }
 0x363   : > { %5103 = vpow2.f32 %v816_v4  ;;  %v808_v58 = vsub.f32 %v6237_v16, %v795_v54  ;;  %v7391_v16 = vmov 0.0   ;;  %v5008_v4 = vunpack.i.l.bf16 %v6321_v28 }
 0x365   : > { %v6540_v51 = vpop.eup %5099  ;;  %v818_v15 = vmul.f32 1.442695, %v808_v58  ;;  %v6544_v20 = vpop.f32.mrb[94].mxu1  ;;  %v3805_v58 = vld [vmem:[%s7347_s3 + $0x140] sm:$0xff]  ;;  %v4734_v10 = vpack.c.bf16 %v5009_v35, %v5008_v4 }
 0x366   : > { %v798_v43 = vpop.xlane.xlu1 %797  ;;  %4233 = vmatmul.mubr.msk.f32.vlgmr.msra.gmra.mrb[14].mxu0 %vm416_vm3, %v6540_v51  ;;  %v4564_v7 = vpop.f32.mrb[95].mxu1  ;;  %v6568_v63 = vadd.f32 %v3805_v58, %v6489_v41  ;;  %v3833_v41 = vld [vmem:[%s7347_s3 + $0x170] sm:$0xff] }
 0x367   : > { %5105 = vpow2.f32 %v818_v15  ;;  %v809_v56 = vsub.f32 %v6244_v23, %v798_v43  ;;  %4729 = vmatpush3.bf16.msra.mxu0 %v4728_v9  ;;  %4235 = vmatprep.mubr.msk.f32.mxu0 %vm5325_vm0, %v7391_v16 }
 0x368   : > { %4730 = vmatprep.subr.bf16.mxu0 %v7392_v2 }
 0x369   : > { %v6552_v21 = vpop.eup %5101  ;;  %v820_v54 = vmul.f32 1.442695, %v809_v56  ;;  %v2706_v27 = vpop.f32.mrb[96].mxu1  ;;  %v3829_v56 = vld [vmem:[%s7347_s3 + $0x150] sm:$0xff] }
 0x36a   : > { %v801_v43 = vpop.xlane.xlu1 %800  ;;  %4236 = vmatmul.mubr.msk.f32.gmra.mrb[16].mxu0 %vm416_vm3, %v6552_v21  ;;  %v4567_v23 = vpop.f32.mrb[97].mxu1  ;;  %v6585_v4 = vadd.f32 %v3829_v56, %v6507_v32  ;;  %v5313_v56 = vld [vmem:[%s5494_s9 + $0x18] sm:$0xff] }
 0x36b   : > { %5107 = vpow2.f32 %v820_v54  ;;  %v810_v9 = vsub.f32 %v6251_v25, %v801_v43  ;;  %4732 = vmatpush3.bf16.msra.mxu0 %v4731_v53  ;;  %4238 = vmatprep.mubr.msk.f32.mxu0 %vm5325_vm0, %v7391_v16 }
 0x36c   : > { %4733 = vmatprep.subr.bf16.mxu0 %v7392_v2 }
 0x36d   : > { %v6565_v28 = vpop.eup %5103  ;;  %v822_v15 = vmul.f32 1.442695, %v810_v9  ;;  %v3060_v7 = vpop.f32.mrb[98].mxu1 }
 0x36e   : > { %v804_v54 = vpop.xlane.xlu0 %803  ;;  %4239 = vmatmul.mubr.msk.f32.gmra.mrb[18].mxu0 %vm416_vm3, %v6565_v28  ;;  %v4619_v25 = vpop.f32.mrb[99].mxu1 }
 0x36f   : > { %5109 = vpow2.f32 %v822_v15  ;;  %v811_v53 = vsub.f32 %v6258_v59, %v804_v54  ;;  %4735 = vmatpush3.bf16.msra.mxu0 %v4734_v10  ;;  %4241 = vmatprep.mubr.msk.f32.mxu0 %vm5325_vm0, %v7391_v16  ;;  %v2341_v59 = vsel %vm416_vm3, %v6568_v63, -inf  ;;  %v6593_v10 = vadd.f32 %v3833_v41, %v2696_v48  ;;  %v5312_v15 = vld [vmem:[%s5494_s9 + $0x10] sm:$0xff]  ;;  %v3835_v25 = vld [vmem:[%s7347_s3 + $0x180] sm:$0x1] }
 0x370   : > { %4300 = vmatprep.subr.mxu0 %v7391_v16  ;;  %v5075_v54 = vpack.i.bf16 %v5313_v56, %v5312_v15 }
 0x371   : > { %v6582_v35 = vpop.eup %5105  ;;  %v824_v58 = vmul.f32 1.442695, %v811_v53  ;;  %v6589_v43 = vpop.f32.mrb[100].mxu1  ;;  %7393 = vst [vmem:[#allocation24_spill] sm:$0xff] %v6593_v10 }
 0x372   : > { %4242 = vmatmul.mubr.msk.f32.gmra.mrb[20].mxu0 %vm416_vm3, %v6582_v35  ;;  %v1176_v23 = vpop.xlane.xlu1 %1175  ;;  %2342 = vmax.xlane.f32.xlu1 %v2341_v59  ;;  %v4622_v9 = vpop.f32.mrb[101].mxu1 }
 0x373   : > { %5111 = vpow2.f32 %v824_v58  ;;  %4301 = vmatpush3.msk.msra.mxu0 %vm502_vm4, %v6340_v39  ;;  %v1195_v32 = vsub.f32 %v6265_v42, %v1176_v23  ;;  %4244 = vmatprep.mubr.msk.f32.mxu0 %vm5325_vm0, %v7391_v16  ;;  %v2710_v39 = vsel %vm416_vm3, %v6585_v4, -inf  ;;  %v6616_v23 = vadd.f32 %v3835_v25, %v2706_v27 }
 0x374   : > { %4748 = vmatprep.subr.bf16.mxu0 %v7392_v2  ;;  %v2722_v9 = vsel %vm416_vm3, %v6593_v10, -inf }
 0x375   : > { %v6606_v53 = vpop.eup %5107  ;;  %v1202_v48 = vmul.f32 1.442695, %v1195_v32  ;;  %v3070_v41 = vpop.f32.mrb[102].mxu1  ;;  %7394 = vst [vmem:[#allocation25_spill] sm:$0xff] %v6616_v23  ;;  %v3858_v32 = vld [vmem:[%s7347_s3 + $0x188] sm:$0xff] }
 0x376   : > { %4245 = vmatmul.mubr.msk.f32.gmra.mrb[22].mxu0 %vm416_vm3, %v6606_v53  ;;  %v1179_v42 = vpop.xlane.xlu1 %1178  ;;  %2711 = vmax.xlane.f32.xlu1 %v2710_v39  ;;  %v4625_v58 = vpop.f32.mrb[103].mxu1  ;;  %v6630_v25 = vadd.f32 %v3858_v32, %v3060_v7  ;;  %v2728_v39 = vsel %vm435_vm5, %v6616_v23, -inf }
 0x377   : > { %5113 = vpow2.f32 %v1202_v48  ;;  %v1196_v59 = vsub.f32 %v6272_v49, %v1179_v42  ;;  %5076 = vrot.lane.b32.xlu0 %v5075_v54, %s5333_s24  ;;  %4247 = vmatprep.mubr.msk.f32.mxu0 %vm5325_vm0, %v7391_v16  ;;  %v3860_v42 = vld [vmem:[%s7347_s3 + $0x198] sm:$0xff] }
 0x378   : > { %v6648_v23 = vadd.f32 %v3860_v42, %v3070_v41 }
 0x379   : > { %v6623_v15 = vpop.eup %5109  ;;  %v1204_v56 = vmul.f32 1.442695, %v1196_v59  ;;  %v3075_v48 = vpop.f32.mrb[104].mxu1  ;;  %v5014_v59 = vunpack.i.h.bf16 %v6394_v26 }
 0x37a   : > { %4248 = vmatmul.mubr.msk.f32.gmra.mrb[24].mxu0 %vm416_vm3, %v6623_v15  ;;  %v1182_v49 = vpop.xlane.xlu1 %1181  ;;  %2723 = vmax.xlane.f32.xlu1 %v2722_v9  ;;  %v4628_v54 = vpop.f32.mrb[105].mxu1  ;;  %v5013_v9 = vunpack.i.l.bf16 %v6394_v26  ;;  %7395 = vst [vmem:[#allocation26_spill] sm:$0xff] %v6648_v23  ;;  %v3861_v26 = vld [vmem:[%s7347_s3 + $0x1a0] sm:$0xff] }
 0x37b   : > { %5115 = vpow2.f32 %v1204_v56  ;;  %v1197_v27 = vsub.f32 %v6279_v46, %v1182_v49  ;;  %4250 = vmatprep.mubr.msk.f32.mxu0 %vm5325_vm0, %v7391_v16  ;;  %v3094_v54 = vsel %vm416_vm3, %v6630_v25, -inf }
 0x37c   : > { %v4749_v10 = vpack.c.bf16 %v5014_v59, %v5013_v9  ;;  %v3100_v59 = vsel %vm416_vm3, %v6648_v23, -inf  ;;  %v3862_v9 = vld [vmem:[%s7347_s3 + $0x1a8] sm:$0xff] }
 0x37d   : > { %v6637_v58 = vpop.eup %5111  ;;  %v1206_v56 = vmul.f32 1.442695, %v1197_v27  ;;  %v3080_v46 = vpop.f32.mrb[106].mxu1 }
 0x37e   : > { %4251 = vmatmul.mubr.msk.f32.gmra.mrb[26].mxu0 %vm416_vm3, %v6637_v58  ;;  %v1185_v7 = vpop.xlane.xlu1 %1184  ;;  %2729 = vmax.xlane.f32.xlu1 %v2728_v39  ;;  %v4631_v32 = vpop.f32.mrb[107].mxu1  ;;  %v5019_v39 = vunpack.i.h.bf16 %v6348_v55  ;;  %v6683_v23 = vadd.f32 %v3862_v9, %v3080_v46 }
 0x37f   : > { %5117 = vpow2.f32 %v1206_v56  ;;  %v1198_v49 = vsub.f32 %v6286_v8, %v1185_v7  ;;  %4302 = vmatprep.mubr.msk.f32.mxu0 %vm5325_vm0, %v7391_v16  ;;  %v5018_v56 = vunpack.i.l.bf16 %v6348_v55  ;;  %v6666_v55 = vadd.f32 %v3861_v26, %v3075_v48 }
 0x380   : > { %7396 = vst [vmem:[#allocation27_spill] sm:$0xff] %v6683_v23  ;;  %v3106_v9 = vsel %vm416_vm3, %v6683_v23, -inf }
 0x381   : > { %v6653_v27 = vpop.eup %5113  ;;  %v1208_v8 = vmul.f32 1.442695, %v1198_v49  ;;  %v6657_v7 = vpop.f32.mrb[108].mxu1 }
 0x382   : > { %4303 = vmatmul.mubr.msk.f32.vlgmr.msra.gmra.mrb[28].mxu0 %vm416_vm3, %v6653_v27  ;;  %v1188_v32 = vpop.xlane.xlu0 %1187  ;;  %3095 = vmax.xlane.f32.xlu1 %v3094_v54  ;;  %v4634_v41 = vpop.f32.mrb[109].mxu1  ;;  %v4752_v54 = vpack.c.bf16 %v5019_v39, %v5018_v56  ;;  %v3864_v39 = vld [vmem:[%s7347_s3 + $0x1b8] sm:$0x1] }
 0x383   : > { %5119 = vpow2.f32 %v1208_v8  ;;  %4750 = vmatpush3.bf16.msra.mxu0 %v4749_v10  ;;  %v1199_v42 = vsub.f32 %v6293_v62, %v1188_v32  ;;  %4305 = vmatprep.mubr.msk.f32.mxu0 %vm5325_vm0, %v7391_v16  ;;  %v5024_v10 = vunpack.i.h.bf16 %v6410_v19  ;;  %v5023_v62 = vunpack.i.l.bf16 %v6410_v19 }
 0x384   : > { %4751 = vmatprep.subr.bf16.mxu0 %v7392_v2  ;;  %v3103_v41 = vsel %vm416_vm3, %v6666_v55, -inf }
 0x385   : > { %v6672_v49 = vpop.eup %5115  ;;  %v1210_v8 = vmul.f32 1.442695, %v1199_v42  ;;  %v3090_v32 = vpop.f32.mrb[110].mxu1  ;;  %v4755_v42 = vpack.c.bf16 %v5024_v10, %v5023_v62 }
 0x386   : > { %4306 = vmatmul.mubr.msk.f32.gmra.mrb[30].mxu0 %vm416_vm3, %v6672_v49  ;;  %v1191_v48 = vpop.xlane.xlu1 %1190  ;;  %3101 = vmax.xlane.f32.xlu1 %v3100_v59  ;;  %v4637_v19 = vpop.f32.mrb[111].mxu1 }
 0x387   : > { %5121 = vpow2.f32 %v1210_v8  ;;  %4753 = vmatpush3.bf16.msra.mxu0 %v4752_v54  ;;  %v1200_v26 = vsub.f32 %v6300_v12, %v1191_v48  ;;  %4308 = vmatprep.mubr.msk.f32.mxu0 %vm5325_vm0, %v7391_v16  ;;  %v6698_v54 = vadd.f32 %v3864_v39, %v3090_v32  ;;  %v3834_v8 = vld [vmem:[%s7347_s3 + $0x178] sm:$0xff] }
 0x388   : > { %4754 = vmatprep.subr.bf16.mxu0 %v7392_v2 }
 0x389   : > { %v6689_v56 = vpop.eup %5117  ;;  %v1212_v59 = vmul.f32 1.442695, %v1200_v26  ;;  %v3112_v48 = vsel %vm435_vm5, %v6698_v54, -inf }
 0x38a   : > { %4309 = vmatmul.mubr.msk.f32.gmra.mrb[32].mxu0 %vm416_vm3, %v6689_v56  ;;  %v1194_v12 = vpop.xlane.xlu1 %1193  ;;  %3104 = vmax.xlane.f32.xlu1 %v3103_v41  ;;  %v6719_v41 = vadd.f32 %v3834_v8, %v6544_v20 }
 0x38b   : > { %5123 = vpow2.f32 %v1212_v59  ;;  %4756 = vmatpush3.bf16.msra.mxu0 %v4755_v42  ;;  %v1201_v46 = vsub.f32 %v6307_v24, %v1194_v12  ;;  %4311 = vmatprep.mubr.msk.f32.mxu0 %vm5325_vm0, %v7391_v16  ;;  %v3863_v42 = vld [vmem:[%s7347_s3 + $0x1b0] sm:$0xff]  ;;  %v5028_v12 = vunpack.i.l.bf16 %v6432_v52 }
 0x38c   : > { %4370 = vmatprep.subr.mxu0 %v7391_v16  ;;  %v2725_v20 = vsel %vm416_vm3, %v6719_v41, -inf }
 0x38d   : > { %v6701_v10 = vpop.eup %5119  ;;  %v1214_v62 = vmul.f32 1.442695, %v1201_v46  ;;  %v6747_v46 = vadd.f32 %v3863_v42, %v6657_v7 }
 0x38e   : > { %4312 = vmatmul.mubr.msk.f32.gmra.mrb[34].mxu0 %vm416_vm3, %v6701_v10  ;;  %v1560_v24 = vpop.xlane.xlu1 %1559  ;;  %3107 = vmax.xlane.f32.xlu1 %v3106_v9 }
 0x38f   : > { %5125 = vpow2.f32 %v1214_v62  ;;  %4371 = vmatpush3.msk.msra.mxu0 %vm502_vm4, %v6355_v6  ;;  %v1579_v32 = vsub.f32 %v6314_v22, %v1560_v24  ;;  %4314 = vmatprep.mubr.msk.f32.mxu0 %vm5325_vm0, %v7391_v16  ;;  %v3859_v6 = vld [vmem:[%s7347_s3 + $0x190] sm:$0xff]  ;;  %7397 = vst [vmem:[#allocation28_spill] sm:$0xff] %v6747_v46  ;;  %v5034_v24 = vunpack.i.h.bf16 %v6364_v18  ;;  %v3109_v7 = vsel %vm416_vm3, %v6747_v46, -inf }
 0x390   : > { %4769 = vmatprep.subr.bf16.mxu0 %v7392_v2  ;;  %v6731_v39 = vadd.f32 %v3859_v6, %v6589_v43  ;;  %v5029_v43 = vunpack.i.h.bf16 %v6432_v52  ;;  %v5033_v52 = vunpack.i.l.bf16 %v6364_v18  ;;  %v5038_v18 = vunpack.i.l.bf16 %v6383_v37 }
 0x391   : > { %v6716_v26 = vpop.eup %5121  ;;  %v1586_v19 = vmul.f32 1.442695, %v1579_v32  ;;  %v5314_v32 = vld [vmem:[%s5494_s9 + $0x20] sm:$0xff] }
 0x392   : > { %4315 = vmatmul.mubr.msk.f32.gmra.mrb[36].mxu0 %vm416_vm3, %v6716_v26  ;;  %3113 = vmax.xlane.f32.xlu1 %v3112_v48  ;;  %v3097_v9 = vsel %vm416_vm3, %v6731_v39, -inf  ;;  %v4770_v8 = vpack.c.bf16 %v5029_v43, %v5028_v12  ;;  %v5315_v48 = vld [vmem:[%s5494_s9 + $0x28] sm:$0xff]  ;;  %v4773_v6 = vpack.c.bf16 %v5034_v24, %v5033_v52  ;;  %v6776_v24 = vpop.permute.xlu0 %2785  ;;  %s5334_s9 = smov 4  }
 0x393   : > { %5127 = vpow2.f32 %v1586_v19  ;;  %4317 = vmatprep.mubr.msk.f32.mxu0 %vm5325_vm0, %v7391_v16  ;;  %v5080_v19 = vpack.i.bf16 %v5315_v48, %v5314_v32 }
 0x395   : > { %v6728_v22 = vpop.eup %5123 }
 0x396   : > { %4318 = vmatmul.mubr.msk.f32.gmra.mrb[38].mxu0 %vm416_vm3, %v6728_v22  ;;  %2726 = vmax.xlane.f32.xlu0 %v2725_v20  ;;  %v5039_v20 = vunpack.i.h.bf16 %v6383_v37  ;;  %v1566_v42 = vpop.xlane.xlu1 %1565 }
 0x397   : > { %4320 = vmatprep.mubr.msk.f32.mxu0 %vm5325_vm0, %v7391_v16 }
 0x398   : > { %v4776_v43 = vpack.c.bf16 %v5039_v20, %v5038_v18 }
 0x399   : > { %v6742_v59 = vpop.eup %5125 }
 0x39a   : > { %4321 = vmatmul.mubr.msk.f32.gmra.mrb[40].mxu0 %vm416_vm3, %v6742_v59  ;;  %3098 = vmax.xlane.f32.xlu0 %v3097_v9  ;;  %v1569_v12 = vpop.xlane.xlu1 %1568 }
 0x39b   : > { %4372 = vmatprep.mubr.msk.f32.mxu0 %vm5325_vm0, %v7391_v16 }
 0x39d   : > { %v6755_v62 = vpop.eup %5127 }
 0x39e   : > { %4373 = vmatmul.mubr.msk.f32.vlgmr.msra.gmra.mrb[42].mxu0 %vm416_vm3, %v6755_v62  ;;  %3110 = vmax.xlane.f32.xlu0 %v3109_v7  ;;  %v1572_v9 = vpop.xlane.xlu1 %1571  ;;  %v1581_v7 = vsub.f32 %v6323_v60, %v1566_v42 }
 0x39f   : > { %4771 = vmatpush3.bf16.msra.mxu0 %v4770_v8  ;;  %4375 = vmatprep.mubr.msk.f32.mxu0 %vm5325_vm0, %v7391_v16  ;;  %v1583_v46 = vsub.f32 %v6344_v57, %v1572_v9 }
 0x3a0   : > { %4772 = vmatprep.subr.bf16.mxu0 %v7392_v2 }
 0x3a1   : > { %v1594_v60 = vmul.f32 1.442695, %v1583_v46 }
 0x3a3   : > { %4774 = vmatpush3.bf16.msra.mxu0 %v4773_v6  ;;  %5081 = vrot.lane.b32.xlu1 %v5080_v19, %s5333_s24  ;;  %v1590_v6 = vmul.f32 1.442695, %v1581_v7 }
 0x3a4   : > { %4775 = vmatprep.subr.bf16.mxu0 %v7392_v2 }
 0x3a6   : > { %v1578_v8 = vpop.xlane.xlu1 %1577 }
 0x3a7   : > { %4777 = vmatpush3.bf16.msra.mxu0 %v4776_v43  ;;  %v1585_v57 = vsub.f32 %v6353_v5, %v1578_v8 }
 0x3a8   : > { %4440 = vmatprep.subr.mxu0 %v7391_v16 }
 0x3a9   : > { %v1598_v7 = vmul.f32 1.442695, %v1585_v57 }
 0x3ab   : > { %4441 = vmatpush3.msk.msra.mxu0 %vm502_vm4, %v6446_v30  ;;  %v1582_v30 = vsub.f32 %v6330_v33, %v1569_v12  ;;  %v826_v33 = vsel %vm416_vm3, %v6540_v51, 0.0  ;;  %v832_v51 = vsel %vm416_vm3, %v6565_v28, 0.0 }
 0x3ac   : > { %4790 = vmatprep.subr.bf16.mxu0 %v7392_v2 }
 0x3ad   : > { %v1592_v43 = vmul.f32 1.442695, %v1582_v30 }
 0x3ae   : > { %v1947_v37 = vpop.xlane.xlu1 %1946 }
 0x3b2   : > { %v1950_v20 = vpop.xlane.xlu1 %1949 }
 0x3b4   : > { %3169 = vrot.lane.b32.xlu0 %v6333_v36, %s5333_s24  ;;  %s5335_s24 = smov 8  }
 0x3b6   : > { %v6784_v23 = vpop.xlane.xlu1 %1952 }
 0x3b7   : > { %v1563_v52 = vpop.xlane.xlu0 %1562 }
 0x3b8   : > { %v1580_v32 = vsub.f32 %v6387_v38, %v1563_v52 }
 0x3ba   : > { %v1588_v48 = vmul.f32 1.442695, %v1580_v32 }
 0x3bb   : > { %v1575_v19 = vpop.xlane.xlu0 %1574 }
 0x3bc   : > { %5129 = vpow2.f32 %v1588_v48  ;;  %v1584_v38 = vsub.f32 %v6398_v61, %v1575_v19  ;;  %v835_v19 = vsel %vm416_vm3, %v6582_v35, 0.0  ;;  %v829_v35 = vsel %vm416_vm3, %v6552_v21, 0.0 }
 0x3bd   : > { %5131 = vpow2.f32 %v1590_v6  ;;  %v1216_v21 = vsel %vm416_vm3, %v6653_v27, 0.0  ;;  %v5043_v27 = vunpack.i.l.bf16 %v6402_v3 }
 0x3be   : > { %5133 = vpow2.f32 %v1592_v43  ;;  %v6791_v52 = vpop.xlane.xlu1 %1958  ;;  %v1596_v9 = vmul.f32 1.442695, %v1584_v38  ;;  %v1965_v38 = vsub.f32 %v6378_v29, %v1950_v20  ;;  %v1966_v20 = vsub.f32 %v6392_v47, %v6784_v23 }
 0x3bf   : > { %v1944_v18 = vpop.xlane.xlu0 %1943  ;;  %5135 = vpow2.f32 %v1594_v60  ;;  %v844_v47 = vsel %vm435_vm5, %v6637_v58, 0.0  ;;  %v1968_v58 = vsub.f32 %v6419_v45, %v6791_v52  ;;  %v1234_v45 = vsel %vm435_vm5, %v6742_v59, 0.0 }
 0x3c0   : > { %5137 = vpow2.f32 %v1596_v9  ;;  %v1963_v32 = vsub.f32 %v6412_v17, %v1944_v18  ;;  %v1964_v17 = vsub.f32 %v6366_v14, %v1947_v37  ;;  %v838_v14 = vsel %vm416_vm3, %v6606_v53, 0.0 }
 0x3c1   : > { %5139 = vpow2.f32 %v1598_v7  ;;  %v841_v53 = vsel %vm416_vm3, %v6623_v15, 0.0  ;;  %v1974_v29 = vmul.f32 1.442695, %v1965_v38  ;;  %v1222_v15 = vsel %vm416_vm3, %v6689_v56, 0.0 }
 0x3c2   : > { %v1970_v30 = vmul.f32 1.442695, %v1963_v32  ;;  %v1972_v37 = vmul.f32 1.442695, %v1964_v17  ;;  %v1976_v23 = vmul.f32 1.442695, %v1966_v20  ;;  %v5049_v32 = vunpack.i.h.bf16 %v6465_v13 }
 0x3c3   : > { %v6786_v36 = vpop.xlane.xlu0 %1955  ;;  %v5054_v17 = vunpack.i.h.bf16 %v6421_v31 }
 0x3c4   : > { %5141 = vpow2.f32 %v1970_v30  ;;  %v1967_v7 = vsub.f32 %v6425_v40, %v6786_v36  ;;  %v1228_v40 = vsel %vm416_vm3, %v6716_v26, 0.0  ;;  %v5053_v26 = vunpack.i.l.bf16 %v6421_v31 }
 0x3c5   : > { %5143 = vpow2.f32 %v1972_v37  ;;  %v1225_v31 = vsel %vm416_vm3, %v6701_v10, 0.0 }
 0x3c6   : > { %v6789_v42 = vpop.eup %5129  ;;  %5145 = vpow2.f32 %v1974_v29  ;;  %v1978_v36 = vmul.f32 1.442695, %v1967_v7 }
 0x3c7   : > { %4376 = vmatmul.mubr.msk.f32.gmra.mrb[44].mxu0 %vm416_vm3, %v6789_v42  ;;  %v6797_v12 = vpop.xlane.xlu0 %1961  ;;  %827 = vadd.xlane.f32.xlu1 %v826_v33  ;;  %v6802_v61 = vpop.eup %5131  ;;  %5147 = vpow2.f32 %v1976_v23 }
 0x3c8   : > { %4378 = vmatprep.mubr.msk.f32.mxu0 %vm5325_vm0, %v7391_v16  ;;  %v6815_v8 = vpop.eup %5133  ;;  %5149 = vpow2.f32 %v1978_v36  ;;  %v1969_v52 = vsub.f32 %v6434_v11, %v6797_v12  ;;  %v1603_v11 = vsel %vm416_vm3, %v6789_v42, 0.0  ;;  %v1231_v12 = vsel %vm416_vm3, %v6728_v22, 0.0 }
 0x3c9   : > { %v6826_v43 = vpop.eup %5135 }
 0x3ca   : > { %v6804_v46 = vpop.xlane.xlu1 %2330  ;;  %v6841_v33 = vpop.eup %5137  ;;  %v1982_v59 = vmul.f32 1.442695, %v1969_v52 }
 0x3cb   : > { %4379 = vmatmul.mubr.msk.f32.gmra.mrb[46].mxu0 %vm416_vm3, %v6802_v61  ;;  %833 = vadd.xlane.f32.xlu1 %v832_v51  ;;  %v6811_v5 = vpop.xlane.xlu0 %2327  ;;  %v6855_v9 = vpop.eup %5139  ;;  %v5044_v51 = vunpack.i.h.bf16 %v6402_v3  ;;  %v2348_v22 = vsub.f32 %v6452_v50, %v6804_v46  ;;  %v1615_v50 = vsel %vm416_vm3, %v6841_v33, 0.0 }
 0x3cc   : > { %4381 = vmatprep.mubr.msk.f32.mxu0 %vm5325_vm0, %v7391_v16  ;;  %v2347_v10 = vsub.f32 %v6448_v34, %v6811_v5  ;;  %v1609_v34 = vsel %vm416_vm3, %v6815_v8, 0.0  ;;  %v1600_v5 = vsel %vm416_vm3, %v6755_v62, 0.0  ;;  %v1606_v62 = vsel %vm416_vm3, %v6802_v61, 0.0 }
 0x3cd   : > { %v4791_v56 = vpack.c.bf16 %v5044_v51, %v5043_v27  ;;  %v2356_v46 = vmul.f32 1.442695, %v2348_v22 }
 0x3ce   : > { %v5072_v48 = vpop.permute.xlu1 %5071  ;;  %v6869_v3 = vpop.eup %5141  ;;  %v2354_v42 = vmul.f32 1.442695, %v2347_v10 }
 0x3cf   : > { %v5074_v28 = vunpack.i.h.bf16 %v5072_v48  ;;  %v5073_v6 = vunpack.i.l.bf16 %v5072_v48  ;;  %4382 = vmatmul.mubr.msk.f32.gmra.mrb[48].mxu0 %vm416_vm3, %v6815_v8  ;;  %836 = vadd.xlane.f32.xlu1 %v835_v19  ;;  %v6828_v60 = vpop.xlane.xlu0 %2333  ;;  %v5048_v48 = vunpack.i.l.bf16 %v6465_v13  ;;  %v6885_v13 = vpop.eup %5143 }
 0x3d0   : > { %4384 = vmatprep.mubr.msk.f32.mxu0 %vm5325_vm0, %v7391_v16 }
 0x3d1   : > { %v6824_v18 = vpack.c.bf16 %v5074_v28, %v5073_v6  ;;  %v1219_v28 = vsel %vm416_vm3, %v6672_v49, 0.0  ;;  %v4794_v6 = vpack.c.bf16 %v5049_v32, %v5048_v48  ;;  %v1980_v49 = vmul.f32 1.442695, %v1968_v58 }
 0x3d2   : > { %v1618_v48 = vsel %vm435_vm5, %v6855_v9, 0.0 }
 0x3d3   : > { %4385 = vmatmul.mubr.msk.f32.gmra.mrb[50].mxu0 %vm416_vm3, %v6826_v43  ;;  %4845 = vmatpush3.bf16.msra.mxu1 %v6824_v18  ;;  %v6851_v57 = vpop.xlane.xlu0 %2336  ;;  %5151 = vpow2.f32 %v1980_v49 }
 0x3d4   : > { %830 = vadd.xlane.f32.xlu0 %v829_v35  ;;  %839 = vadd.xlane.f32.xlu1 %v838_v14  ;;  %v5146_v35 = vpop.eup %5145  ;;  %v4797_v14 = vpack.c.bf16 %v5054_v17, %v5053_v26  ;;  %5153 = vpow2.f32 %v1982_v59  ;;  %v2350_v20 = vsub.f32 %v6474_v0, %v6851_v57  ;;  %v7398_v57 = vld [vmem:[#allocation19_spill] sm:$0xff] }
 0x3d5   : > { %4387 = vmatprep.mubr.msk.f32.mxu0 %vm5325_vm0, %v7391_v16  ;;  %4842 = vmatprep.subr.bf16.mxu1 %v7392_v2  ;;  %v6914_v38 = vpop.eup %5147  ;;  %5155 = vpow2.f32 %v2354_v42  ;;  %v5058_v23 = vunpack.i.l.bf16 %v7398_v57 }
 0x3d6   : > { %5157 = vpow2.f32 %v2356_v46  ;;  %v2360_v7 = vmul.f32 1.442695, %v2350_v20  ;;  %v1993_v59 = vsel %vm416_vm3, %v6914_v38, 0.0  ;;  %v7405_v20 = vld [vmem:[#allocation23_spill] sm:$0xff] }
 0x3d7   : > { %4388 = vmatmul.mubr.msk.f32.gmra.mrb[52].mxu0 %vm416_vm3, %v6841_v33  ;;  %v6873_v19 = vpop.xlane.xlu0 %2339 }
 0x3d8   : > { %1217 = vadd.xlane.f32.xlu0 %v1216_v21  ;;  %842 = vadd.xlane.f32.xlu1 %v841_v53  ;;  %v5150_v53 = vpop.eup %5149 }
 0x3d9   : > { %4390 = vmatprep.mubr.msk.f32.mxu0 %vm5325_vm0, %v7391_v16 }
 0x3db   : > { %4391 = vmatmul.mubr.msk.f32.gmra.mrb[54].mxu0 %vm416_vm3, %v6855_v9  ;;  %v1987_v9 = vsel %vm416_vm3, %v6885_v13, 0.0 }
 0x3dc   : > { %1223 = vadd.xlane.f32.xlu0 %v1222_v15  ;;  %845 = vadd.xlane.f32.xlu1 %v844_v47  ;;  %v5059_v47 = vunpack.i.h.bf16 %v7398_v57 }
 0x3dd   : > { %4442 = vmatprep.mubr.msk.f32.mxu0 %vm5325_vm0, %v7391_v16  ;;  %v6943_v8 = vpop.eup %5151 }
 0x3de   : > { %v6889_v30 = vpop.xlane.xlu0 %2345  ;;  %v5154_v0 = vpop.eup %5153 }
 0x3df   : > { %4443 = vmatmul.mubr.msk.f32.vlgmr.msra.gmra.mrb[56].mxu0 %vm416_vm3, %v6869_v3 }
 0x3e0   : > { %4792 = vmatpush3.bf16.msra.mxu0 %v4791_v56  ;;  %1229 = vadd.xlane.f32.xlu0 %v1228_v40  ;;  %v5156_v56 = vpop.eup %5155  ;;  %v7400_v40 = vld [vmem:[#allocation18_spill] sm:$0xff] }
 0x3e1   : > { %1220 = vadd.xlane.f32.xlu1 %v1219_v28  ;;  %4445 = vmatprep.mubr.msk.f32.mxu0 %vm5325_vm0, %v7391_v16  ;;  %v5064_v58 = vunpack.i.h.bf16 %v7400_v40  ;;  %v5063_v36 = vunpack.i.l.bf16 %v7400_v40  ;;  %v4812_v28 = vpack.c.bf16 %v5059_v47, %v5058_v23  ;;  %v5158_v17 = vpop.eup %5157 }
 0x3e2   : > { %4793 = vmatprep.subr.bf16.mxu0 %v7392_v2 }
 0x3e3   : > { %4446 = vmatmul.mubr.msk.f32.gmra.mrb[58].mxu0 %vm416_vm3, %v6885_v13  ;;  %v4815_v26 = vpack.c.bf16 %v5064_v58, %v5063_v36  ;;  %v2002_v13 = vsel %vm435_vm5, %v5154_v0, 0.0 }
 0x3e4   : > { %4795 = vmatpush3.bf16.msra.mxu0 %v4794_v6  ;;  %1235 = vadd.xlane.f32.xlu0 %v1234_v45  ;;  %v7401_v45 = vld [vmem:[#allocation20_spill] sm:$0xff] }
 0x3e5   : > { %1226 = vadd.xlane.f32.xlu1 %v1225_v31  ;;  %4448 = vmatprep.mubr.msk.f32.mxu0 %vm5325_vm0, %v7391_v16  ;;  %v5069_v49 = vunpack.i.h.bf16 %v7401_v45  ;;  %v5068_v52 = vunpack.i.l.bf16 %v7401_v45  ;;  %v7402_v31 = vld [vmem:[#allocation17_spill] sm:$0xff] }
 0x3e6   : > { %4796 = vmatprep.subr.bf16.mxu0 %v7392_v2  ;;  %v6903_v37 = vpop.xlane.xlu0 %2714 }
 0x3e7   : > { %4449 = vmatmul.mubr.msk.f32.gmra.mrb[60].mxu0 %vm416_vm3, %v5146_v35 }
 0x3e8   : > { %4798 = vmatpush3.bf16.msra.mxu0 %v4797_v14  ;;  %1604 = vadd.xlane.f32.xlu0 %v1603_v11 }
 0x3e9   : > { %1232 = vadd.xlane.f32.xlu1 %v1231_v12  ;;  %4451 = vmatprep.mubr.msk.f32.mxu0 %vm5325_vm0, %v7391_v16  ;;  %v4818_v12 = vpack.c.bf16 %v5069_v49, %v5068_v52 }
 0x3ea   : > { %4510 = vmatprep.subr.mxu0 %v7391_v16  ;;  %v6917_v21 = vpop.xlane.xlu0 %2717 }
 0x3eb   : > { %4452 = vmatmul.mubr.msk.f32.gmra.mrb[62].mxu0 %vm416_vm3, %v6914_v38  ;;  %v2371_v38 = vsel %vm416_vm3, %v5158_v17, 0.0 }
 0x3ec   : > { %4511 = vmatpush3.msk.msra.mxu0 %vm502_vm4, %v6481_v44  ;;  %1610 = vadd.xlane.f32.xlu0 %v1609_v34  ;;  %v2349_v44 = vsub.f32 %v6463_v1, %v6828_v60  ;;  %v1984_v1 = vsel %vm416_vm3, %v6869_v3, 0.0  ;;  %v1612_v60 = vsel %vm416_vm3, %v6826_v43, 0.0  ;;  %v1990_v3 = vsel %vm416_vm3, %v5146_v35, 0.0  ;;  %v7399_v43 = vld [vmem:[#allocation13_spill] sm:$0xff] }
 0x3ed   : > { %1601 = vadd.xlane.f32.xlu1 %v1600_v5  ;;  %4454 = vmatprep.mubr.msk.f32.mxu0 %vm5325_vm0, %v7391_v16  ;;  %v2351_v32 = vsub.f32 %v7399_v43, %v6873_v19  ;;  %v1996_v19 = vsel %vm416_vm3, %v5150_v53, 0.0  ;;  %v2353_v35 = vsub.f32 %v7402_v31, %v6889_v30  ;;  %v7403_v30 = vld [vmem:[#allocation22_spill] sm:$0xff]  ;;  %v7404_v5 = vld [vmem:[#allocation21_spill] sm:$0xff] }
 0x3ee   : > { %v6931_v29 = vpop.xlane.xlu0 %2720  ;;  %4811 = vmatprep.subr.bf16.mxu0 %v7392_v2  ;;  %v2358_v61 = vmul.f32 1.442695, %v2349_v44  ;;  %v2733_v34 = vsub.f32 %v7403_v30, %v6917_v21  ;;  %v1999_v21 = vsel %vm416_vm3, %v6943_v8, 0.0 }
 0x3ef   : > { %4455 = vmatmul.mubr.msk.f32.gmra.mrb[64].mxu0 %vm416_vm3, %v5150_v53  ;;  %v2362_v6 = vmul.f32 1.442695, %v2351_v32  ;;  %v2366_v42 = vmul.f32 1.442695, %v2353_v35 }
 0x3f0   : > { %1616 = vadd.xlane.f32.xlu0 %v1615_v50  ;;  %4457 = vmatprep.mubr.msk.f32.mxu0 %vm5325_vm0, %v7391_v16  ;;  %5159 = vpow2.f32 %v2358_v61  ;;  %v2742_v44 = vmul.f32 1.442695, %v2733_v34 }
 0x3f1   : > { %1607 = vadd.xlane.f32.xlu1 %v1606_v62  ;;  %5161 = vpow2.f32 %v2360_v7 }
 0x3f2   : > { %v5077_v51 = vpop.permute.xlu0 %5076  ;;  %5163 = vpow2.f32 %v2362_v6 }
 0x3f3   : > { %v5079_v33 = vunpack.i.h.bf16 %v5077_v51  ;;  %v5078_v27 = vunpack.i.l.bf16 %v5077_v51  ;;  %4458 = vmatmul.mubr.msk.f32.gmra.mrb[66].mxu0 %vm416_vm3, %v6943_v8  ;;  %v2734_v51 = vsub.f32 %v7405_v20, %v6931_v29  ;;  %v7406_v8 = vld [vmem:[#allocation24_spill] sm:$0xff] }
 0x3f4   : > { %1985 = vadd.xlane.f32.xlu0 %v1984_v1  ;;  %4460 = vmatprep.mubr.msk.f32.mxu0 %vm5325_vm0, %v7391_v16  ;;  %v2368_v1 = vsel %vm416_vm3, %v5156_v56, 0.0 }
 0x3f5   : > { %v6955_v15 = vpack.c.bf16 %v5079_v33, %v5078_v27  ;;  %1613 = vadd.xlane.f32.xlu1 %v1612_v60  ;;  %v2744_v60 = vmul.f32 1.442695, %v2734_v51 }
 0x3f7   : > { %4461 = vmatmul.mubr.msk.f32.gmra.mrb[68].mxu0 %vm416_vm3, %v5154_v0  ;;  %4846 = vmatpush3.bf16.msra.mxu1 %v6955_v15 }
 0x3f8   : > { %1991 = vadd.xlane.f32.xlu0 %v1990_v3  ;;  %4512 = vmatprep.mubr.msk.f32.mxu0 %vm5325_vm0, %v7391_v16 }
 0x3f9   : > { %1619 = vadd.xlane.f32.xlu1 %v1618_v48  ;;  %4843 = vmatprep.subr.bf16.mxu1 %v7392_v2 }
 0x3fa   : > { %v5160_v10 = vpop.eup %5159 }
 0x3fb   : > { %4513 = vmatmul.mubr.msk.f32.vlgmr.msra.gmra.mrb[70].mxu0 %vm416_vm3, %v5156_v56  ;;  %v5162_v50 = vpop.eup %5161  ;;  %v2374_v47 = vsel %vm416_vm3, %v5160_v10, 0.0 }
 0x3fc   : > { %4813 = vmatpush3.bf16.msra.mxu0 %v4812_v28  ;;  %1997 = vadd.xlane.f32.xlu0 %v1996_v19  ;;  %v2377_v33 = vsel %vm416_vm3, %v5162_v50, 0.0  ;;  %v5164_v61 = vpop.eup %5163 }
 0x3fd   : > { %1988 = vadd.xlane.f32.xlu1 %v1987_v9  ;;  %4515 = vmatprep.mubr.msk.f32.mxu0 %vm5325_vm0, %v7391_v16  ;;  %v2380_v32 = vsel %vm416_vm3, %v5164_v61, 0.0 }
 0x3fe   : > { %4814 = vmatprep.subr.bf16.mxu0 %v7392_v2 }
 0x3ff   : > { %4516 = vmatmul.mubr.msk.f32.gmra.mrb[72].mxu0 %vm416_vm3, %v5158_v17  ;;  %v2343_v14 = vpop.xlane.xlu1 %2342 }
 0x400   : > { %4816 = vmatpush3.bf16.msra.mxu0 %v4815_v26  ;;  %v2352_v11 = vsub.f32 %v6568_v63, %v2343_v14  ;;  %2003 = vadd.xlane.f32.xlu0 %v2002_v13  ;;  %v2732_v63 = vsub.f32 %v7404_v5, %v6903_v37 }
 0x401   : > { %1994 = vadd.xlane.f32.xlu1 %v1993_v59  ;;  %4518 = vmatprep.mubr.msk.f32.mxu0 %vm5325_vm0, %v7391_v16 }
 0x402   : > { %v2364_v22 = vmul.f32 1.442695, %v2352_v11  ;;  %4817 = vmatprep.subr.bf16.mxu0 %v7392_v2  ;;  %v2740_v62 = vmul.f32 1.442695, %v2732_v63 }
 0x403   : > { %4519 = vmatmul.mubr.msk.f32.gmra.mrb[74].mxu0 %vm416_vm3, %v5160_v10  ;;  %v2712_v53 = vpop.xlane.xlu1 %2711 }
 0x404   : > { %5165 = vpow2.f32 %v2364_v22  ;;  %4819 = vmatpush3.bf16.msra.mxu0 %v4818_v12  ;;  %v2731_v46 = vsub.f32 %v6585_v4, %v2712_v53  ;;  %2372 = vadd.xlane.f32.xlu0 %v2371_v38  ;;  %v7409_v38 = vld [vmem:[#allocation27_spill] sm:$0xff] }
 0x405   : > { %2000 = vadd.xlane.f32.xlu1 %v1999_v21  ;;  %4521 = vmatprep.mubr.msk.f32.mxu0 %vm5325_vm0, %v7391_v16  ;;  %5167 = vpow2.f32 %v2366_v42 }
 0x406   : > { %v2738_v37 = vmul.f32 1.442695, %v2731_v46  ;;  %4580 = vmatprep.subr.mxu0 %v7391_v16 }
 0x407   : > { %4522 = vmatmul.mubr.msk.f32.gmra.mrb[76].mxu0 %vm416_vm3, %v5162_v50  ;;  %v2724_v4 = vpop.xlane.xlu1 %2723 }
 0x408   : > { %5169 = vpow2.f32 %v2738_v37  ;;  %4581 = vmatpush3.msk.msra.mxu0 %vm502_vm4, %v6776_v24  ;;  %v2735_v27 = vsub.f32 %v7406_v8, %v2724_v4  ;;  %2378 = vadd.xlane.f32.xlu0 %v2377_v33  ;;  %v7407_v24 = vld [vmem:[#allocation25_spill] sm:$0xff]  ;;  %v7410_v37 = vld [vmem:[#allocation28_spill] sm:$0xff] }
 0x409   : > { %2369 = vadd.xlane.f32.xlu1 %v2368_v1  ;;  %4524 = vmatprep.mubr.msk.f32.mxu0 %vm5325_vm0, %v7391_v16  ;;  %5171 = vpow2.f32 %v2742_v44 }
 0x40a   : > { %v2746_v29 = vmul.f32 1.442695, %v2735_v27  ;;  %4832 = vmatprep.subr.bf16.mxu0 %v7392_v2  ;;  %5173 = vpow2.f32 %v2740_v62 }
 0x40b   : > { %4525 = vmatmul.mubr.msk.f32.gmra.mrb[78].mxu0 %vm416_vm3, %v5164_v61  ;;  %v2730_v0 = vpop.xlane.xlu1 %2729 }
 0x40c   : > { %v2737_v57 = vsub.f32 %v7407_v24, %v2730_v0  ;;  %4527 = vmatprep.mubr.msk.f32.mxu0 %vm5325_vm0, %v7391_v16  ;;  %5175 = vpow2.f32 %v2746_v29 }
 0x40d   : > { %2375 = vadd.xlane.f32.xlu1 %v2374_v47  ;;  %5177 = vpow2.f32 %v2744_v60 }
 0x40e   : > { %v5166_v23 = vpop.eup %5165  ;;  %v2750_v7 = vmul.f32 1.442695, %v2737_v57  ;;  %v7411_v57 = vld [vmem:[#allocation2_spill] sm:$0xff] }
 0x40f   : > { %4528 = vmatmul.mubr.msk.f32.gmra.mrb[80].mxu0 %vm416_vm3, %v5166_v23  ;;  %v3096_v3 = vpop.xlane.xlu1 %3095  ;;  %v2383_v43 = vsel %vm416_vm3, %v5166_v23, 0.0  ;;  %v5168_v48 = vpop.eup %5167  ;;  %v478_v47 = vsel %vm435_vm5, %v7411_v57, 0.0 }
 0x410   : > { %2384 = vadd.xlane.f32.xlu0 %v2383_v43  ;;  %4530 = vmatprep.mubr.msk.f32.mxu0 %vm5325_vm0, %v7391_v16  ;;  %5179 = vpow2.f32 %v2750_v7  ;;  %v2386_v28 = vsel %vm435_vm5, %v5168_v48, 0.0 }
 0x411   : > { %2381 = vadd.xlane.f32.xlu1 %v2380_v32 }
 0x412   : > { %v5170_v56 = vpop.eup %5169 }
 0x413   : > { %4531 = vmatmul.mubr.msk.f32.gmra.mrb[82].mxu0 %vm416_vm3, %v5168_v48  ;;  %v3102_v40 = vpop.xlane.xlu1 %3101  ;;  %v2752_v58 = vsel %vm416_vm3, %v5170_v56, 0.0  ;;  %v5172_v36 = vpop.eup %5171 }
 0x414   : > { %2753 = vadd.xlane.f32.xlu0 %v2752_v58  ;;  %4582 = vmatprep.mubr.msk.f32.mxu0 %vm5325_vm0, %v7391_v16  ;;  %v5174_v19 = vpop.eup %5173  ;;  %v2758_v9 = vsel %vm416_vm3, %v5172_v36, 0.0 }
 0x415   : > { %2387 = vadd.xlane.f32.xlu1 %v2386_v28  ;;  %v2755_v26 = vsel %vm416_vm3, %v5174_v19, 0.0 }
 0x416   : > { %v5176_v17 = vpop.eup %5175 }
 0x417   : > { %4583 = vmatmul.mubr.msk.f32.vlgmr.msra.gmra.mrb[84].mxu0 %vm416_vm3, %v5170_v56  ;;  %v3105_v6 = vpop.xlane.xlu1 %3104  ;;  %v5178_v45 = vpop.eup %5177  ;;  %v2764_v52 = vsel %vm416_vm3, %v5176_v17, 0.0 }
 0x418   : > { %4834 = vmatpush3.bf16.msra.mxu0 %v6824_v18  ;;  %2759 = vadd.xlane.f32.xlu0 %v2758_v9  ;;  %v2761_v18 = vsel %vm416_vm3, %v5178_v45, 0.0 }
 0x419   : > { %2756 = vadd.xlane.f32.xlu1 %v2755_v26  ;;  %4585 = vmatprep.mubr.msk.f32.mxu0 %vm5325_vm0, %v7391_v16 }
 0x41a   : > { %4835 = vmatprep.subr.bf16.mxu0 %v7392_v2  ;;  %v7037_v31 = vpop.eup %5179 }
 0x41b   : > { %4586 = vmatmul.mubr.msk.f32.gmra.mrb[86].mxu0 %vm416_vm3, %v5174_v19  ;;  %v3108_v49 = vpop.xlane.xlu1 %3107  ;;  %v2770_v14 = vsel %vm435_vm5, %v7037_v31, 0.0 }
 0x41c   : > { %4837 = vmatpush3.bf16.msra.mxu0 %v6955_v15  ;;  %2765 = vadd.xlane.f32.xlu0 %v2764_v52  ;;  %v3115_v15 = vsub.f32 %v6630_v25, %v3096_v3  ;;  %v3119_v50 = vsub.f32 %v7409_v38, %v3108_v49 }
 0x41d   : > { %2762 = vadd.xlane.f32.xlu1 %v2761_v18  ;;  %4588 = vmatprep.mubr.msk.f32.mxu0 %vm5325_vm0, %v7391_v16 }
 0x41e   : > { %4838 = vmatprep.subr.bf16.mxu0 %v7392_v2  ;;  %v3122_v34 = vmul.f32 1.442695, %v3115_v15 }
 0x41f   : > { %4589 = vmatmul.mubr.msk.f32.gmra.mrb[88].mxu0 %vm416_vm3, %v5172_v36  ;;  %v3114_v35 = vpop.xlane.xlu1 %3113 }
 0x420   : > { %v3121_v13 = vsub.f32 %v6698_v54, %v3114_v35  ;;  %2771 = vadd.xlane.f32.xlu0 %v2770_v14  ;;  %4591 = vmatprep.mubr.msk.f32.mxu0 %vm5325_vm0, %v7391_v16  ;;  %v7408_v54 = vld [vmem:[#allocation26_spill] sm:$0xff] }
 0x421   : > { %v3117_v22 = vsub.f32 %v7408_v54, %v3102_v40 }
 0x422   : > { %v3134_v11 = vmul.f32 1.442695, %v3121_v13 }
 0x423   : > { %4592 = vmatmul.mubr.msk.f32.gmra.mrb[90].mxu0 %vm416_vm3, %v5178_v45  ;;  %v2727_v59 = vpop.xlane.xlu0 %2726  ;;  %v5082_v10 = vpop.permute.xlu1 %5081  ;;  %v3126_v53 = vmul.f32 1.442695, %v3117_v22 }
 0x424   : > { %v2736_v2 = vsub.f32 %v6719_v41, %v2727_v59  ;;  %4594 = vmatprep.mubr.msk.f32.mxu0 %vm5325_vm0, %v7391_v16  ;;  %v5084_v12 = vunpack.i.h.bf16 %v5082_v10  ;;  %v5083_v30 = vunpack.i.l.bf16 %v5082_v10  ;;  %5181 = vpow2.f32 %v3134_v11 }
 0x425   : > { %v3118_v41 = vsub.f32 %v6666_v55, %v3105_v6 }
 0x426   : > { %v2748_v42 = vmul.f32 1.442695, %v2736_v2  ;;  %v4839_v5 = vpack.c.bf16 %v5084_v12, %v5083_v30 }
 0x427   : > { %4595 = vmatmul.mubr.msk.f32.gmra.mrb[92].mxu0 %vm416_vm3, %v5176_v17  ;;  %v3099_v25 = vpop.xlane.xlu0 %3098  ;;  %v3128_v44 = vmul.f32 1.442695, %v3118_v41 }
 0x428   : > { %5183 = vpow2.f32 %v2748_v42  ;;  %v3116_v63 = vsub.f32 %v6731_v39, %v3099_v25  ;;  %4847 = vmatpush3.bf16.msra.mxu1 %v4839_v5  ;;  %4840 = vmatpush3.bf16.msra.mxu0 %v4839_v5  ;;  %v3130_v39 = vmul.f32 1.442695, %v3119_v50 }
 0x429   : > { %4844 = vmatprep.subr.mxu1 %v7391_v16  ;;  %4597 = vmatprep.mubr.msk.f32.mxu0 %vm5325_vm0, %v7391_v16  ;;  %5185 = vpow2.f32 %v3122_v34 }
 0x42a   : > { %v3124_v46 = vmul.f32 1.442695, %v3116_v63  ;;  %4650 = vmatprep.subr.mxu0 %v7391_v16 }
 0x42b   : > { %v3111_v21 = vpop.xlane.xlu0 %3110 }
 0x42c   : > { %5187 = vpow2.f32 %v3124_v46  ;;  %v3120_v62 = vsub.f32 %v7410_v37, %v3111_v21 }
 0x42d   : > { %5189 = vpow2.f32 %v3126_v53 }
 0x42e   : > { %v5182_v20 = vpop.eup %5181  ;;  %5191 = vpow2.f32 %v3128_v44  ;;  %v3132_v4 = vmul.f32 1.442695, %v3120_v62 }
 0x42f   : > { %v3170_v55 = vpop.permute.xlu0 %3169  ;;  %5193 = vpow2.f32 %v3130_v39  ;;  %v3154_v28 = vsel %vm435_vm5, %v5182_v20, 0.0 }
 0x430   : > { %4848 = vmatpush3.msk.msra.mxu1 %vm502_vm4, %v3170_v55  ;;  %4651 = vmatpush3.msk.msra.mxu0 %vm502_vm4, %v3170_v55  ;;  %5195 = vpow2.f32 %v3132_v4 }
 0x431   : > { %4671 = vmatmul.mubr.msk.f32.vlgmr.msra.gmra.mrb[112].mxu1 %vm416_vm3, %v5182_v20 }
 0x432   : > { %v5184_v51 = vpop.eup %5183 }
 0x433   : > { %4598 = vmatmul.mubr.msk.f32.gmra.mrb[94].mxu0 %vm416_vm3, %v5184_v51  ;;  %v2767_v33 = vsel %vm416_vm3, %v5184_v51, 0.0  ;;  %v5186_v8 = vpop.eup %5185 }
 0x434   : > { %2768 = vadd.xlane.f32.xlu1 %v2767_v33  ;;  %4600 = vmatprep.mubr.msk.f32.mxu0 %vm5325_vm0, %v7391_v16  ;;  %v3136_v61 = vsel %vm416_vm3, %v5186_v8, 0.0 }
 0x436   : > { %v5188_v27 = vpop.eup %5187 }
 0x437   : > { %4601 = vmatmul.mubr.msk.f32.gmra.mrb[96].mxu0 %vm416_vm3, %v7037_v31  ;;  %v3139_v1 = vsel %vm416_vm3, %v5188_v27, 0.0  ;;  %v5190_v29 = vpop.eup %5189 }
 0x438   : > { %3140 = vadd.xlane.f32.xlu0 %v3139_v1  ;;  %3137 = vadd.xlane.f32.xlu1 %v3136_v61  ;;  %v5192_v24 = vpop.eup %5191  ;;  %v3142_v23 = vsel %vm416_vm3, %v5190_v29, 0.0 }
 0x439   : > { %v962_v60 = vpop.f32.mrb[14].mxu0  ;;  %4652 = vmatprep.mubr.msk.f32.mxu0 %vm5325_vm0, %v7391_v16  ;;  %v5194_v7 = vpop.eup %5193  ;;  %v3145_v32 = vsel %vm416_vm3, %v5192_v24, 0.0 }
 0x43a   : > { %v4234_v0 = vpop.f32.mrb[15].mxu0  ;;  %v3148_v48 = vsel %vm416_vm3, %v5194_v7, 0.0  ;;  %v5196_v56 = vpop.eup %5195 }
 0x43b   : > { %4653 = vmatmul.mubr.msk.f32.vlgmr.msra.gmra.mrb[98].mxu0 %vm416_vm3, %v5186_v8  ;;  %v3151_v36 = vsel %vm416_vm3, %v5196_v56, 0.0 }
 0x43c   : > { %479 = vadd.xlane.f32.xlu0 %v478_v47  ;;  %3143 = vadd.xlane.f32.xlu1 %v3142_v23 }
 0x43d   : > { %v7082_v3 = vpop.f32.mrb[16].mxu0  ;;  %4655 = vmatprep.mubr.msk.f32.mxu0 %vm5325_vm0, %v7391_v16 }
 0x43e   : > { %v4237_v43 = vpop.f32.mrb[17].mxu0 }
 0x43f   : > { %4656 = vmatmul.mubr.msk.f32.gmra.mrb[100].mxu0 %vm416_vm3, %v5188_v27 }
 0x440   : > { %3146 = vadd.xlane.f32.xlu0 %v3145_v32  ;;  %3149 = vadd.xlane.f32.xlu1 %v3148_v48 }
 0x441   : > { %v972_v40 = vpop.f32.mrb[18].mxu0  ;;  %4658 = vmatprep.mubr.msk.f32.mxu0 %vm5325_vm0, %v7391_v16 }
 0x442   : > { %v4240_v58 = vpop.f32.mrb[19].mxu0 }
 0x443   : > { %4659 = vmatmul.mubr.msk.f32.gmra.mrb[102].mxu0 %vm416_vm3, %v5190_v29 }
 0x444   : > { %3152 = vadd.xlane.f32.xlu0 %v3151_v36  ;;  %3155 = vadd.xlane.f32.xlu1 %v3154_v28 }
 0x445   : > { %v977_v19 = vpop.f32.mrb[20].mxu0  ;;  %4661 = vmatprep.mubr.msk.f32.mxu0 %vm5325_vm0, %v7391_v16 }
 0x446   : > { %v4243_v6 = vpop.f32.mrb[21].mxu0 }
 0x447   : > { %4662 = vmatmul.mubr.msk.f32.gmra.mrb[104].mxu0 %vm416_vm3, %v5192_v24 }
 0x448   : > { %4664 = vmatprep.mubr.msk.f32.mxu0 %vm5325_vm0, %v7391_v16 }
 0x449   : > { %v982_v9 = vpop.f32.mrb[22].mxu0 }
 0x44a   : > { %v4246_v17 = vpop.f32.mrb[23].mxu0 }
 0x44b   : > { %4665 = vmatmul.mubr.msk.f32.gmra.mrb[106].mxu0 %vm416_vm3, %v5194_v7 }
 0x44c   : > { %4667 = vmatprep.mubr.msk.f32.mxu0 %vm5325_vm0, %v7391_v16 }
 0x44d   : > { %v987_v26 = vpop.f32.mrb[24].mxu0 }
 0x44e   : > { %v4249_v45 = vpop.f32.mrb[25].mxu0 }
 0x44f   : > { %4668 = vmatmul.mubr.msk.f32.gmra.mrb[108].mxu0 %vm416_vm3, %v5196_v56 }
 0x451   : > { %v7103_v49 = vpop.f32.mrb[26].mxu0 }
 0x452   : > { %v4252_v52 = vpop.f32.mrb[27].mxu0 }
 0x454   : > { %v828_v31 = vpop.xlane.xlu1 %827 }
 0x455   : > { %5197 = vrcp.f32 %v828_v31  ;;  %v7105_v18 = vpop.f32.mrb[28].mxu0 }
 0x456   : > { %v4304_v35 = vpop.f32.mrb[29].mxu0 }
 0x458   : > { %v834_v14 = vpop.xlane.xlu1 %833 }
 0x459   : > { %5199 = vrcp.f32 %v834_v14  ;;  %v7107_v13 = vpop.f32.mrb[30].mxu0 }
 0x45a   : > { %v4307_v15 = vpop.f32.mrb[31].mxu0 }
 0x45c   : > { %v837_v11 = vpop.xlane.xlu1 %836 }
 0x45d   : > { %5201 = vrcp.f32 %v837_v11  ;;  %v7109_v16 = vpop.f32.mrb[32].mxu0 }
 0x45e   : > { %v4310_v59 = vpop.f32.mrb[33].mxu0 }
 0x45f   : > { %v5198_v10 = vpop.eup %5197 }
 0x460   : > { %v1003_v2 = vmul.f32 %v5198_v10, %v962_v60 }
 0x461   : > { %v831_v12 = vpop.xlane.xlu0 %830  ;;  %v840_v30 = vpop.xlane.xlu1 %839 }
 0x462   : > { %5203 = vrcp.f32 %v831_v12  ;;  %v7111_v34 = vpop.f32.mrb[34].mxu0  ;;  %3321 = vrot.lane.b32.xlu1 %v1003_v2, %s5334_s9 }
 0x463   : > { %v5200_v54 = vpop.eup %5199  ;;  %v4313_v22 = vpop.f32.mrb[35].mxu0  ;;  %5205 = vrcp.f32 %v840_v30 }
 0x464   : > { %v1005_v42 = vmul.f32 %v5200_v54, %v972_v40 }
 0x465   : > { %v1218_v5 = vpop.xlane.xlu0 %1217  ;;  %v843_v25 = vpop.xlane.xlu1 %842 }
 0x466   : > { %v1366_v63 = vpop.f32.mrb[36].mxu0  ;;  %3325 = vrot.lane.b32.xlu1 %v1005_v42, %s5334_s9  ;;  %5207 = vrcp.f32 %v843_v25 }
 0x467   : > { %v5202_v41 = vpop.eup %5201  ;;  %v4316_v53 = vpop.f32.mrb[37].mxu0  ;;  %5209 = vrcp.f32 %v1218_v5 }
 0x468   : > { %v1006_v38 = vmul.f32 %v5202_v41, %v977_v19 }
 0x469   : > { %v1224_v50 = vpop.xlane.xlu0 %1223  ;;  %v846_v46 = vpop.xlane.xlu1 %845 }
 0x46a   : > { %v1371_v21 = vpop.f32.mrb[38].mxu0  ;;  %3327 = vrot.lane.b32.xlu1 %v1006_v38, %s5334_s9  ;;  %5211 = vrcp.f32 %v846_v46 }
 0x46b   : > { %v4319_v44 = vpop.f32.mrb[39].mxu0  ;;  %5213 = vrcp.f32 %v1224_v50 }
 0x46c   : > { %v5204_v39 = vpop.eup %5203 }
 0x46d   : > { %v1230_v37 = vpop.xlane.xlu0 %1229  ;;  %v1376_v62 = vpop.f32.mrb[40].mxu0  ;;  %v1004_v55 = vmul.f32 %v5204_v39, %v7082_v3 }
 0x46e   : > { %v5206_v20 = vpop.eup %5205  ;;  %v1221_v51 = vpop.xlane.xlu1 %1220 }
 0x46f   : > { %v4322_v4 = vpop.f32.mrb[41].mxu0  ;;  %5215 = vrcp.f32 %v1221_v51  ;;  %3323 = vrot.lane.b32.xlu0 %v1004_v55, %s5334_s9  ;;  %v1007_v1 = vmul.f32 %v5206_v20, %v982_v9 }
 0x470   : > { %v5208_v33 = vpop.eup %5207  ;;  %5217 = vrcp.f32 %v1230_v37 }
 0x471   : > { %v1236_v8 = vpop.xlane.xlu0 %1235  ;;  %v1730_v27 = vpop.f32.mrb[42].mxu0  ;;  %v1008_v29 = vmul.f32 %v5208_v33, %v987_v26 }
 0x472   : > { %v1227_v61 = vpop.xlane.xlu1 %1226  ;;  %v4374_v60 = vpop.f32.mrb[43].mxu0 }
 0x473   : > { %v5210_v0 = vpop.eup %5209  ;;  %5219 = vrcp.f32 %v1227_v61  ;;  %3329 = vrot.lane.b32.xlu0 %v1007_v1, %s5334_s9  ;;  %3331 = vrot.lane.b32.xlu1 %v1008_v29, %s5334_s9 }
 0x474   : > { %v5212_v24 = vpop.eup %5211  ;;  %5221 = vrcp.f32 %v1236_v8  ;;  %v1387_v7 = vmul.f32 %v5210_v0, %v7105_v18 }
 0x475   : > { %v1605_v57 = vpop.xlane.xlu0 %1604  ;;  %v1009_v23 = vmul.f32 %v5212_v24, %v7103_v49  ;;  %v5214_v3 = vpop.eup %5213 }
 0x476   : > { %v1233_v47 = vpop.xlane.xlu1 %1232  ;;  %v1389_v40 = vmul.f32 %v5214_v3, %v7109_v16 }
 0x477   : > { %5223 = vrcp.f32 %v1233_v47  ;;  %3333 = vrot.lane.b32.xlu0 %v1009_v23, %s5334_s9  ;;  %3349 = vrot.lane.b32.xlu1 %v1387_v7, %s5335_s24 }
 0x479   : > { %v5216_v43 = vpop.eup %5215  ;;  %v1611_v32 = vpop.xlane.xlu0 %1610 }
 0x47a   : > { %v1602_v48 = vpop.xlane.xlu1 %1601  ;;  %v1388_v56 = vmul.f32 %v5216_v43, %v7107_v13  ;;  %v5218_v58 = vpop.eup %5217 }
 0x47b   : > { %5225 = vrcp.f32 %v1602_v48  ;;  %3353 = vrot.lane.b32.xlu1 %v1389_v40, %s5335_s24  ;;  %v1391_v6 = vmul.f32 %v5218_v58, %v1366_v63 }
 0x47c   : > { %3351 = vrot.lane.b32.xlu0 %v1388_v56, %s5335_s24  ;;  %5227 = vrcp.f32 %v1605_v57 }
 0x47d   : > { %v5220_v36 = vpop.eup %5219  ;;  %v1617_v17 = vpop.xlane.xlu0 %1616 }
 0x47e   : > { %v1608_v28 = vpop.xlane.xlu1 %1607  ;;  %v1390_v19 = vmul.f32 %v5220_v36, %v7111_v34  ;;  %v5222_v9 = vpop.eup %5221 }
 0x47f   : > { %3357 = vrot.lane.b32.xlu1 %v1391_v6, %s5335_s24  ;;  %v1393_v52 = vmul.f32 %v5222_v9, %v1376_v62  ;;  %5229 = vrcp.f32 %v1608_v28 }
 0x480   : > { %3355 = vrot.lane.b32.xlu0 %v1390_v19, %s5335_s24  ;;  %5231 = vrcp.f32 %v1611_v32 }
 0x481   : > { %v5224_v26 = vpop.eup %5223  ;;  %v1986_v18 = vpop.xlane.xlu0 %1985 }
 0x482   : > { %v1614_v45 = vpop.xlane.xlu1 %1613  ;;  %v1392_v49 = vmul.f32 %v5224_v26, %v1371_v21 }
 0x483   : > { %3361 = vrot.lane.b32.xlu1 %v1393_v52, %s5335_s24  ;;  %5233 = vrcp.f32 %v1614_v45 }
 0x484   : > { %3359 = vrot.lane.b32.xlu0 %v1392_v49, %s5335_s24  ;;  %5235 = vrcp.f32 %v1617_v17 }
 0x485   : > { %v5226_v31 = vpop.eup %5225  ;;  %v1992_v13 = vpop.xlane.xlu0 %1991 }
 0x486   : > { %v1771_v35 = vmul.f32 %v5226_v31, %v1730_v27  ;;  %v1620_v14 = vpop.xlane.xlu1 %1619  ;;  %v5228_v2 = vpop.eup %5227 }
 0x487   : > { %5237 = vrcp.f32 %v1620_v14 }
 0x488   : > { %3377 = vrot.lane.b32.xlu0 %v1771_v35, %s5336_s10  ;;  %5239 = vrcp.f32 %v1986_v18 }
 0x489   : > { %v1998_v11 = vpop.xlane.xlu0 %1997  ;;  %v5230_v54 = vpop.eup %5229 }
 0x48a   : > { %v1989_v15 = vpop.xlane.xlu1 %1988  ;;  %v5232_v41 = vpop.eup %5231 }
 0x48b   : > { %5241 = vrcp.f32 %v1989_v15 }
 0x48c   : > { %5243 = vrcp.f32 %v1992_v13 }
 0x48d   : > { %v7127_v59 = vpop.xlane.xlu0 %2003  ;;  %v5234_v44 = vpop.eup %5233 }
 0x48e   : > { %v1995_v16 = vpop.xlane.xlu1 %1994  ;;  %v5236_v20 = vpop.eup %5235 }
 0x48f   : > { %5245 = vrcp.f32 %v1995_v16 }
 0x490   : > { %5247 = vrcp.f32 %v1998_v11 }
 0x491   : > { %v7132_v22 = vpop.xlane.xlu0 %2372  ;;  %v5238_v27 = vpop.eup %5237 }
 0x492   : > { %v7129_v10 = vpop.xlane.xlu1 %2000  ;;  %v5240_v24 = vpop.eup %5239 }
 0x493   : > { %5249 = vrcp.f32 %v7129_v10 }
 0x494   : > { %5251 = vrcp.f32 %v7127_v59  ;;  %v7412_v59 = vld [vmem:[#allocation10_spill] sm:$0xff] }
 0x495   : > { %v7137_v46 = vpop.xlane.xlu0 %2378  ;;  %v5242_v3 = vpop.eup %5241 }
 0x496   : > { %v7134_v5 = vpop.xlane.xlu1 %2369  ;;  %v5244_v40 = vpop.eup %5243 }
 0x497   : > { %5253 = vrcp.f32 %v7134_v5 }
 0x498   : > { %5255 = vrcp.f32 %v7412_v59 }
 0x499   : > { %v5246_v9 = vpop.eup %5245  ;;  %5257 = vrcp.f32 %v7132_v22 }
 0x49a   : > { %v1735_v12 = vpop.f32.mrb[44].mxu0  ;;  %v7139_v21 = vpop.xlane.xlu1 %2375 }
 0x49b   : > { %v1772_v30 = vmul.f32 %v5228_v2, %v1735_v12  ;;  %v4377_v34 = vpop.f32.mrb[45].mxu0  ;;  %v5248_v31 = vpop.eup %5247 }
 0x49d   : > { %3379 = vrot.lane.b32.xlu1 %v1772_v30, %s5336_s10  ;;  %v7142_v55 = vpop.xlane.xlu0 %2384  ;;  %v5250_v11 = vpop.eup %5249 }
 0x49e   : > { %v1740_v42 = vpop.f32.mrb[46].mxu0  ;;  %v7145_v4 = vpop.xlane.xlu1 %2381 }
 0x49f   : > { %v1773_v25 = vmul.f32 %v5230_v54, %v1740_v42  ;;  %v4380_v63 = vpop.f32.mrb[47].mxu0  ;;  %v5252_v34 = vpop.eup %5251  ;;  %v7413_v42 = vld [vmem:[#allocation11_spill] sm:$0xff] }
 0x4a1   : > { %3381 = vrot.lane.b32.xlu0 %v1773_v25, %s5336_s10  ;;  %v7148_v61 = vpop.xlane.xlu0 %2753 }
 0x4a2   : > { %v1745_v53 = vpop.f32.mrb[48].mxu0  ;;  %v7150_v0 = vpop.xlane.xlu1 %2387 }
 0x4a3   : > { %v1774_v38 = vmul.f32 %v5232_v41, %v1745_v53  ;;  %v4383_v50 = vpop.f32.mrb[49].mxu0  ;;  %v5254_v41 = vpop.eup %5253  ;;  %v7414_v53 = vld [vmem:[#allocation12_spill] sm:$0xff] }
 0x4a5   : > { %3383 = vrot.lane.b32.xlu1 %v1774_v38, %s5336_s10  ;;  %v7153_v7 = vpop.xlane.xlu0 %2759 }
 0x4a6   : > { %v1750_v39 = vpop.f32.mrb[50].mxu0  ;;  %v7156_v32 = vpop.xlane.xlu1 %2756 }
 0x4a7   : > { %v1775_v37 = vmul.f32 %v5234_v44, %v1750_v39  ;;  %v4386_v62 = vpop.f32.mrb[51].mxu0  ;;  %v5256_v44 = vpop.eup %5255 }
 0x4a8   : > { %v7415_v62 = vld [vmem:[#allocation15_spill] sm:$0xff] }
 0x4a9   : > { %3385 = vrot.lane.b32.xlu0 %v1775_v37, %s5336_s10  ;;  %v7159_v36 = vpop.xlane.xlu0 %2765  ;;  %v5258_v37 = vpop.eup %5257 }
 0x4aa   : > { %v1755_v51 = vpop.f32.mrb[52].mxu0  ;;  %v7162_v6 = vpop.xlane.xlu1 %2762 }
 0x4ab   : > { %v1776_v33 = vmul.f32 %v5236_v20, %v1755_v51  ;;  %v4389_v8 = vpop.f32.mrb[53].mxu0 }
 0x4ac   : > { %v7416_v8 = vld [vmem:[#allocation3_spill] sm:$0xff] }
 0x4ad   : > { %3387 = vrot.lane.b32.xlu1 %v1776_v33, %s5336_s10  ;;  %v7166_v49 = vpop.xlane.xlu0 %2771 }
 0x4ae   : > { %v1760_v1 = vpop.f32.mrb[54].mxu0 }
 0x4af   : > { %v1777_v29 = vmul.f32 %v5238_v27, %v1760_v1  ;;  %v4392_v60 = vpop.f32.mrb[55].mxu0  ;;  %v613_v27 = vmul.f32 %v5256_v44, %v7416_v8 }
 0x4b1   : > { %3389 = vrot.lane.b32.xlu0 %v1777_v29, %s5336_s10 }
 0x4b2   : > { %v2114_v57 = vpop.f32.mrb[56].mxu0 }
 0x4b3   : > { %v2155_v47 = vmul.f32 %v5240_v24, %v2114_v57  ;;  %v4444_v23 = vpop.f32.mrb[57].mxu0  ;;  %v7418_v57 = vld [vmem:[#allocation14_spill] sm:$0xff] }
 0x4b5   : > { %3405 = vrot.lane.b32.xlu1 %v2155_v47, %s5337_s11 }
 0x4b6   : > { %v2119_v43 = vpop.f32.mrb[58].mxu0 }
 0x4b7   : > { %v2156_v48 = vmul.f32 %v5242_v3, %v2119_v43  ;;  %v4447_v56 = vpop.f32.mrb[59].mxu0  ;;  %v7419_v3 = vld [vmem:[#allocation16_spill] sm:$0xff] }
 0x4b8   : > { %v7420_v56 = vld [vmem:[#allocation5_spill] sm:$0xff] }
 0x4b9   : > { %3407 = vrot.lane.b32.xlu0 %v2156_v48, %s5337_s11 }
 0x4ba   : > { %v2124_v58 = vpop.f32.mrb[60].mxu0 }
 0x4bb   : > { %v2157_v28 = vmul.f32 %v5244_v40, %v2124_v58  ;;  %v4450_v19 = vpop.f32.mrb[61].mxu0 }
 0x4bd   : > { %3409 = vrot.lane.b32.xlu1 %v2157_v28, %s5337_s11 }
 0x4be   : > { %v2129_v17 = vpop.f32.mrb[62].mxu0 }
 0x4bf   : > { %v2158_v26 = vmul.f32 %v5246_v9, %v2129_v17  ;;  %v4453_v45 = vpop.f32.mrb[63].mxu0 }
 0x4c1   : > { %v7168_v52 = vpop.xlane.xlu1 %2768  ;;  %3411 = vrot.lane.b32.xlu0 %v2158_v26, %s5337_s11 }
 0x4c2   : > { %v2134_v18 = vpop.f32.mrb[64].mxu0 }
 0x4c3   : > { %v2159_v35 = vmul.f32 %v5248_v31, %v2134_v18  ;;  %v4456_v14 = vpop.f32.mrb[65].mxu0  ;;  %v7421_v31 = vld [vmem:[#allocation6_spill] sm:$0xff] }
 0x4c5   : > { %v7172_v13 = vpop.xlane.xlu0 %3140  ;;  %v7174_v15 = vpop.xlane.xlu1 %3137  ;;  %3413 = vrot.lane.b32.xlu1 %v2159_v35, %s5337_s11 }
 0x4c6   : > { %v2139_v16 = vpop.f32.mrb[66].mxu0 }
 0x4c7   : > { %v2160_v10 = vmul.f32 %v5250_v11, %v2139_v16  ;;  %v4459_v2 = vpop.f32.mrb[67].mxu0 }
 0x4c9   : > { %v480_v12 = vpop.xlane.xlu0 %479  ;;  %v7179_v30 = vpop.xlane.xlu1 %3143  ;;  %3415 = vrot.lane.b32.xlu0 %v2160_v10, %s5337_s11 }
 0x4ca   : > { %5259 = vrcp.f32 %v480_v12  ;;  %v2144_v54 = vpop.f32.mrb[68].mxu0 }
 0x4cb   : > { %5261 = vrcp.f32 %v7413_v42  ;;  %v2161_v5 = vmul.f32 %v5252_v34, %v2144_v54  ;;  %v4462_v25 = vpop.f32.mrb[69].mxu0  ;;  %v7422_v34 = vld [vmem:[#allocation4_spill] sm:$0xff] }
 0x4cc   : > { %5263 = vrcp.f32 %v7139_v21 }
 0x4cd   : > { %v7184_v63 = vpop.xlane.xlu1 %3149  ;;  %3417 = vrot.lane.b32.xlu1 %v2161_v5, %s5337_s11  ;;  %5265 = vrcp.f32 %v7414_v53  ;;  %v7202_v43 = vpop.xlane.xlu0 %3146 }
 0x4ce   : > { %v2498_v22 = vpop.f32.mrb[70].mxu0  ;;  %5267 = vrcp.f32 %v7137_v46  ;;  %v7417_v46 = vld [vmem:[#allocation9_spill] sm:$0xff] }
 0x4cf   : > { %v2539_v38 = vmul.f32 %v5254_v41, %v2498_v22  ;;  %v4514_v50 = vpop.f32.mrb[71].mxu0  ;;  %5269 = vrcp.f32 %v7415_v62 }
 0x4d0   : > { %5271 = vrcp.f32 %v7145_v4 }
 0x4d1   : > { %v7189_v39 = vpop.xlane.xlu1 %3155  ;;  %3433 = vrot.lane.b32.xlu0 %v2539_v38, %s5338_s12  ;;  %5273 = vrcp.f32 %v7418_v57  ;;  %v7210_v14 = vpop.xlane.xlu0 %3152  ;;  %v7423_v38 = vld [vmem:[#allocation7_spill] sm:$0xff] }
 0x4d2   : > { %v2503_v21 = vpop.f32.mrb[72].mxu0  ;;  %5275 = vrcp.f32 %v7419_v3 }
 0x4d3   : > { %v2540_v20 = vmul.f32 %v5258_v37, %v2503_v21  ;;  %v4517_v51 = vpop.f32.mrb[73].mxu0  ;;  %5277 = vrcp.f32 %v7142_v55  ;;  %v7424_v37 = vld [vmem:[#allocation8_spill] sm:$0xff] }
 0x4d4   : > { %v5260_v33 = vpop.eup %5259  ;;  %5279 = vrcp.f32 %v7150_v0 }
 0x4d5   : > { %v5262_v1 = vpop.eup %5261  ;;  %v3322_v29 = vpop.permute.xlu1 %3321  ;;  %3435 = vrot.lane.b32.xlu1 %v2540_v20, %s5338_s12  ;;  %v619_v60 = vmul.f32 %v5260_v33, %v7417_v46  ;;  %5281 = vrcp.f32 %v7148_v61 }
 0x4d6   : > { %v5264_v24 = vpop.eup %5263  ;;  %v7199_v47 = vsel %vm273_vm1, %v613_v27, %v3322_v29  ;;  %v2508_v23 = vpop.f32.mrb[74].mxu0  ;;  %v615_v40 = vmul.f32 %v5262_v1, %v7420_v56  ;;  %5283 = vrcp.f32 %v7156_v32 }
 0x4d7   : > { %v2541_v4 = vmul.f32 %v5264_v24, %v2508_v23  ;;  %v4520_v48 = vpop.f32.mrb[75].mxu0  ;;  %v5266_v58 = vpop.eup %5265  ;;  %5285 = vrcp.f32 %v7153_v7 }
 0x4d8   : > { %v5268_v19 = vpop.eup %5267  ;;  %v616_v18 = vmul.f32 %v5266_v58, %v7421_v31  ;;  %5287 = vrcp.f32 %v7162_v6 }
 0x4d9   : > { %v3326_v28 = vpop.permute.xlu1 %3325  ;;  %3437 = vrot.lane.b32.xlu0 %v2541_v4, %s5338_s12  ;;  %v5270_v35 = vpop.eup %5269  ;;  %5289 = vrcp.f32 %v7159_v36 }
 0x4da   : > { %v3512_v9 = vsel %vm273_vm1, %v615_v40, %v3326_v28  ;;  %v2513_v17 = vpop.f32.mrb[76].mxu0  ;;  %v5272_v11 = vpop.eup %5271  ;;  %v614_v54 = vmul.f32 %v5270_v35, %v7422_v34  ;;  %5291 = vrcp.f32 %v7168_v52 }
 0x4db   : > { %v2542_v26 = vmul.f32 %v5268_v19, %v2513_v17  ;;  %v4523_v45 = vpop.f32.mrb[77].mxu0  ;;  %v5274_v12 = vpop.eup %5273  ;;  %5293 = vrcp.f32 %v7166_v49 }
 0x4dc   : > { %v5276_v42 = vpop.eup %5275  ;;  %v617_v50 = vmul.f32 %v5274_v12, %v7423_v38  ;;  %5295 = vrcp.f32 %v7174_v15 }
 0x4dd   : > { %v3328_v55 = vpop.permute.xlu1 %3327  ;;  %3439 = vrot.lane.b32.xlu1 %v2542_v26, %s5338_s12  ;;  %v5278_v5 = vpop.eup %5277  ;;  %v618_v21 = vmul.f32 %v5276_v42, %v7424_v37  ;;  %5297 = vrcp.f32 %v7172_v13 }
 0x4de   : > { %v3513_v16 = vsel %vm273_vm1, %v616_v18, %v3328_v55  ;;  %v2518_v59 = vpop.f32.mrb[78].mxu0  ;;  %v5280_v62 = vpop.eup %5279  ;;  %5299 = vrcp.f32 %v7179_v30 }
 0x4df   : > { %v2543_v10 = vmul.f32 %v5272_v11, %v2518_v59  ;;  %v4526_v2 = vpop.f32.mrb[79].mxu0  ;;  %v5282_v29 = vpop.eup %5281  ;;  %5301 = vrcp.f32 %v7202_v43 }
 0x4e0   : > { %v5284_v7 = vpop.eup %5283  ;;  %5303 = vrcp.f32 %v7184_v63 }
 0x4e1   : > { %v3324_v0 = vpop.permute.xlu0 %3323  ;;  %3441 = vrot.lane.b32.xlu0 %v2543_v10, %s5338_s12  ;;  %v5286_v19 = vpop.eup %5285  ;;  %5305 = vrcp.f32 %v7210_v14 }
 0x4e2   : > { %v3511_v25 = vsel %vm273_vm1, %v614_v54, %v3324_v0  ;;  %v2523_v41 = vpop.f32.mrb[80].mxu0  ;;  %v5288_v36 = vpop.eup %5287  ;;  %5307 = vrcp.f32 %v7189_v39 }
 0x4e3   : > { %v2544_v22 = vmul.f32 %v5278_v5, %v2523_v41  ;;  %v4529_v53 = vpop.f32.mrb[81].mxu0  ;;  %v5290_v2 = vpop.eup %5289 }
 0x4e4   : > { %v5292_v5 = vpop.eup %5291 }
 0x4e5   : > { %v3330_v44 = vpop.permute.xlu0 %3329  ;;  %3443 = vrot.lane.b32.xlu1 %v2544_v22, %s5338_s12  ;;  %v3332_v20 = vpop.permute.xlu1 %3331 }
 0x4e6   : > { %v3514_v61 = vsel %vm273_vm1, %v617_v50, %v3330_v44  ;;  %v2528_v51 = vpop.f32.mrb[82].mxu0  ;;  %v3515_v33 = vsel %vm273_vm1, %v618_v21, %v3332_v20  ;;  %v5294_v53 = vpop.eup %5293 }
 0x4e7   : > { %v2545_v8 = vmul.f32 %v5280_v62, %v2528_v51  ;;  %v4532_v27 = vpop.f32.mrb[83].mxu0  ;;  %v5296_v49 = vpop.eup %5295 }
 0x4e8   : > { %v5298_v13 = vpop.eup %5297 }
 0x4e9   : > { %3445 = vrot.lane.b32.xlu0 %v2545_v8, %s5338_s12  ;;  %v3334_v1 = vpop.permute.xlu0 %3333  ;;  %v7226_v32 = vpop.permute.xlu1 %3349 }
 0x4ea   : > { %v3516_v46 = vsel %vm273_vm1, %v619_v60, %v3334_v1  ;;  %v2882_v24 = vpop.f32.mrb[84].mxu0  ;;  %v5300_v30 = vpop.eup %5299 }
 0x4eb   : > { %v2923_v57 = vmul.f32 %v5282_v29, %v2882_v24  ;;  %v4584_v23 = vpop.f32.mrb[85].mxu0  ;;  %v5302_v43 = vpop.eup %5301 }
 0x4ec   : > { %v5304_v29 = vpop.eup %5303 }
 0x4ed   : > { %v3354_v4 = vpop.permute.xlu1 %3353  ;;  %3461 = vrot.lane.b32.xlu1 %v2923_v57, %s5339_s13  ;;  %v5306_v57 = vpop.eup %5305 }
 0x4ee   : > { %v3352_v3 = vpop.permute.xlu0 %3351  ;;  %v7235_v56 = vsel %vm3517_vm6, %v3512_v9, %v3354_v4  ;;  %v2887_v40 = vpop.f32.mrb[86].mxu0 }
 0x4ef   : > { %v7232_v48 = vsel %vm3517_vm6, %v3511_v25, %v3352_v3  ;;  %v2924_v60 = vmul.f32 %v5284_v7, %v2887_v40  ;;  %v4587_v58 = vpop.f32.mrb[87].mxu0  ;;  %v5308_v14 = vpop.eup %5307 }
 0x4f1   : > { %v3358_v6 = vpop.permute.xlu1 %3357  ;;  %3463 = vrot.lane.b32.xlu0 %v2924_v60, %s5339_s13 }
 0x4f2   : > { %v3356_v28 = vpop.permute.xlu0 %3355  ;;  %v7243_v26 = vsel %vm3517_vm6, %v3514_v61, %v3358_v6  ;;  %v2892_v45 = vpop.f32.mrb[88].mxu0 }
 0x4f3   : > { %v7240_v17 = vsel %vm3517_vm6, %v3513_v16, %v3356_v28  ;;  %v2925_v31 = vmul.f32 %v5286_v19, %v2892_v45  ;;  %v4590_v9 = vpop.f32.mrb[89].mxu0 }
 0x4f5   : > { %v3362_v35 = vpop.permute.xlu1 %3361  ;;  %3465 = vrot.lane.b32.xlu1 %v2925_v31, %s5339_s13 }
 0x4f6   : > { %v3360_v18 = vpop.permute.xlu0 %3359  ;;  %v7250_v11 = vsel %vm3517_vm6, %v3516_v46, %v3362_v35  ;;  %v2897_v59 = vpop.f32.mrb[90].mxu0 }
 0x4f7   : > { %v7247_v55 = vsel %vm3517_vm6, %v3515_v33, %v3360_v18  ;;  %v2926_v16 = vmul.f32 %v5288_v36, %v2897_v59  ;;  %v4593_v10 = vpop.f32.mrb[91].mxu0 }
 0x4f9   : > { %3467 = vrot.lane.b32.xlu0 %v2926_v16, %s5339_s13 }
 0x4fa   : > { %v2902_v12 = vpop.f32.mrb[92].mxu0  ;;  %v3378_v7 = vpop.permute.xlu0 %3377 }
 0x4fb   : > { %v2927_v34 = vmul.f32 %v5290_v2, %v2902_v12  ;;  %v4596_v54 = vpop.f32.mrb[93].mxu0 }
 0x4fd   : > { %3469 = vrot.lane.b32.xlu1 %v2927_v34, %s5339_s13 }
 0x504   : > { %v3296_v42 = vpop.f32.mrb[112].mxu1 }
 0x505   : > { %v4672_v0 = vpop.f32.mrb[113].mxu1  ;;  %v3313_v3 = vmul.f32 %v5308_v14, %v3296_v42 }
 0x506   : > { %v2907_v25 = vpop.f32.mrb[94].mxu0 }
 0x507   : > { %v2928_v41 = vmul.f32 %v5292_v5, %v2907_v25  ;;  %v4599_v22 = vpop.f32.mrb[95].mxu0 }
 0x508   : > { %v3518_v22 = vsel %vm3517_vm6, %v7199_v47, %v7226_v32 }
 0x509   : > { %3471 = vrot.lane.b32.xlu0 %v2928_v41, %s5339_s13 }
 0x50a   : > { %v2912_v38 = vpop.f32.mrb[96].mxu0 }
 0x50b   : > { %v2929_v50 = vmul.f32 %v5294_v53, %v2912_v38  ;;  %v4602_v52 = vpop.f32.mrb[97].mxu0 }
 0x50d   : > { %3473 = vrot.lane.b32.xlu1 %v2929_v50, %s5339_s13  ;;  %v3526_v50 = vsel %vm3525_vm7, %v3518_v22, %v3378_v7 }
 0x50e   : > { %v3266_v15 = vpop.f32.mrb[98].mxu0 }
 0x50f   : > { %v3307_v44 = vmul.f32 %v5296_v49, %v3266_v15  ;;  %v4654_v37 = vpop.f32.mrb[99].mxu0  ;;  %v3380_v40 = vpop.permute.xlu1 %3379 }
 0x511   : > { %3489 = vrot.lane.b32.xlu0 %v3307_v44, %s5340_s23  ;;  %v3527_v44 = vsel %vm3525_vm7, %v7232_v48, %v3380_v40 }
 0x512   : > { %v3271_v21 = vpop.f32.mrb[100].mxu0 }
 0x513   : > { %v3308_v62 = vmul.f32 %v5298_v13, %v3271_v21  ;;  %v4657_v61 = vpop.f32.mrb[101].mxu0  ;;  %v3382_v60 = vpop.permute.xlu0 %3381 }
 0x515   : > { %3491 = vrot.lane.b32.xlu1 %v3308_v62, %s5340_s23 }
 0x516   : > { %v3276_v20 = vpop.f32.mrb[102].mxu0 }
 0x517   : > { %v3309_v51 = vmul.f32 %v5300_v30, %v3276_v20  ;;  %v4660_v33 = vpop.f32.mrb[103].mxu0  ;;  %v3384_v58 = vpop.permute.xlu1 %3383  ;;  %v3528_v30 = vsel %vm3525_vm7, %v7235_v56, %v3382_v60 }
 0x519   : > { %3493 = vrot.lane.b32.xlu0 %v3309_v51, %s5340_s23 }
 0x51a   : > { %v3281_v8 = vpop.f32.mrb[104].mxu0 }
 0x51b   : > { %v3310_v27 = vmul.f32 %v5302_v43, %v3281_v8  ;;  %v4663_v1 = vpop.f32.mrb[105].mxu0  ;;  %v3386_v28 = vpop.permute.xlu0 %3385  ;;  %v3529_v8 = vsel %vm3525_vm7, %v7240_v17, %v3384_v58 }
 0x51d   : > { %3495 = vrot.lane.b32.xlu1 %v3310_v27, %s5340_s23 }
 0x51e   : > { %v3286_v63 = vpop.f32.mrb[106].mxu0 }
 0x51f   : > { %v3311_v46 = vmul.f32 %v5304_v29, %v3286_v63  ;;  %v4666_v24 = vpop.f32.mrb[107].mxu0  ;;  %v7272_v6 = vpop.permute.xlu1 %3387 }
 0x521   : > { %3497 = vrot.lane.b32.xlu0 %v3311_v46, %s5340_s23  ;;  %v3530_v46 = vsel %vm3525_vm7, %v7243_v26, %v3386_v28 }
 0x522   : > { %v3291_v23 = vpop.f32.mrb[108].mxu0 }
 0x523   : > { %v3312_v4 = vmul.f32 %v5306_v57, %v3291_v23  ;;  %v4669_v39 = vpop.f32.mrb[109].mxu0  ;;  %v7274_v19 = vpop.permute.xlu0 %3389 }
 0x524   : > { %v3532_v26 = vsel %vm3525_vm7, %v7250_v11, %v7274_v19 }
 0x525   : > { %3501 = vrot.lane.b32.xlu0 %v3313_v3, %s5340_s23  ;;  %3499 = vrot.lane.b32.xlu1 %v3312_v4, %s5340_s23  ;;  %v3531_v3 = vsel %vm3525_vm7, %v7247_v55, %v7272_v6 }
 0x527   : > { %v3406_v45 = vpop.permute.xlu1 %3405 }
 0x528   : > { %v3534_v52 = vsel %vm3533_vm8, %v3526_v50, %v3406_v45 }
 0x52b   : > { %v3408_v31 = vpop.permute.xlu0 %3407 }
 0x52c   : > { %v3535_v13 = vsel %vm3533_vm8, %v3527_v44, %v3408_v31 }
 0x52f   : > { %v3410_v9 = vpop.permute.xlu1 %3409 }
 0x530   : > { %v3536_v48 = vsel %vm3533_vm8, %v3528_v30, %v3410_v9 }
 0x533   : > { %v3412_v18 = vpop.permute.xlu0 %3411 }
 0x534   : > { %v3537_v1 = vsel %vm3533_vm8, %v3529_v8, %v3412_v18 }
 0x537   : > { %v3414_v35 = vpop.permute.xlu1 %3413 }
 0x538   : > { %v3538_v57 = vsel %vm3533_vm8, %v3530_v46, %v3414_v35 }
 0x53b   : > { %v3416_v36 = vpop.permute.xlu0 %3415 }
 0x53c   : > { %v3539_v39 = vsel %vm3533_vm8, %v3531_v3, %v3416_v36 }
 0x53f   : > { %v3418_v59 = vpop.permute.xlu1 %3417 }
 0x540   : > { %v3540_v7 = vsel %vm3533_vm8, %v3532_v26, %v3418_v59 }
 0x543   : > { %v3434_v16 = vpop.permute.xlu0 %3433 }
 0x544   : > { %v3542_v49 = vsel %vm3541_vm9, %v3534_v52, %v3434_v16 }
 0x547   : > { %v3436_v10 = vpop.permute.xlu1 %3435 }
 0x548   : > { %v3543_v21 = vsel %vm3541_vm9, %v3535_v13, %v3436_v10 }
 0x54b   : > { %v3438_v2 = vpop.permute.xlu0 %3437 }
 0x54c   : > { %v3544_v51 = vsel %vm3541_vm9, %v3536_v48, %v3438_v2 }
 0x54f   : > { %v3440_v12 = vpop.permute.xlu1 %3439 }
 0x550   : > { %v3545_v56 = vsel %vm3541_vm9, %v3537_v1, %v3440_v12 }
 0x553   : > { %v3442_v34 = vpop.permute.xlu0 %3441 }
 0x554   : > { %v3546_v17 = vsel %vm3541_vm9, %v3538_v57, %v3442_v34 }
 0x557   : > { %v3444_v54 = vpop.permute.xlu1 %3443 }
 0x558   : > { %v3547_v40 = vsel %vm3541_vm9, %v3539_v39, %v3444_v54 }
 0x55b   : > { %v3446_v42 = vpop.permute.xlu0 %3445 }
 0x55c   : > { %v3548_v60 = vsel %vm3541_vm9, %v3540_v7, %v3446_v42 }
 0x55f   : > { %v3462_v0 = vpop.permute.xlu1 %3461 }
 0x560   : > { %v3550_v47 = vsel %vm3549_vm10, %v3542_v49, %v3462_v0 }
 0x563   : > { %v3464_v5 = vpop.permute.xlu0 %3463 }
 0x564   : > { %v3551_v62 = vsel %vm3549_vm10, %v3543_v21, %v3464_v5 }
 0x567   : > { %v3466_v25 = vpop.permute.xlu1 %3465 }
 0x568   : > { %v3552_v33 = vsel %vm3549_vm10, %v3544_v51, %v3466_v25 }
 0x56b   : > { %v3468_v41 = vpop.permute.xlu0 %3467 }
 0x56c   : > { %v3553_v29 = vsel %vm3549_vm10, %v3545_v56, %v3468_v41 }
 0x56f   : > { %v3470_v53 = vpop.permute.xlu1 %3469 }
 0x570   : > { %v3554_v14 = vsel %vm3549_vm10, %v3546_v17, %v3470_v53 }
 0x57b   : > { %v3472_v38 = vpop.permute.xlu0 %3471 }
 0x57c   : > { %v3555_v55 = vsel %vm3549_vm10, %v3547_v40, %v3472_v38 }
 0x57f   : > { %v3474_v32 = vpop.permute.xlu1 %3473 }
 0x580   : > { %v3556_v58 = vsel %vm3549_vm10, %v3548_v60, %v3474_v32 }
 0x583   : > { %v3490_v15 = vpop.permute.xlu0 %3489 }
 0x584   : > { %v3558_v37 = vsel %vm3557_vm11, %v3550_v47, %v3490_v15 }
 0x585   : > { %3566 = vst.msk [vmem:[%s7286_s18] sm:$0xff] %vm3565_vm12, %v3558_v37 }
 0x587   : > { %v3492_v61 = vpop.permute.xlu1 %3491 }
 0x588   : > { %v3559_v20 = vsel %vm3557_vm11, %v3551_v62, %v3492_v61 }
 0x589   : > { %3567 = vst.msk [vmem:[%s7286_s18 + $0x8] sm:$0xff] %vm3565_vm12, %v3559_v20 }
 0x58b   : > { %v3494_v43 = vpop.permute.xlu0 %3493 }
 0x58c   : > { %v3560_v27 = vsel %vm3557_vm11, %v3552_v33, %v3494_v43 }
 0x58d   : > { %3568 = vst.msk [vmem:[%s7286_s18 + $0x10] sm:$0xff] %vm3565_vm12, %v3560_v27 }
 0x58f   : > { %v3496_v63 = vpop.permute.xlu1 %3495 }
 0x590   : > { %v3561_v24 = vsel %vm3557_vm11, %v3553_v29, %v3496_v63 }
 0x591   : > { %3569 = vst.msk [vmem:[%s7286_s18 + $0x18] sm:$0xff] %vm3565_vm12, %v3561_v24 }
 0x593   : > { %v3498_v23 = vpop.permute.xlu0 %3497 }
 0x594   : > { %v3562_v4 = vsel %vm3557_vm11, %v3554_v14, %v3498_v23 }
 0x595   : > { %3570 = vst.msk [vmem:[%s7286_s18 + $0x20] sm:$0xff] %vm3565_vm12, %v3562_v4 }
 0x597   : > { %v3502_v28 = vpop.permute.xlu0 %3501  ;;  %v3500_v6 = vpop.permute.xlu1 %3499 }
 0x598   : > { %v3564_v11 = vsel %vm3557_vm11, %v3556_v58, %v3502_v28  ;;  %v3563_v19 = vsel %vm3557_vm11, %v3555_v55, %v3500_v6 }
 0x599   : > { %3573 = vst.msk [vmem:[%s7286_s18 + $0x30] sm:$0x1] %vm3572_vm13, %v3564_v11 }
 0x59a   : > { %3571 = vst.msk [vmem:[%s7286_s18 + $0x28] sm:$0xff] %vm3565_vm12, %v3563_v19 }
 0x59b PF: > { %s14_s15 = sadd.s32 1, %s5322_s15  }
 0x59c   : > { %p11_p4 = scmp.ge.s32.totalorder %s14_s15, 4  }
 0x59e   :  { %13 = sbr.rel (!%p11_p4) target bundleno = 1 (0x1), region = 79 }

</bundles_post_ra>
